<compile_context>
chip_gen: v7x
topology: tpu7x:2x2x1
jax: 0.10.0
libtpu: 0.0.40
codegen_flags: <defaults>
</compile_context>

<pallas_src>
import jax
import jax.numpy as jnp
from jax import lax
from jax.experimental import pallas as pl
from jax.experimental.pallas import tpu as pltpu

# Small-but-consistent hyper params (module takes them via a params dict).
INPUT_DIM = 256
KEY_DIM = 128
VALUE_DIM = 128
HIDDEN_DIM = 128
N_HISTORY = 8
N_ENTITY = 4
N_STEPS = 16         # independent forward() calls
T_BLOCK = 8          # timesteps processed per kernel-body invocation

NCAT = KEY_DIM + VALUE_DIM + INPUT_DIM + VALUE_DIM   # [wk | wv | wqk | wip]
SCAL_LANES = 128                                     # packed scalar output width

ETA = 0.9      # momentum coeff (buffers start at 0 -> eta term vanishes this step)
THETA = 0.1
ALPHA = 0.1


def _rowsums(*mats):
    """Consolidated lane reductions: stack equal-width (T,W) tiles along the
    sublane axis, do ONE cross-lane reduce, slice the (T,1) results back."""
    t = mats[0].shape[0]
    stacked = jnp.concatenate(mats, axis=0)               # (n*T, W)
    s = jnp.sum(stacked, axis=-1, keepdims=True)          # (n*T, 1)
    return [s[i * t:(i + 1) * t] for i in range(len(mats))]


def titan_kernel(x_ref, hist_ref, ent_ref,
                 wcat_ref, kv_ref,
                 w1_ref, b1_ref, w2_ref, w2t_ref, b2_ref,
                 wst_ref, bst_ref,
                 wg_ref, wgt_ref, bip_ref,
                 wep_ref, bep_ref, weg_ref,
                 gbias_ref,
                 fused_ref, scal_ref):
    f32 = jnp.float32
    x = x_ref[...]                                                   # (T, I)

    # -------- one fused matmul for every projection whose LHS is x --------
    # wcat = [W_K | W_V | Wq@Wkp^T | input_proj]   (I, 640)
    xproj = jnp.dot(x, wcat_ref[...], preferred_element_type=f32)    # (T, NCAT)
    k = xproj[:, 0:KEY_DIM]                                          # (T, K)
    v = xproj[:, KEY_DIM:KEY_DIM + VALUE_DIM]                        # (T, V)
    qk = xproj[:, KEY_DIM + VALUE_DIM:KEY_DIM + VALUE_DIM + INPUT_DIM]  # (T, I)
    proj_in = (xproj[:, KEY_DIM + VALUE_DIM + INPUT_DIM:NCAT]
               + bip_ref[...])                                       # (T, V)

    # ---------------- TitanMemory.update_memory (rank-1 form) ----------------
    # Each row t is an independent batch-1 update starting from the same
    # w1/w2 with zero momentum buffers == one module forward() call.
    w1 = w1_ref[...]; b1 = b1_ref[...]; w2 = w2_ref[...]; b2 = b2_ref[...]
    h_pre = jnp.dot(k, w1, preferred_element_type=f32) + b1          # (T, H)
    h = jnp.maximum(h_pre, 0.0)
    pred = jnp.dot(h, w2, preferred_element_type=f32) + b2           # (T, V)
    diff = pred - v
    inv_v = 1.0 / float(VALUE_DIM)
    dpred = (2.0 * inv_v) * diff                                     # (T, V)
    dh = jnp.dot(dpred, w2t_ref[...], preferred_element_type=f32)    # (T, H)
    dh_pre = dh * (h_pre > 0.0).astype(f32)

    # rank-1 identities (batch 1 per row): sum(g_w1^2)=(k.k)*sum(dh_pre^2);
    # sum(g_w2^2)=(h.h)*sum(dpred^2); g_b1=dh_pre; g_b2=dpred.
    kk, hh, s_dhp, ss_diff = _rowsums(k * k, h * h, dh_pre * dh_pre, diff * diff)
    loss = ss_diff * inv_v                                           # F.mse_loss (T,1)
    s_dp = ss_diff * (4.0 * inv_v * inv_v)                           # sum(dpred^2)
    total_sq = (1.0 + kk) * s_dhp + (1.0 + hh) * s_dp
    avg_surprise = jnp.sqrt(total_sq * 0.25)                         # mean over 4 tensors
    eff_theta = THETA * jax.nn.sigmoid(avg_surprise)                 # (T, 1)
    om_alpha = 1.0 - ALPHA                                           # momentum buf = 0

    # k @ w1n + b1n == om_alpha*h_pre - eff_theta*(1 + k.k)*dh_pre
    h2 = jnp.maximum(om_alpha * h_pre - (eff_theta * (1.0 + kk)) * dh_pre, 0.0)
    h2h = jnp.sum(h2 * h, axis=-1, keepdims=True)
    # h2 @ w2n + b2n == om_alpha*(h2@w2 + b2) - eff_theta*(1 + h2.h)*dpred
    titan_context = (om_alpha * (jnp.dot(h2, w2, preferred_element_type=f32) + b2)
                     - (eff_theta * (1.0 + h2h)) * dpred)            # (T, V)
    persistent_out = titan_context + kv_ref[...]                     # (T, V)

    # ---------------- SimpleAttention + short_term_net ----------------
    # scores = (x @ Wq @ Wkp^T) @ hist^T  ==  q @ (hist @ Wkp)^T
    hist = hist_ref[...]                                             # (T, Hn, I)
    scores = jnp.sum(qk[:, None, :] * hist, axis=-1)                 # (T, Hn)
    scores = scores - jnp.max(scores, axis=-1, keepdims=True)
    ex = jnp.exp(scores)
    attw = ex * pl.reciprocal(jnp.sum(ex, axis=-1, keepdims=True), approx=True)
    stv = jnp.sum(attw[:, :, None] * hist, axis=1)                   # (T, I)
    short_ctx = (jnp.dot(stv, wst_ref[...], preferred_element_type=f32)
                 + bst_ref[...])                                     # (T, V)

    # ---------------- entity context (hoisted so its reduce joins below) -----
    ent = ent_ref[...]                                               # (T, E, I)
    ent_avg = jnp.mean(ent, axis=1)                                  # (T, I)
    ent_ctx = (jnp.dot(ent_avg, wep_ref[...], preferred_element_type=f32)
               + bep_ref[...])                                       # (T, V)

    # ---------------- gates + gating loss (one consolidated reduce) ----------
    (gsum, gtsum, egsum, n_lt, aa, pp, n_st, ss) = _rowsums(
        persistent_out * wg_ref[...], persistent_out * wgt_ref[...],
        ent_ctx * weg_ref[...],
        proj_in * persistent_out, proj_in * proj_in,
        persistent_out * persistent_out,
        proj_in * short_ctx, short_ctx * short_ctx)

    bg = gbias_ref[0, 0]; bgt = gbias_ref[0, 1]; beg = gbias_ref[0, 2]
    gate_val = jax.nn.sigmoid(gsum + bg)                             # (T, 1)
    pred_gate = jax.nn.sigmoid(gtsum + bgt)
    ent_gate = jax.nn.sigmoid(egsum + beg)

    # (cosine_similarity(dim=1)+1)/2 with the same eps clamp, via one rsqrt.
    eps2 = 1e-16
    aa_c = jnp.maximum(aa, eps2)
    ltm = (n_lt * lax.rsqrt(aa_c * jnp.maximum(pp, eps2)) + 1.0) * 0.5
    stm = (n_st * lax.rsqrt(aa_c * jnp.maximum(ss, eps2)) + 1.0) * 0.5
    ideal_gate = ltm / (ltm + stm + 1e-8)                            # detached in torch
    gdiff = pred_gate - ideal_gate
    gating_loss = gdiff * gdiff                                      # mse over 1 elem (T,1)

    fused = gate_val * persistent_out + (1.0 - gate_val) * short_ctx
    fused = ent_gate * ent_ctx + (1.0 - ent_gate) * fused

    # ---------------- dense (T,128) output stores ----------------
    fused_ref[...] = fused
    lane = lax.broadcasted_iota(jnp.int32, (1, SCAL_LANES), 1)
    packed = jnp.where(lane == 0, loss, 0.0)
    packed = jnp.where(lane == 1, gate_val, packed)
    packed = jnp.where(lane == 2, pred_gate, packed)
    packed = jnp.where(lane == 3, gating_loss, packed)
    scal_ref[...] = packed.astype(f32)


def titan_forward(xs, hists, ents, p, t_block=T_BLOCK):
    """xs:(T,I), hists:(T,Hn,I), ents:(T,E,I) -> batched forward() outputs."""
    T = xs.shape[0]
    assert T % t_block == 0, (T, t_block)

    # Fold Wq@Wkp^T (attention key projection disappears from the kernel),
    # fuse all x projections into one wide weight, pre-transpose w2 for the
    # backward matvec, route the 3 gate biases through SMEM.
    wqk = p['wq'] @ p['wkp'].T                                       # (I, I)
    wcat = jnp.concatenate([p['wk'], p['wv'], wqk, p['wip']], axis=1)  # (I, NCAT)
    w2t = p['w2'].T                                                  # (V, H)
    gbias = jnp.concatenate([p['bg'], p['bgt'], p['beg']], axis=1)   # (1, 3)

    def blocked(*tail):
        zeros = (0,) * len(tail)
        return pl.BlockSpec((t_block,) + tail, lambda g: (g,) + zeros)

    def resident(shape):
        zeros = (0,) * len(shape)
        return pl.BlockSpec(tuple(shape), lambda g: zeros)

    resident_weights = [wcat, p['kv'], p['w1'], p['b1'], p['w2'], w2t, p['b2'],
                        p['wst'], p['bst'], p['wg'], p['wgt'],
                        p['bip'], p['wep'], p['bep'], p['weg']]

    in_specs = ([blocked(INPUT_DIM),                    # x
                 blocked(N_HISTORY, INPUT_DIM),         # history
                 blocked(N_ENTITY, INPUT_DIM)]          # entity
                + [resident(w.shape) for w in resident_weights]
                + [pl.BlockSpec((1, 3), lambda g: (0, 0),
                                memory_space=pltpu.MemorySpace.SMEM)])

    out_shape = (jax.ShapeDtypeStruct((T, VALUE_DIM), jnp.float32),   # fused
                 jax.ShapeDtypeStruct((T, SCAL_LANES), jnp.float32))  # packed scalars
    out_specs = (blocked(VALUE_DIM), blocked(SCAL_LANES))

    # Advisory cost estimate (helps XLA schedule/overlap around the call).
    flops_step = 2 * (INPUT_DIM * NCAT
                      + KEY_DIM * HIDDEN_DIM + 3 * HIDDEN_DIM * VALUE_DIM
                      + 2 * N_HISTORY * INPUT_DIM
                      + 2 * INPUT_DIM * VALUE_DIM)
    weight_bytes = 4 * sum(int(w.size) for w in resident_weights) + 4 * 3
    act_bytes = 4 * T * ((1 + N_HISTORY + N_ENTITY) * INPUT_DIM
                         + VALUE_DIM + SCAL_LANES)
    cost = pl.CostEstimate(flops=T * flops_step,
                           transcendentals=T * (N_HISTORY + 8),
                           bytes_accessed=weight_bytes + act_bytes)

    fused, scal = pl.pallas_call(
        titan_kernel,
        grid=(T // t_block,),
        out_shape=out_shape,
        in_specs=in_specs,
        out_specs=out_specs,
        compiler_params=pltpu.CompilerParams(
            # "arbitrary": at this tiny grid, sharding across v7x's two TCs
            # would duplicate the resident-weight DMA for ~zero compute gain.
            dimension_semantics=("arbitrary",)),
        cost_estimate=cost,
    )(xs, hists, ents, *resident_weights, gbias)

    return (fused, scal[:, 0:1], scal[:, 1:2], scal[:, 2:3], scal[:, 3:4])


# ---------------- pure-JAX reference (single step, for correctness check) ------
def reference_forward(x, hist, ent, p):
    k = x @ p['wk']; v = x @ p['wv']
    h_pre = k @ p['w1'] + p['b1']; h = jnp.maximum(h_pre, 0.0)
    pred = h @ p['w2'] + p['b2']
    diff = pred - v
    n = float(diff.size)
    loss = jnp.sum(diff * diff) / n
    dpred = (2.0 / n) * diff
    g_w2 = h.T @ dpred; g_b2 = dpred
    dh = dpred @ p['w2'].T
    dh_pre = dh * (h_pre > 0.0)
    g_w1 = k.T @ dh_pre; g_b1 = dh_pre
    tot = sum(jnp.sum(g * g) for g in (g_w1, g_b1, g_w2, g_b2))
    eff = THETA * jax.nn.sigmoid(jnp.sqrt(tot / 4.0))
    oa = 1.0 - ALPHA
    w1n, b1n = oa * p['w1'] - eff * g_w1, oa * p['b1'] - eff * g_b1
    w2n, b2n = oa * p['w2'] - eff * g_w2, oa * p['b2'] - eff * g_b2
    tc = jnp.maximum(k @ w1n + b1n, 0.0) @ w2n + b2n
    pers = tc + p['kv']
    q = x @ p['wq']; kh = hist @ p['wkp']
    attw = jax.nn.softmax(q @ kh.T, axis=1)
    short = (attw @ hist) @ p['wst'] + p['bst']
    gate = jax.nn.sigmoid(jnp.sum(pers * p['wg'], -1, keepdims=True) + p['bg'])
    pgate = jax.nn.sigmoid(jnp.sum(pers * p['wgt'], -1, keepdims=True) + p['bgt'])
    proj = x @ p['wip'] + p['bip']

    def cos01(a, b):
        na = jnp.maximum(jnp.linalg.norm(a, axis=-1, keepdims=True), 1e-8)
        nb = jnp.maximum(jnp.linalg.norm(b, axis=-1, keepdims=True), 1e-8)
        return (jnp.sum(a * b, -1, keepdims=True) / (na * nb) + 1.0) * 0.5

    ltm, stm = cos01(proj, pers), cos01(proj, short)
    ideal = ltm / (ltm + stm + 1e-8)
    gloss = jnp.sum((pgate - ideal) ** 2)
    fused = gate * pers + (1.0 - gate) * short
    ea = jnp.mean(ent, axis=0, keepdims=True)
    ec = ea @ p['wep'] + p['bep']
    eg = jax.nn.sigmoid(jnp.sum(ec * p['weg'], -1, keepdims=True) + p['beg'])
    fused = eg * ec + (1.0 - eg) * fused
    return (fused, jnp.full((1, 1), loss), gate, pgate, jnp.full((1, 1), gloss))


def init_params(key):
    ks = iter(jax.random.split(key, 32))

    def lin_w(fan_in, fan_out):
        bound = 1.0 / (fan_in ** 0.5)
        return jax.random.uniform(next(ks), (fan_in, fan_out), jnp.float32, -bound, bound)

    def lin_b(fan_in, fan_out):
        bound = 1.0 / (fan_in ** 0.5)
        return jax.random.uniform(next(ks), (1, fan_out), jnp.float32, -bound, bound)

    return dict(
        kv=jax.random.normal(next(ks), (1, VALUE_DIM), jnp.float32),   # PersistentMemory
        wk=lin_w(INPUT_DIM, KEY_DIM),
        wv=lin_w(INPUT_DIM, VALUE_DIM),
        w1=lin_w(KEY_DIM, HIDDEN_DIM), b1=lin_b(KEY_DIM, HIDDEN_DIM),
        w2=lin_w(HIDDEN_DIM, VALUE_DIM), b2=lin_b(HIDDEN_DIM, VALUE_DIM),
        wq=lin_w(INPUT_DIM, INPUT_DIM),
        wkp=lin_w(INPUT_DIM, INPUT_DIM),
        wst=lin_w(INPUT_DIM, VALUE_DIM), bst=lin_b(INPUT_DIM, VALUE_DIM),
        wg=lin_w(VALUE_DIM, 1).T, bg=lin_b(VALUE_DIM, 1),
        wgt=lin_w(VALUE_DIM, 1).T, bgt=lin_b(VALUE_DIM, 1),
        wip=lin_w(INPUT_DIM, VALUE_DIM), bip=lin_b(INPUT_DIM, VALUE_DIM),
        wep=lin_w(INPUT_DIM, VALUE_DIM), bep=lin_b(INPUT_DIM, VALUE_DIM),
        weg=lin_w(VALUE_DIM, 1).T, beg=lin_b(VALUE_DIM, 1),
    )


if __name__ == "__main__":
    key = jax.random.PRNGKey(0)
    kx, kh, ke, kp = jax.random.split(key, 4)
    T = N_STEPS
    # T independent forward() calls (each with batch-1 current_input).
    xs = jax.random.normal(kx, (T, INPUT_DIM), jnp.float32)
    hists = jax.random.normal(kh, (T, N_HISTORY, INPUT_DIM), jnp.float32)
    ents = jax.random.normal(ke, (T, N_ENTITY, INPUT_DIM), jnp.float32)
    params = init_params(kp)

    fused, tloss, gate, pgate, gloss = jax.block_until_ready(
        titan_forward(xs, hists, ents, params))

    names = ("fused", "titan_loss", "gate_val", "predicted_gate", "gating_loss")
    for t in range(T):
        refs = reference_forward(xs[t:t + 1], hists[t], ents[t], params)
        kouts = (fused[t:t + 1], tloss[t:t + 1], gate[t:t + 1],
                 pgate[t:t + 1], gloss[t:t + 1])
        for name, o, r in zip(names, kouts, refs):
            assert o.shape == r.shape, (t, name, o.shape, r.shape)
            assert jnp.allclose(o, r, rtol=2e-3, atol=2e-3), (t, name, o, r)

    print("KERNEL_OK")
</pallas_src>

<mosaic_0001>
module attributes {stable_mosaic.version = 11 : i64} {
  func.func @titan_kernel(%arg0: i32, %arg1: memref<8x256xf32, #tpu.memory_space<vmem>>, %arg2: memref<8x8x256xf32, #tpu.memory_space<vmem>>, %arg3: memref<8x4x256xf32, #tpu.memory_space<vmem>>, %arg4: memref<256x640xf32, #tpu.memory_space<vmem>>, %arg5: memref<1x128xf32, #tpu.memory_space<vmem>>, %arg6: memref<128x128xf32, #tpu.memory_space<vmem>>, %arg7: memref<1x128xf32, #tpu.memory_space<vmem>>, %arg8: memref<128x128xf32, #tpu.memory_space<vmem>>, %arg9: memref<128x128xf32, #tpu.memory_space<vmem>>, %arg10: memref<1x128xf32, #tpu.memory_space<vmem>>, %arg11: memref<256x128xf32, #tpu.memory_space<vmem>>, %arg12: memref<1x128xf32, #tpu.memory_space<vmem>>, %arg13: memref<1x128xf32, #tpu.memory_space<vmem>>, %arg14: memref<1x128xf32, #tpu.memory_space<vmem>>, %arg15: memref<1x128xf32, #tpu.memory_space<vmem>>, %arg16: memref<256x128xf32, #tpu.memory_space<vmem>>, %arg17: memref<1x128xf32, #tpu.memory_space<vmem>>, %arg18: memref<1x128xf32, #tpu.memory_space<vmem>>, %arg19: memref<1x3xf32, #tpu.memory_space<smem>>, %arg20: memref<8x128xf32, #tpu.memory_space<vmem>>, %arg21: memref<8x128xf32, #tpu.memory_space<vmem>>) attributes {dimension_semantics = [#tpu.dimension_semantics<arbitrary>], iteration_bounds = array<i64: 2>, scalar_prefetch = 0 : i64, scratch_operands = 0 : i64, tpu.core_type = #tpu.core_type<tc>, window_params = [{transform_indices = @transform_0, window_bounds = array<i64: 8, 256>}, {transform_indices = @transform_1, window_bounds = array<i64: 8, 8, 256>}, {transform_indices = @transform_2, window_bounds = array<i64: 8, 4, 256>}, {pipeline_mode = #tpu.pipeline_mode<synchronous>, transform_indices = @transform_3, window_bounds = array<i64: 256, 640>}, {pipeline_mode = #tpu.pipeline_mode<synchronous>, transform_indices = @transform_4, window_bounds = array<i64: 1, 128>}, {pipeline_mode = #tpu.pipeline_mode<synchronous>, transform_indices = @transform_5, window_bounds = array<i64: 128, 128>}, {pipeline_mode = #tpu.pipeline_mode<synchronous>, transform_indices = @transform_6, window_bounds = array<i64: 1, 128>}, {pipeline_mode = #tpu.pipeline_mode<synchronous>, transform_indices = @transform_7, window_bounds = array<i64: 128, 128>}, {pipeline_mode = #tpu.pipeline_mode<synchronous>, transform_indices = @transform_8, window_bounds = array<i64: 128, 128>}, {pipeline_mode = #tpu.pipeline_mode<synchronous>, transform_indices = @transform_9, window_bounds = array<i64: 1, 128>}, {pipeline_mode = #tpu.pipeline_mode<synchronous>, transform_indices = @transform_10, window_bounds = array<i64: 256, 128>}, {pipeline_mode = #tpu.pipeline_mode<synchronous>, transform_indices = @transform_11, window_bounds = array<i64: 1, 128>}, {pipeline_mode = #tpu.pipeline_mode<synchronous>, transform_indices = @transform_12, window_bounds = array<i64: 1, 128>}, {pipeline_mode = #tpu.pipeline_mode<synchronous>, transform_indices = @transform_13, window_bounds = array<i64: 1, 128>}, {pipeline_mode = #tpu.pipeline_mode<synchronous>, transform_indices = @transform_14, window_bounds = array<i64: 1, 128>}, {pipeline_mode = #tpu.pipeline_mode<synchronous>, transform_indices = @transform_15, window_bounds = array<i64: 256, 128>}, {pipeline_mode = #tpu.pipeline_mode<synchronous>, transform_indices = @transform_16, window_bounds = array<i64: 1, 128>}, {pipeline_mode = #tpu.pipeline_mode<synchronous>, transform_indices = @transform_17, window_bounds = array<i64: 1, 128>}, {transform_indices = @transform_18, window_bounds = array<i64: 1, 3>}, {transform_indices = @transform_19, window_bounds = array<i64: 8, 128>}, {transform_indices = @transform_20, window_bounds = array<i64: 8, 128>}]} {
    %c0 = arith.constant 0 : index
    %c0_0 = arith.constant 0 : index
    %0 = vector.load %arg1[%c0, %c0_0] : memref<8x256xf32, #tpu.memory_space<vmem>>, vector<8x256xf32>
    %c0_1 = arith.constant 0 : index
    %c0_2 = arith.constant 0 : index
    %1 = vector.load %arg4[%c0_1, %c0_2] : memref<256x640xf32, #tpu.memory_space<vmem>>, vector<256x640xf32>
    %cst = arith.constant dense<0.000000e+00> : vector<8x640xf32>
    %2 = tpu.matmul %0, %1, %cst {dimension_numbers = #tpu.dot_dimension_numbers<[1], [0], [0], [1], [0, 0, 1, 1], [], []>} : vector<8x256xf32>, vector<256x640xf32>, vector<8x640xf32> -> vector<8x640xf32>
    %3 = vector.extract_strided_slice %2 {offsets = [0, 0], sizes = [8, 128], strides = [1, 1]} : vector<8x640xf32> to vector<8x128xf32>
    %4 = vector.extract_strided_slice %2 {offsets = [0, 128], sizes = [8, 128], strides = [1, 1]} : vector<8x640xf32> to vector<8x128xf32>
    %5 = vector.extract_strided_slice %2 {offsets = [0, 256], sizes = [8, 256], strides = [1, 1]} : vector<8x640xf32> to vector<8x256xf32>
    %6 = vector.extract_strided_slice %2 {offsets = [0, 512], sizes = [8, 128], strides = [1, 1]} : vector<8x640xf32> to vector<8x128xf32>
    %c0_3 = arith.constant 0 : index
    %c0_4 = arith.constant 0 : index
    %7 = vector.load %arg15[%c0_3, %c0_4] : memref<1x128xf32, #tpu.memory_space<vmem>>, vector<1x128xf32>
    %8 = vector.broadcast %7 : vector<1x128xf32> to vector<8x128xf32>
    %9 = arith.addf %6, %8 : vector<8x128xf32>
    %c0_5 = arith.constant 0 : index
    %c0_6 = arith.constant 0 : index
    %10 = vector.load %arg6[%c0_5, %c0_6] : memref<128x128xf32, #tpu.memory_space<vmem>>, vector<128x128xf32>
    %c0_7 = arith.constant 0 : index
    %c0_8 = arith.constant 0 : index
    %11 = vector.load %arg7[%c0_7, %c0_8] : memref<1x128xf32, #tpu.memory_space<vmem>>, vector<1x128xf32>
    %c0_9 = arith.constant 0 : index
    %c0_10 = arith.constant 0 : index
    %12 = vector.load %arg8[%c0_9, %c0_10] : memref<128x128xf32, #tpu.memory_space<vmem>>, vector<128x128xf32>
    %c0_11 = arith.constant 0 : index
    %c0_12 = arith.constant 0 : index
    %13 = vector.load %arg10[%c0_11, %c0_12] : memref<1x128xf32, #tpu.memory_space<vmem>>, vector<1x128xf32>
    %cst_13 = arith.constant dense<0.000000e+00> : vector<8x128xf32>
    %14 = tpu.matmul %3, %10, %cst_13 {dimension_numbers = #tpu.dot_dimension_numbers<[1], [0], [0], [1], [0, 0, 1, 1], [], []>} : vector<8x128xf32>, vector<128x128xf32>, vector<8x128xf32> -> vector<8x128xf32>
    %15 = vector.broadcast %11 : vector<1x128xf32> to vector<8x128xf32>
    %16 = arith.addf %14, %15 : vector<8x128xf32>
    %cst_14 = arith.constant 0.000000e+00 : f32
    %17 = vector.broadcast %cst_14 : f32 to vector<8x128xf32>
    %18 = arith.maximumf %16, %17 : vector<8x128xf32>
    %cst_15 = arith.constant dense<0.000000e+00> : vector<8x128xf32>
    %19 = tpu.matmul %18, %12, %cst_15 {dimension_numbers = #tpu.dot_dimension_numbers<[1], [0], [0], [1], [0, 0, 1, 1], [], []>} : vector<8x128xf32>, vector<128x128xf32>, vector<8x128xf32> -> vector<8x128xf32>
    %20 = vector.broadcast %13 : vector<1x128xf32> to vector<8x128xf32>
    %21 = arith.addf %19, %20 : vector<8x128xf32>
    %22 = arith.subf %21, %4 : vector<8x128xf32>
    %cst_16 = arith.constant 1.562500e-02 : f32
    %23 = vector.broadcast %cst_16 : f32 to vector<8x128xf32>
    %24 = arith.mulf %23, %22 : vector<8x128xf32>
    %c0_17 = arith.constant 0 : index
    %c0_18 = arith.constant 0 : index
    %25 = vector.load %arg9[%c0_17, %c0_18] : memref<128x128xf32, #tpu.memory_space<vmem>>, vector<128x128xf32>
    %cst_19 = arith.constant dense<0.000000e+00> : vector<8x128xf32>
    %26 = tpu.matmul %24, %25, %cst_19 {dimension_numbers = #tpu.dot_dimension_numbers<[1], [0], [0], [1], [0, 0, 1, 1], [], []>} : vector<8x128xf32>, vector<128x128xf32>, vector<8x128xf32> -> vector<8x128xf32>
    %cst_20 = arith.constant 0.000000e+00 : f32
    %27 = vector.broadcast %cst_20 : f32 to vector<8x128xf32>
    %28 = arith.cmpf ogt, %16, %27 : vector<8x128xf32>
    %29 = arith.extui %28 : vector<8x128xi1> to vector<8x128xi32>
    %30 = arith.sitofp %29 : vector<8x128xi32> to vector<8x128xf32>
    %31 = arith.mulf %26, %30 : vector<8x128xf32>
    %32 = arith.mulf %3, %3 : vector<8x128xf32>
    %33 = arith.mulf %18, %18 : vector<8x128xf32>
    %34 = arith.mulf %31, %31 : vector<8x128xf32>
    %35 = arith.mulf %22, %22 : vector<8x128xf32>
    %36 = tpu.concatenate %32, %33, %34, %35 in 0 : vector<8x128xf32>, vector<8x128xf32>, vector<8x128xf32>, vector<8x128xf32> -> vector<32x128xf32>
    %cst_21 = arith.constant dense<0.000000e+00> : vector<32xf32>
    %37 = vector.multi_reduction <add>, %36, %cst_21 [1] : vector<32x128xf32> to vector<32xf32>
    %38 = vector.shape_cast %37 : vector<32xf32> to vector<32x1xf32>
    %39 = vector.extract_strided_slice %38 {offsets = [0, 0], sizes = [8, 1], strides = [1, 1]} : vector<32x1xf32> to vector<8x1xf32>
    %40 = vector.extract_strided_slice %38 {offsets = [8, 0], sizes = [8, 1], strides = [1, 1]} : vector<32x1xf32> to vector<8x1xf32>
    %41 = vector.extract_strided_slice %38 {offsets = [16, 0], sizes = [8, 1], strides = [1, 1]} : vector<32x1xf32> to vector<8x1xf32>
    %42 = vector.extract_strided_slice %38 {offsets = [24, 0], sizes = [8, 1], strides = [1, 1]} : vector<32x1xf32> to vector<8x1xf32>
    %cst_22 = arith.constant 7.812500e-03 : f32
    %43 = vector.broadcast %cst_22 : f32 to vector<8x1xf32>
    %44 = arith.mulf %42, %43 : vector<8x1xf32>
    %cst_23 = arith.constant 2.44140625E-4 : f32
    %45 = vector.broadcast %cst_23 : f32 to vector<8x1xf32>
    %46 = arith.mulf %42, %45 : vector<8x1xf32>
    %cst_24 = arith.constant 1.000000e+00 : f32
    %47 = vector.broadcast %cst_24 : f32 to vector<8x1xf32>
    %48 = arith.addf %47, %39 : vector<8x1xf32>
    %49 = arith.mulf %48, %41 : vector<8x1xf32>
    %cst_25 = arith.constant 1.000000e+00 : f32
    %50 = vector.broadcast %cst_25 : f32 to vector<8x1xf32>
    %51 = arith.addf %50, %40 : vector<8x1xf32>
    %52 = arith.mulf %51, %46 : vector<8x1xf32>
    %53 = arith.addf %49, %52 : vector<8x1xf32>
    %cst_26 = arith.constant 2.500000e-01 : f32
    %54 = vector.broadcast %cst_26 : f32 to vector<8x1xf32>
    %55 = arith.mulf %53, %54 : vector<8x1xf32>
    %56 = math.sqrt %55 : vector<8x1xf32>
    %57 = arith.negf %56 : vector<8x1xf32>
    %58 = math.exp %57 : vector<8x1xf32>
    %cst_27 = arith.constant 1.000000e+00 : f32
    %59 = vector.broadcast %cst_27 : f32 to vector<8x1xf32>
    %60 = arith.addf %59, %58 : vector<8x1xf32>
    %61 = arith.divf %59, %60 : vector<8x1xf32>
    %cst_28 = arith.constant 1.000000e-01 : f32
    %62 = vector.broadcast %cst_28 : f32 to vector<8x1xf32>
    %63 = arith.mulf %62, %61 : vector<8x1xf32>
    %cst_29 = arith.constant 0.899999976 : f32
    %64 = vector.broadcast %cst_29 : f32 to vector<8x128xf32>
    %65 = arith.mulf %64, %16 : vector<8x128xf32>
    %cst_30 = arith.constant 1.000000e+00 : f32
    %66 = vector.broadcast %cst_30 : f32 to vector<8x1xf32>
    %67 = arith.addf %66, %39 : vector<8x1xf32>
    %68 = arith.mulf %63, %67 : vector<8x1xf32>
    %69 = vector.broadcast %68 : vector<8x1xf32> to vector<8x128xf32>
    %70 = arith.mulf %69, %31 : vector<8x128xf32>
    %71 = arith.subf %65, %70 : vector<8x128xf32>
    %cst_31 = arith.constant 0.000000e+00 : f32
    %72 = vector.broadcast %cst_31 : f32 to vector<8x128xf32>
    %73 = arith.maximumf %71, %72 : vector<8x128xf32>
    %74 = arith.mulf %73, %18 : vector<8x128xf32>
    %cst_32 = arith.constant dense<0.000000e+00> : vector<8xf32>
    %75 = vector.multi_reduction <add>, %74, %cst_32 [1] : vector<8x128xf32> to vector<8xf32>
    %76 = vector.shape_cast %75 : vector<8xf32> to vector<8x1xf32>
    %cst_33 = arith.constant dense<0.000000e+00> : vector<8x128xf32>
    %77 = tpu.matmul %73, %12, %cst_33 {dimension_numbers = #tpu.dot_dimension_numbers<[1], [0], [0], [1], [0, 0, 1, 1], [], []>} : vector<8x128xf32>, vector<128x128xf32>, vector<8x128xf32> -> vector<8x128xf32>
    %78 = vector.broadcast %13 : vector<1x128xf32> to vector<8x128xf32>
    %79 = arith.addf %77, %78 : vector<8x128xf32>
    %cst_34 = arith.constant 0.899999976 : f32
    %80 = vector.broadcast %cst_34 : f32 to vector<8x128xf32>
    %81 = arith.mulf %80, %79 : vector<8x128xf32>
    %cst_35 = arith.constant 1.000000e+00 : f32
    %82 = vector.broadcast %cst_35 : f32 to vector<8x1xf32>
    %83 = arith.addf %82, %76 : vector<8x1xf32>
    %84 = arith.mulf %63, %83 : vector<8x1xf32>
    %85 = vector.broadcast %84 : vector<8x1xf32> to vector<8x128xf32>
    %86 = arith.mulf %85, %24 : vector<8x128xf32>
    %87 = arith.subf %81, %86 : vector<8x128xf32>
    %c0_36 = arith.constant 0 : index
    %c0_37 = arith.constant 0 : index
    %88 = vector.load %arg5[%c0_36, %c0_37] : memref<1x128xf32, #tpu.memory_space<vmem>>, vector<1x128xf32>
    %89 = vector.broadcast %88 : vector<1x128xf32> to vector<8x128xf32>
    %90 = arith.addf %87, %89 : vector<8x128xf32>
    %c0_38 = arith.constant 0 : index
    %c0_39 = arith.constant 0 : index
    %c0_40 = arith.constant 0 : index
    %91 = vector.load %arg2[%c0_38, %c0_39, %c0_40] : memref<8x8x256xf32, #tpu.memory_space<vmem>>, vector<8x8x256xf32>
    %92 = vector.shape_cast %5 : vector<8x256xf32> to vector<8x1x256xf32>
    %93 = vector.broadcast %92 : vector<8x1x256xf32> to vector<8x8x256xf32>
    %94 = arith.mulf %93, %91 : vector<8x8x256xf32>
    %cst_41 = arith.constant dense<0.000000e+00> : vector<8x8xf32>
    %95 = vector.multi_reduction <add>, %94, %cst_41 [2] : vector<8x8x256xf32> to vector<8x8xf32>
    %cst_42 = arith.constant dense<0xFF800000> : vector<8xf32>
    %96 = vector.multi_reduction <maximumf>, %95, %cst_42 [1] : vector<8x8xf32> to vector<8xf32>
    %97 = vector.shape_cast %96 : vector<8xf32> to vector<8x1xf32>
    %98 = vector.broadcast %97 : vector<8x1xf32> to vector<8x8xf32>
    %99 = arith.subf %95, %98 : vector<8x8xf32>
    %100 = math.exp %99 : vector<8x8xf32>
    %cst_43 = arith.constant dense<0.000000e+00> : vector<8xf32>
    %101 = vector.multi_reduction <add>, %100, %cst_43 [1] : vector<8x8xf32> to vector<8xf32>
    %102 = vector.shape_cast %101 : vector<8xf32> to vector<8x1xf32>
    %103 = tpu.reciprocal %102 {approx = true} : vector<8x1xf32> -> vector<8x1xf32>
    %104 = vector.broadcast %103 : vector<8x1xf32> to vector<8x8xf32>
    %105 = arith.mulf %100, %104 : vector<8x8xf32>
    %106 = vector.shape_cast %105 : vector<8x8xf32> to vector<8x8x1xf32>
    %107 = vector.broadcast %106 : vector<8x8x1xf32> to vector<8x8x256xf32>
    %108 = arith.mulf %107, %91 : vector<8x8x256xf32>
    %cst_44 = arith.constant dense<0.000000e+00> : vector<8x256xf32>
    %109 = vector.multi_reduction <add>, %108, %cst_44 [1] : vector<8x8x256xf32> to vector<8x256xf32>
    %c0_45 = arith.constant 0 : index
    %c0_46 = arith.constant 0 : index
    %110 = vector.load %arg11[%c0_45, %c0_46] : memref<256x128xf32, #tpu.memory_space<vmem>>, vector<256x128xf32>
    %cst_47 = arith.constant dense<0.000000e+00> : vector<8x128xf32>
    %111 = tpu.matmul %109, %110, %cst_47 {dimension_numbers = #tpu.dot_dimension_numbers<[1], [0], [0], [1], [0, 0, 1, 1], [], []>} : vector<8x256xf32>, vector<256x128xf32>, vector<8x128xf32> -> vector<8x128xf32>
    %c0_48 = arith.constant 0 : index
    %c0_49 = arith.constant 0 : index
    %112 = vector.load %arg12[%c0_48, %c0_49] : memref<1x128xf32, #tpu.memory_space<vmem>>, vector<1x128xf32>
    %113 = vector.broadcast %112 : vector<1x128xf32> to vector<8x128xf32>
    %114 = arith.addf %111, %113 : vector<8x128xf32>
    %c0_50 = arith.constant 0 : index
    %c0_51 = arith.constant 0 : index
    %c0_52 = arith.constant 0 : index
    %115 = vector.load %arg3[%c0_50, %c0_51, %c0_52] : memref<8x4x256xf32, #tpu.memory_space<vmem>>, vector<8x4x256xf32>
    %cst_53 = arith.constant dense<0.000000e+00> : vector<8x256xf32>
    %116 = vector.multi_reduction <add>, %115, %cst_53 [1] : vector<8x4x256xf32> to vector<8x256xf32>
    %cst_54 = arith.constant 4.000000e+00 : f32
    %117 = vector.broadcast %cst_54 : f32 to vector<8x256xf32>
    %118 = arith.divf %116, %117 : vector<8x256xf32>
    %c0_55 = arith.constant 0 : index
    %c0_56 = arith.constant 0 : index
    %119 = vector.load %arg16[%c0_55, %c0_56] : memref<256x128xf32, #tpu.memory_space<vmem>>, vector<256x128xf32>
    %cst_57 = arith.constant dense<0.000000e+00> : vector<8x128xf32>
    %120 = tpu.matmul %118, %119, %cst_57 {dimension_numbers = #tpu.dot_dimension_numbers<[1], [0], [0], [1], [0, 0, 1, 1], [], []>} : vector<8x256xf32>, vector<256x128xf32>, vector<8x128xf32> -> vector<8x128xf32>
    %c0_58 = arith.constant 0 : index
    %c0_59 = arith.constant 0 : index
    %121 = vector.load %arg17[%c0_58, %c0_59] : memref<1x128xf32, #tpu.memory_space<vmem>>, vector<1x128xf32>
    %122 = vector.broadcast %121 : vector<1x128xf32> to vector<8x128xf32>
    %123 = arith.addf %120, %122 : vector<8x128xf32>
    %c0_60 = arith.constant 0 : index
    %c0_61 = arith.constant 0 : index
    %124 = vector.load %arg13[%c0_60, %c0_61] : memref<1x128xf32, #tpu.memory_space<vmem>>, vector<1x128xf32>
    %125 = vector.broadcast %124 : vector<1x128xf32> to vector<8x128xf32>
    %126 = arith.mulf %90, %125 : vector<8x128xf32>
    %c0_62 = arith.constant 0 : index
    %c0_63 = arith.constant 0 : index
    %127 = vector.load %arg14[%c0_62, %c0_63] : memref<1x128xf32, #tpu.memory_space<vmem>>, vector<1x128xf32>
    %128 = vector.broadcast %127 : vector<1x128xf32> to vector<8x128xf32>
    %129 = arith.mulf %90, %128 : vector<8x128xf32>
    %c0_64 = arith.constant 0 : index
    %c0_65 = arith.constant 0 : index
    %130 = vector.load %arg18[%c0_64, %c0_65] : memref<1x128xf32, #tpu.memory_space<vmem>>, vector<1x128xf32>
    %131 = vector.broadcast %130 : vector<1x128xf32> to vector<8x128xf32>
    %132 = arith.mulf %123, %131 : vector<8x128xf32>
    %133 = arith.mulf %9, %90 : vector<8x128xf32>
    %134 = arith.mulf %9, %9 : vector<8x128xf32>
    %135 = arith.mulf %90, %90 : vector<8x128xf32>
    %136 = arith.mulf %9, %114 : vector<8x128xf32>
    %137 = arith.mulf %114, %114 : vector<8x128xf32>
    %138 = tpu.concatenate %126, %129, %132, %133, %134, %135, %136, %137 in 0 : vector<8x128xf32>, vector<8x128xf32>, vector<8x128xf32>, vector<8x128xf32>, vector<8x128xf32>, vector<8x128xf32>, vector<8x128xf32>, vector<8x128xf32> -> vector<64x128xf32>
    %cst_66 = arith.constant dense<0.000000e+00> : vector<64xf32>
    %139 = vector.multi_reduction <add>, %138, %cst_66 [1] : vector<64x128xf32> to vector<64xf32>
    %140 = vector.shape_cast %139 : vector<64xf32> to vector<64x1xf32>
    %141 = vector.extract_strided_slice %140 {offsets = [0, 0], sizes = [8, 1], strides = [1, 1]} : vector<64x1xf32> to vector<8x1xf32>
    %142 = vector.extract_strided_slice %140 {offsets = [8, 0], sizes = [8, 1], strides = [1, 1]} : vector<64x1xf32> to vector<8x1xf32>
    %143 = vector.extract_strided_slice %140 {offsets = [16, 0], sizes = [8, 1], strides = [1, 1]} : vector<64x1xf32> to vector<8x1xf32>
    %144 = vector.extract_strided_slice %140 {offsets = [24, 0], sizes = [8, 1], strides = [1, 1]} : vector<64x1xf32> to vector<8x1xf32>
    %145 = vector.extract_strided_slice %140 {offsets = [32, 0], sizes = [8, 1], strides = [1, 1]} : vector<64x1xf32> to vector<8x1xf32>
    %146 = vector.extract_strided_slice %140 {offsets = [40, 0], sizes = [8, 1], strides = [1, 1]} : vector<64x1xf32> to vector<8x1xf32>
    %147 = vector.extract_strided_slice %140 {offsets = [48, 0], sizes = [8, 1], strides = [1, 1]} : vector<64x1xf32> to vector<8x1xf32>
    %148 = vector.extract_strided_slice %140 {offsets = [56, 0], sizes = [8, 1], strides = [1, 1]} : vector<64x1xf32> to vector<8x1xf32>
    %c0_67 = arith.constant 0 : index
    %c0_68 = arith.constant 0 : index
    %149 = memref.load %arg19[%c0_67, %c0_68] : memref<1x3xf32, #tpu.memory_space<smem>>
    %c0_69 = arith.constant 0 : index
    %c1 = arith.constant 1 : index
    %150 = memref.load %arg19[%c0_69, %c1] : memref<1x3xf32, #tpu.memory_space<smem>>
    %c0_70 = arith.constant 0 : index
    %c2 = arith.constant 2 : index
    %151 = memref.load %arg19[%c0_70, %c2] : memref<1x3xf32, #tpu.memory_space<smem>>
    %152 = vector.broadcast %149 : f32 to vector<8x1xf32>
    %153 = arith.addf %141, %152 : vector<8x1xf32>
    %154 = arith.negf %153 : vector<8x1xf32>
    %155 = math.exp %154 : vector<8x1xf32>
    %cst_71 = arith.constant 1.000000e+00 : f32
    %156 = vector.broadcast %cst_71 : f32 to vector<8x1xf32>
    %157 = arith.addf %156, %155 : vector<8x1xf32>
    %158 = arith.divf %156, %157 : vector<8x1xf32>
    %159 = vector.broadcast %150 : f32 to vector<8x1xf32>
    %160 = arith.addf %142, %159 : vector<8x1xf32>
    %161 = arith.negf %160 : vector<8x1xf32>
    %162 = math.exp %161 : vector<8x1xf32>
    %cst_72 = arith.constant 1.000000e+00 : f32
    %163 = vector.broadcast %cst_72 : f32 to vector<8x1xf32>
    %164 = arith.addf %163, %162 : vector<8x1xf32>
    %165 = arith.divf %163, %164 : vector<8x1xf32>
    %166 = vector.broadcast %151 : f32 to vector<8x1xf32>
    %167 = arith.addf %143, %166 : vector<8x1xf32>
    %168 = arith.negf %167 : vector<8x1xf32>
    %169 = math.exp %168 : vector<8x1xf32>
    %cst_73 = arith.constant 1.000000e+00 : f32
    %170 = vector.broadcast %cst_73 : f32 to vector<8x1xf32>
    %171 = arith.addf %170, %169 : vector<8x1xf32>
    %172 = arith.divf %170, %171 : vector<8x1xf32>
    %cst_74 = arith.constant 1.000000e-16 : f32
    %173 = vector.broadcast %cst_74 : f32 to vector<8x1xf32>
    %174 = arith.maximumf %145, %173 : vector<8x1xf32>
    %cst_75 = arith.constant 1.000000e-16 : f32
    %175 = vector.broadcast %cst_75 : f32 to vector<8x1xf32>
    %176 = arith.maximumf %146, %175 : vector<8x1xf32>
    %177 = arith.mulf %174, %176 : vector<8x1xf32>
    %178 = math.rsqrt %177 : vector<8x1xf32>
    %179 = arith.mulf %144, %178 : vector<8x1xf32>
    %cst_76 = arith.constant 1.000000e+00 : f32
    %180 = vector.broadcast %cst_76 : f32 to vector<8x1xf32>
    %181 = arith.addf %179, %180 : vector<8x1xf32>
    %cst_77 = arith.constant 5.000000e-01 : f32
    %182 = vector.broadcast %cst_77 : f32 to vector<8x1xf32>
    %183 = arith.mulf %181, %182 : vector<8x1xf32>
    %cst_78 = arith.constant 1.000000e-16 : f32
    %184 = vector.broadcast %cst_78 : f32 to vector<8x1xf32>
    %185 = arith.maximumf %148, %184 : vector<8x1xf32>
    %186 = arith.mulf %174, %185 : vector<8x1xf32>
    %187 = math.rsqrt %186 : vector<8x1xf32>
    %188 = arith.mulf %147, %187 : vector<8x1xf32>
    %cst_79 = arith.constant 1.000000e+00 : f32
    %189 = vector.broadcast %cst_79 : f32 to vector<8x1xf32>
    %190 = arith.addf %188, %189 : vector<8x1xf32>
    %cst_80 = arith.constant 5.000000e-01 : f32
    %191 = vector.broadcast %cst_80 : f32 to vector<8x1xf32>
    %192 = arith.mulf %190, %191 : vector<8x1xf32>
    %193 = arith.addf %183, %192 : vector<8x1xf32>
    %cst_81 = arith.constant 9.99999993E-9 : f32
    %194 = vector.broadcast %cst_81 : f32 to vector<8x1xf32>
    %195 = arith.addf %193, %194 : vector<8x1xf32>
    %196 = arith.divf %183, %195 : vector<8x1xf32>
    %197 = arith.subf %165, %196 : vector<8x1xf32>
    %198 = arith.mulf %197, %197 : vector<8x1xf32>
    %199 = vector.broadcast %158 : vector<8x1xf32> to vector<8x128xf32>
    %200 = arith.mulf %199, %90 : vector<8x128xf32>
    %cst_82 = arith.constant 1.000000e+00 : f32
    %201 = vector.broadcast %cst_82 : f32 to vector<8x1xf32>
    %202 = arith.subf %201, %158 : vector<8x1xf32>
    %203 = vector.broadcast %202 : vector<8x1xf32> to vector<8x128xf32>
    %204 = arith.mulf %203, %114 : vector<8x128xf32>
    %205 = arith.addf %200, %204 : vector<8x128xf32>
    %206 = vector.broadcast %172 : vector<8x1xf32> to vector<8x128xf32>
    %207 = arith.mulf %206, %123 : vector<8x128xf32>
    %cst_83 = arith.constant 1.000000e+00 : f32
    %208 = vector.broadcast %cst_83 : f32 to vector<8x1xf32>
    %209 = arith.subf %208, %172 : vector<8x1xf32>
    %210 = vector.broadcast %209 : vector<8x1xf32> to vector<8x128xf32>
    %211 = arith.mulf %210, %205 : vector<8x128xf32>
    %212 = arith.addf %207, %211 : vector<8x128xf32>
    %c0_84 = arith.constant 0 : index
    %c0_85 = arith.constant 0 : index
    %213 = vector.load %arg20[%c0_84, %c0_85] : memref<8x128xf32, #tpu.memory_space<vmem>>, vector<8x128xf32>
    tpu.vector_store %arg20[%c0_84, %c0_85], %212 {strides = array<i32>} : memref<8x128xf32, #tpu.memory_space<vmem>>, vector<8x128xf32>,
    %214 = tpu.iota {dimensions = array<i32: 1>} : vector<1x128xi32>
    %c0_i32 = arith.constant 0 : i32
    %215 = vector.broadcast %c0_i32 : i32 to vector<1x128xi32>
    %216 = arith.cmpi eq, %214, %215 : vector<1x128xi32>
    %cst_86 = arith.constant 0.000000e+00 : f32
    %217 = vector.shape_cast %216 : vector<1x128xi1> to vector<1x128xi1>
    %218 = vector.broadcast %217 : vector<1x128xi1> to vector<8x128xi1>
    %219 = vector.shape_cast %44 : vector<8x1xf32> to vector<8x1xf32>
    %220 = vector.broadcast %219 : vector<8x1xf32> to vector<8x128xf32>
    %221 = vector.broadcast %cst_86 : f32 to vector<8x128xf32>
    %222 = arith.select %218, %220, %221 : vector<8x128xi1>, vector<8x128xf32>
    %c1_i32 = arith.constant 1 : i32
    %223 = vector.broadcast %c1_i32 : i32 to vector<1x128xi32>
    %224 = arith.cmpi eq, %214, %223 : vector<1x128xi32>
    %225 = vector.shape_cast %224 : vector<1x128xi1> to vector<1x128xi1>
    %226 = vector.broadcast %225 : vector<1x128xi1> to vector<8x128xi1>
    %227 = vector.shape_cast %158 : vector<8x1xf32> to vector<8x1xf32>
    %228 = vector.broadcast %227 : vector<8x1xf32> to vector<8x128xf32>
    %229 = arith.select %226, %228, %222 : vector<8x128xi1>, vector<8x128xf32>
    %c2_i32 = arith.constant 2 : i32
    %230 = vector.broadcast %c2_i32 : i32 to vector<1x128xi32>
    %231 = arith.cmpi eq, %214, %230 : vector<1x128xi32>
    %232 = vector.shape_cast %231 : vector<1x128xi1> to vector<1x128xi1>
    %233 = vector.broadcast %232 : vector<1x128xi1> to vector<8x128xi1>
    %234 = vector.shape_cast %165 : vector<8x1xf32> to vector<8x1xf32>
    %235 = vector.broadcast %234 : vector<8x1xf32> to vector<8x128xf32>
    %236 = arith.select %233, %235, %229 : vector<8x128xi1>, vector<8x128xf32>
    %c3_i32 = arith.constant 3 : i32
    %237 = vector.broadcast %c3_i32 : i32 to vector<1x128xi32>
    %238 = arith.cmpi eq, %214, %237 : vector<1x128xi32>
    %239 = vector.shape_cast %238 : vector<1x128xi1> to vector<1x128xi1>
    %240 = vector.broadcast %239 : vector<1x128xi1> to vector<8x128xi1>
    %241 = vector.shape_cast %198 : vector<8x1xf32> to vector<8x1xf32>
    %242 = vector.broadcast %241 : vector<8x1xf32> to vector<8x128xf32>
    %243 = arith.select %240, %242, %236 : vector<8x128xi1>, vector<8x128xf32>
    %c0_87 = arith.constant 0 : index
    %c0_88 = arith.constant 0 : index
    %244 = vector.load %arg21[%c0_87, %c0_88] : memref<8x128xf32, #tpu.memory_space<vmem>>, vector<8x128xf32>
    tpu.vector_store %arg21[%c0_87, %c0_88], %243 {strides = array<i32>} : memref<8x128xf32, #tpu.memory_space<vmem>>, vector<8x128xf32>,
    return
  }
  func.func @transform_0(%arg0: i32) -> (i32, i32) {
    %c0_i32 = arith.constant 0 : i32
    %c0_i32_0 = arith.constant 0 : i32
    return %arg0, %c0_i32 : i32, i32
  }
  func.func @transform_1(%arg0: i32) -> (i32, i32, i32) {
    %c0_i32 = arith.constant 0 : i32
    %c0_i32_0 = arith.constant 0 : i32
    %c0_i32_1 = arith.constant 0 : i32
    return %arg0, %c0_i32, %c0_i32_0 : i32, i32, i32
  }
  func.func @transform_2(%arg0: i32) -> (i32, i32, i32) {
    %c0_i32 = arith.constant 0 : i32
    %c0_i32_0 = arith.constant 0 : i32
    %c0_i32_1 = arith.constant 0 : i32
    return %arg0, %c0_i32, %c0_i32_0 : i32, i32, i32
  }
  func.func @transform_3(%arg0: i32) -> (i32, i32) {
    %c0_i32 = arith.constant 0 : i32
    %c0_i32_0 = arith.constant 0 : i32
    %c0_i32_1 = arith.constant 0 : i32
    return %c0_i32, %c0_i32_0 : i32, i32
  }
  func.func @transform_4(%arg0: i32) -> (i32, i32) {
    %c0_i32 = arith.constant 0 : i32
    %c0_i32_0 = arith.constant 0 : i32
    %c0_i32_1 = arith.constant 0 : i32
    return %c0_i32, %c0_i32_0 : i32, i32
  }
  func.func @transform_5(%arg0: i32) -> (i32, i32) {
    %c0_i32 = arith.constant 0 : i32
    %c0_i32_0 = arith.constant 0 : i32
    %c0_i32_1 = arith.constant 0 : i32
    return %c0_i32, %c0_i32_0 : i32, i32
  }
  func.func @transform_6(%arg0: i32) -> (i32, i32) {
    %c0_i32 = arith.constant 0 : i32
    %c0_i32_0 = arith.constant 0 : i32
    %c0_i32_1 = arith.constant 0 : i32
    return %c0_i32, %c0_i32_0 : i32, i32
  }
  func.func @transform_7(%arg0: i32) -> (i32, i32) {
    %c0_i32 = arith.constant 0 : i32
    %c0_i32_0 = arith.constant 0 : i32
    %c0_i32_1 = arith.constant 0 : i32
    return %c0_i32, %c0_i32_0 : i32, i32
  }
  func.func @transform_8(%arg0: i32) -> (i32, i32) {
    %c0_i32 = arith.constant 0 : i32
    %c0_i32_0 = arith.constant 0 : i32
    %c0_i32_1 = arith.constant 0 : i32
    return %c0_i32, %c0_i32_0 : i32, i32
  }
  func.func @transform_9(%arg0: i32) -> (i32, i32) {
    %c0_i32 = arith.constant 0 : i32
    %c0_i32_0 = arith.constant 0 : i32
    %c0_i32_1 = arith.constant 0 : i32
    return %c0_i32, %c0_i32_0 : i32, i32
  }
  func.func @transform_10(%arg0: i32) -> (i32, i32) {
    %c0_i32 = arith.constant 0 : i32
    %c0_i32_0 = arith.constant 0 : i32
    %c0_i32_1 = arith.constant 0 : i32
    return %c0_i32, %c0_i32_0 : i32, i32
  }
  func.func @transform_11(%arg0: i32) -> (i32, i32) {
    %c0_i32 = arith.constant 0 : i32
    %c0_i32_0 = arith.constant 0 : i32
    %c0_i32_1 = arith.constant 0 : i32
    return %c0_i32, %c0_i32_0 : i32, i32
  }
  func.func @transform_12(%arg0: i32) -> (i32, i32) {
    %c0_i32 = arith.constant 0 : i32
    %c0_i32_0 = arith.constant 0 : i32
    %c0_i32_1 = arith.constant 0 : i32
    return %c0_i32, %c0_i32_0 : i32, i32
  }
  func.func @transform_13(%arg0: i32) -> (i32, i32) {
    %c0_i32 = arith.constant 0 : i32
    %c0_i32_0 = arith.constant 0 : i32
    %c0_i32_1 = arith.constant 0 : i32
    return %c0_i32, %c0_i32_0 : i32, i32
  }
  func.func @transform_14(%arg0: i32) -> (i32, i32) {
    %c0_i32 = arith.constant 0 : i32
    %c0_i32_0 = arith.constant 0 : i32
    %c0_i32_1 = arith.constant 0 : i32
    return %c0_i32, %c0_i32_0 : i32, i32
  }
  func.func @transform_15(%arg0: i32) -> (i32, i32) {
    %c0_i32 = arith.constant 0 : i32
    %c0_i32_0 = arith.constant 0 : i32
    %c0_i32_1 = arith.constant 0 : i32
    return %c0_i32, %c0_i32_0 : i32, i32
  }
  func.func @transform_16(%arg0: i32) -> (i32, i32) {
    %c0_i32 = arith.constant 0 : i32
    %c0_i32_0 = arith.constant 0 : i32
    %c0_i32_1 = arith.constant 0 : i32
    return %c0_i32, %c0_i32_0 : i32, i32
  }
  func.func @transform_17(%arg0: i32) -> (i32, i32) {
    %c0_i32 = arith.constant 0 : i32
    %c0_i32_0 = arith.constant 0 : i32
    %c0_i32_1 = arith.constant 0 : i32
    return %c0_i32, %c0_i32_0 : i32, i32
  }
  func.func @transform_18(%arg0: i32) -> (i32, i32) {
    %c0_i32 = arith.constant 0 : i32
    %c0_i32_0 = arith.constant 0 : i32
    %c0_i32_1 = arith.constant 0 : i32
    return %c0_i32, %c0_i32_0 : i32, i32
  }
  func.func @transform_19(%arg0: i32) -> (i32, i32) {
    %c0_i32 = arith.constant 0 : i32
    %c0_i32_0 = arith.constant 0 : i32
    return %arg0, %c0_i32 : i32, i32
  }
  func.func @transform_20(%arg0: i32) -> (i32, i32) {
    %c0_i32 = arith.constant 0 : i32
    %c0_i32_0 = arith.constant 0 : i32
    return %arg0, %c0_i32 : i32, i32
  }
}

</mosaic_0001>

<bundles_post_ra>
// kernel: tpu_custom_call.1
= control target key start
LH: loop header
LB: loop body
LE: loop exit
PB: predicated region body
PF: predicated region fallthrough
CT: control target
= control target key end

     0   :  { %s5461_s0 = inlined_call_operand.hbm [shape: f32[16,256], index: 0, kind: input, shape index: {}]   ;;  %s5462_s1 = inlined_call_operand.hbm [shape: f32[16,8,256], index: 1, kind: input, shape index: {}]   ;;  %s5463_s2 = inlined_call_operand.hbm [shape: f32[16,4,256], index: 2, kind: input, shape index: {}]   ;;  %s5464_s3 = inlined_call_operand.hbm [shape: f32[256,640], index: 3, kind: input, shape index: {}]   ;;  %s5465_s4 = inlined_call_operand.vmem [shape: f32[1,128], index: 4, kind: input, shape index: {}]   ;;  %s5466_s5 = inlined_call_operand.hbm [shape: f32[128,128], index: 5, kind: input, shape index: {}]   ;;  %s5467_s6 = inlined_call_operand.vmem [shape: f32[1,128], index: 6, kind: input, shape index: {}]   ;;  %s5468_s7 = inlined_call_operand.hbm [shape: f32[128,128], index: 7, kind: input, shape index: {}]   ;;  %s5469_s8 = inlined_call_operand.hbm [shape: f32[128,128], index: 8, kind: input, shape index: {}]   ;;  %s5470_s9 = inlined_call_operand.vmem [shape: f32[1,128], index: 9, kind: input, shape index: {}]   ;;  %s5471_s10 = inlined_call_operand.hbm [shape: f32[256,128], index: 10, kind: input, shape index: {}]   ;;  %s5472_s11 = inlined_call_operand.vmem [shape: f32[1,128], index: 11, kind: input, shape index: {}]   ;;  %s5473_s12 = inlined_call_operand.vmem [shape: f32[1,128], index: 12, kind: input, shape index: {}]   ;;  %s5474_s13 = inlined_call_operand.vmem [shape: f32[1,128], index: 13, kind: input, shape index: {}]   ;;  %s5475_s14 = inlined_call_operand.vmem [shape: f32[1,128], index: 14, kind: input, shape index: {}]   ;;  %s5476_s15 = inlined_call_operand.hbm [shape: f32[256,128], index: 15, kind: input, shape index: {}]   ;;  %s5477_s16 = inlined_call_operand.vmem [shape: f32[1,128], index: 16, kind: input, shape index: {}]   ;;  %s5478_s17 = inlined_call_operand.vmem [shape: f32[1,128], index: 17, kind: input, shape index: {}]   ;;  %s5479_s18 = inlined_call_operand.vmem [shape: f32[1,3], index: 18, kind: input, shape index: {}]   ;;  %s5480_s19 = inlined_call_operand.hbm [shape: f32[16,128], index: 19, kind: output, shape index: {0}]   ;;  %s5481_s20 = inlined_call_operand.hbm [shape: f32[16,128], index: 20, kind: output, shape index: {1}]  }
   0x1   :  { %5516 = sst [smem:[#allocation37_spill]] %s5461_s0 }
   0x2   :  { %5517 = sst [smem:[#allocation38_spill]] %s5462_s1 }
   0x3   :  { %5518 = sst [smem:[#allocation39_spill]] %s5463_s2 }
   0x4   :  { %5519 = sst [smem:[#allocation40_spill]] %s5464_s3 }
   0x5   :  { %5520 = sst [smem:[#allocation41_spill]] %s5465_s4 }
   0x6   :  { %5521 = sst [smem:[#allocation42_spill]] %s5468_s7 }
   0x7   :  { %5522 = sst [smem:[#allocation43_spill]] %s5470_s9 }
   0x8   :  { %5523 = sst [smem:[#allocation44_spill]] %s5471_s10 }
   0x9   :  { %5524 = sst [smem:[#allocation45_spill]] %s5472_s11 }
   0xa   :  { %5525 = sst [smem:[#allocation46_spill]] %s5473_s12 }
   0xb   :  { %5526 = sst [smem:[#allocation47_spill]] %s5474_s13 }
   0xc   :  { %5527 = sst [smem:[#allocation48_spill]] %s5475_s14 }
   0xd   :  { %5528 = sst [smem:[#allocation49_spill]] %s5477_s16 }
   0xe   :  { %5529 = sst [smem:[#allocation50_spill]] %s5478_s17 }
   0xf   :  { %5530 = sst [smem:[#allocation51_spill]] %s5480_s19 }
  0x10   :  { %5531 = sst [smem:[#allocation52_spill]] %s5481_s20 }
  0x11   :  { %26 = vsyncpa [#allocation3], 0 }
  0x12   :  { %28 = vsyncpa [#allocation3 + $0x1], 0 }
  0x13   :  { %29 = vsyncpa [#allocation7], 0 }
  0x14   :  { %31 = vsyncpa [#allocation7 + $0x1], 0 }
  0x15   :  { %32 = vsyncpa [#allocation10], 0 }
  0x16   :  { %33 = vsyncpa [#allocation13], 0 }
  0x17   :  { %34 = vsyncpa [#allocation16], 0 }
  0x18   :  { %35 = vsyncpa [#allocation5], 0 }
  0x19   :  { %36 = vsyncpa [#allocation4], 0 }
  0x1a   :  { %38 = vsyncpa [#allocation4 + $0x1], 0 }
  0x1b   :  { %39 = vsyncpa [#allocation21], 0 }
  0x1c   :  { %41 = vsyncpa [#allocation21 + $0x1], 0  ;;  %s4442_s1 = smov 0   ;;  %s4444_s22 = smov 0  }
  0x1d   :  { %s4446_s23 = smov 0   ;;  %s4448_s24 = smov 0  }
  0x1e LB: > { %5532 = sst [smem:[#allocation30_spill]] %s4300_s1  ;;  %s4314_s2 = smov [#allocation9]   ;;  %s4312_s24 = sphi %s4448_s24, %s5591_s24   ;;  %s4308_s23 = sphi %s4446_s23, %s5593_s23   ;;  %s4304_s22 = sphi %s4444_s22, %s5595_s22   ;;  %s4300_s1 = sphi %s4442_s1, %s5594_s1  }
  0x1f   : > { %5533 = sst [smem:[#allocation31_spill]] %s4308_s23  ;;  %s530_s25 = sshll.u32 %s4314_s2, 4  ;;  %s4468_s25 = int_to_ptr.vmem [resolvable:$true] %s530_s25 }
  0x20   : > { %s4463_s3 = sadd.s32 4294967295, %s4312_s24   ;;  %p3024_p0 = scmp.ge.s32.totalorder %s4312_s24, 1 }
  0x21   : > { %p5488_p1 = scmp.eq.s32.totalorder %s4463_s3, 0  ;;  %p518_p2 = scmp.lt.s32.totalorder %s4312_s24, 3 }
  0x22   : > { %s4315_s28 = smov [#allocation12]   ;;  %s4316_s29 = smov [#allocation15]  }
  0x23   : > { %p4470_p3 = pnand %p3024_p0, %p518_p2  ;;  %s562_s4 = sshll.u32 %s4315_s28, 4  ;;  %s4483_s4 = int_to_ptr.vmem [resolvable:$true] %s562_s4 }
  0x24   : > { %s4485_s30 = sshll.u32 %s4316_s29, 4  ;;  %s5536_s2 = sld [smem:[#allocation40_spill]]  ;;  %s592_s30 = int_to_ptr.vmem [resolvable:$true] %s4485_s30 }
  0x25   : > { %s5534_s26 = scalar_select %p4470_p3, 1, 0 }
  0x26   : > { %p3755_p5 = pneg %p4470_p3 }
  0x28   : > { %p4479_p6 = pnand %p3755_p5, %p5488_p1 }
  0x2a   : > { %s5535_s27 = scalar_select %p4479_p6, 1, 0 }
  0x2b   : > { %s3921_s19 = scalar_lea.hbm %s5536_s2, 20480  ;;  %p4495_p8 = pneg %p4479_p6 }
  0x2c   : > { %p3922_p7 = scmp.ne.s32.totalorder %s5536_s2, %s3921_s19  ;;  %p3928_p11 = scmp.lt.u32.totalorder %s3921_s19, %s5536_s2 }
  0x2d   : > { %s5537_s16 = scalar_select %p4495_p8, 1, 0 }
  0x2e   : > { %p3924_p9 = pnand %p4495_p8, %p3922_p7 }
  0x30   : > { %p3925_p10 = pneg %p3924_p9 }
  0x32   : > { %p3930_p12 = pnand %p3928_p11, %p3925_p10 }
  0x34   : > { %3933 = shalt.err (!%p3930_p12)
}
  0x35   : > { %s3934_s17 = scalar_lea.vmem %s4468_s25, 20480  ;;  %p3942_p5 = scmp.lt.s32.totalorder %s4468_s25, %s4468_s25 }
  0x36   : > { %p3935_p13 = scmp.ne.s32.totalorder %s4468_s25, %s3934_s17  ;;  %p3943_p4 = scmp.lt.s32.totalorder %s3934_s17, %s3934_s17 }
  0x38   : > { %p3937_p0 = pnand %p3935_p13, %p4495_p8  ;;  %p3944_p7 = por %p3943_p4, %p3942_p5 }
  0x3a   : > { %p3938_p2 = pneg %p3937_p0 }
  0x3c   : > { %p3945_p9 = pnand %p3944_p7, %p3938_p2 }
  0x3e   : > { %3948 = shalt.err (!%p3945_p9)
}
  0x3f   : > { %s4317_s20 = smov 640   ;;  %s4318_s19 = smov 40  }
  0x40   : > { %3758 = dma.hbm_to_vmem [thread:$0]  (!%p4479_p6), %s5536_s2, 20480, %s4468_s25, [#allocation10], %s4317_s20, %s4317_s20, %s4318_s19  }
  0x41   : > { %s5538_s7 = sld [smem:[#allocation42_spill]] }
  0x47   : > { %s3949_s13 = scalar_lea.hbm %s5538_s7, 2048 }
  0x48   : > { %p3950_p4 = scmp.ne.s32.totalorder %s5538_s7, %s3949_s13  ;;  %p3956_p12 = scmp.lt.u32.totalorder %s3949_s13, %s5538_s7 }
  0x4a   : > { %p3952_p10 = pnand %p3950_p4, %p4495_p8 }
  0x4c   : > { %p3953_p11 = pneg %p3952_p10 }
  0x4e   : > { %p3958_p13 = pnand %p3956_p12, %p3953_p11 }
  0x50   : > { %3961 = shalt.err (!%p3958_p13)
}
  0x51   : > { %s3962_s25 = scalar_lea.vmem %s4483_s4, 2048  ;;  %p3970_p7 = scmp.lt.s32.totalorder %s4483_s4, %s4483_s4 }
  0x52   : > { %p3963_p0 = scmp.ne.s32.totalorder %s4483_s4, %s3962_s25  ;;  %p3971_p9 = scmp.lt.s32.totalorder %s3962_s25, %s3962_s25 }
  0x54   : > { %p3965_p2 = pnand %p3963_p0, %p4495_p8  ;;  %p3972_p4 = por %p3971_p9, %p3970_p7 }
  0x56   : > { %p3966_p5 = pneg %p3965_p2 }
  0x58   : > { %p3973_p10 = pnand %p3972_p4, %p3966_p5 }
  0x5a   : > { %3976 = shalt.err (!%p3973_p10)
}
  0x5b   : > { %s5490_s11 = smov 128   ;;  %s5492_s12 = smov 8  }
  0x5c   : > { %3764 = dma.hbm_to_vmem [thread:$0]  (!%p4479_p6), %s5538_s7, 2048, %s4483_s4, [#allocation13], %s5490_s11, %s5490_s11, %s5492_s12  }
  0x5d   : > { %s5539_s10 = sld [smem:[#allocation44_spill]] }
  0x63   : > { %s3977_s0 = scalar_lea.hbm %s5539_s10, 4096 }
  0x64   : > { %p3978_p11 = scmp.ne.s32.totalorder %s5539_s10, %s3977_s0  ;;  %p3984_p0 = scmp.lt.u32.totalorder %s3977_s0, %s5539_s10 }
  0x66   : > { %p3980_p12 = pnand %p3978_p11, %p4495_p8 }
  0x68   : > { %p3981_p13 = pneg %p3980_p12 }
  0x6a   : > { %p3986_p2 = pnand %p3984_p0, %p3981_p13 }
  0x6c   : > { %3989 = shalt.err (!%p3986_p2)
}
  0x6d   : > { %s3990_s25 = scalar_lea.vmem %s592_s30, 4096  ;;  %p3998_p4 = scmp.lt.s32.totalorder %s592_s30, %s592_s30 }
  0x6e   : > { %p3991_p5 = scmp.ne.s32.totalorder %s592_s30, %s3990_s25  ;;  %p3999_p10 = scmp.lt.s32.totalorder %s3990_s25, %s3990_s25 }
  0x70   : > { %p3993_p7 = pnand %p3991_p5, %p4495_p8  ;;  %p4000_p1 = por %p3999_p10, %p3998_p4 }
  0x72   : > { %p3994_p9 = pneg %p3993_p7 }
  0x74   : > { %p4001_p3 = pnand %p4000_p1, %p3994_p9 }
  0x76   : > { %4004 = shalt.err (!%p4001_p3)
}
  0x77   : > { %3770 = dma.hbm_to_vmem [thread:$0]  (!%p4479_p6), %s5539_s10, 4096, %s592_s30, [#allocation16], %s5490_s11, %s5490_s11, %s5492_s12  }
  0x78   : > { %s3023_s14 = sadd.s32 4294967294, %s4312_s24   ;;  %s4566_s20 = sadd.s32 1, %s4312_s24  }
  0x79   : > { %5540 = sst [smem:[#allocation32_spill]] %s4566_s20  ;;  %s54_s19 = sadd.s32 1, %s4308_s23 }
  0x7a   : > { %s51_s0 = ssub.s32 %s4312_s24, %s4566_s20  ;;  %p61_p1 = scmp.ne.s32.totalorder %s4308_s23, %s4304_s22 }
  0x7b   : > { %p52_p3 = scmp.eq.s32.totalorder %s51_s0, 0  ;;  %p62_p11 = scmp.eq.s32.totalorder %s4312_s24, 0 }
  0x7c   : > { %p67_p12 = scmp.ne.s32.totalorder %s4304_s22, %s4300_s1  ;;  %p479_p13 = scmp.eq.s32.totalorder %s4463_s3, 1 }
  0x7d   : > { %s4578_s21 = scalar_select %p52_p3, %s4308_s23, %s54_s19  }
  0x7e   : > { %p63_p0 = por %p62_p11, %p61_p1  ;;  %p5542_p2 = scmp.eq.s32.totalorder %s4463_s3, 0 }
  0x7f   : > { %5541 = sst [smem:[#allocation33_spill]] %s4578_s21  ;;  %p4586_p7 = por %p479_p13, %p61_p1 }
  0x80   : > { %p4582_p5 = por %p5542_p2, %p67_p12  ;;  %p485_p9 = scmp.eq.s32.totalorder %s3023_s14, 1 }
  0x81   : > { %s5544_s28 = scalar_select %p4586_p7, 1, 0 }
  0x82   : > { %s5543_s30 = scalar_select %p4582_p5, 1, 0 }
  0x83   : > { %5545 = sst [smem:[#allocation34_spill]] %s5544_s28  ;;  %p3801_p4 = scmp.lt.s32.totalorder %s4312_s24, 2 }
  0x84   : > { %s4592_s29 = sand.u32 1, %s4308_s23   ;;  %p4594_p10 = por %p485_p9, %p67_p12 }
  0x85   : > { %s666_s25 = sand.u32 1, %s4312_s24   ;;  %p4599_p3 = pnand %p3801_p4, %p63_p0 }
  0x86   : > { %s5546_s17 = scalar_select %p4594_p10, 1, 0 }
  0x87   : > { %s5548_s4 = scalar_select %p4599_p3, 1, 0 }
  0x88   : > { %5547 = sst [smem:[#allocation35_spill]] %s5546_s17  ;;  %s3036_s13 = sshll.u32 %s4592_s29, 7 }
  0x89   : > { %s3081_s19 = sshll.u32 %s4312_s24, 11  ;;  %s5549_s12 = sld [smem:[#allocation38_spill]] }
  0x8a   : > { %s670_s2 = scalar_lea.vmem [#allocation6], %s3036_s13  ;;  %s4612_s10 = scalar_lea.sflag [#allocation7], %s666_s25 }
  0x8b   : > { %s678_s7 = sshll.u32 %s670_s2, 4  ;;  %p4618_p11 = pneg %p4599_p3  ;;  %s4610_s7 = int_to_ptr.vmem [resolvable:$true] %s678_s7 }
  0x8d   : > { %s5550_s23 = scalar_select %p4618_p11, 1, 0 }
  0x8f   : > { %s4608_s14 = scalar_lea.hbm %s5549_s12, %s3081_s19  ;;  %s4010_s13 = scalar_lea.hbm %s5549_s12, 4096 }
  0x90   : > { %s4005_s21 = scalar_lea.hbm %s4608_s14, 2048  ;;  %p4011_p0 = scmp.lt.u32.totalorder %s4608_s14, %s5549_s12 }
  0x91   : > { %p4006_p1 = scmp.ne.s32.totalorder %s4608_s14, %s4005_s21  ;;  %p4012_p2 = scmp.lt.u32.totalorder %s4010_s13, %s4005_s21 }
  0x92   : > { %p4014_p4 = scmp.lt.u32.totalorder %s4005_s21, %s4608_s14 }
  0x93   : > { %p4008_p12 = pnand %p4618_p11, %p4006_p1  ;;  %p4013_p9 = por %p4012_p2, %p4011_p0 }
  0x95   : > { %p4009_p13 = pneg %p4008_p12  ;;  %p4015_p10 = por %p4014_p4, %p4013_p9 }
  0x97   : > { %p4016_p7 = pnand %p4015_p10, %p4009_p13 }
  0x99   : > { %4019 = shalt.err (!%p4016_p7)
}
  0x9a   : > { %s4020_s25 = scalar_lea.vmem %s4610_s7, 2048  ;;  %s4321_s11 = smov [#allocation6]  }
  0x9b   : > { %p4021_p1 = scmp.ne.s32.totalorder %s4610_s7, %s4020_s25  ;;  %s4025_s19 = sshll.u32 %s4321_s11, 4  ;;  %s4026_s19 = int_to_ptr.vmem [resolvable:$false] %s4025_s19 }
  0x9c   : > { %s4027_s2 = scalar_lea.vmem %s4026_s19, 4096  ;;  %p4028_p6 = scmp.lt.s32.totalorder %s4610_s7, %s4026_s19 }
  0x9d   : > { %p4023_p12 = pnand %p4021_p1, %p4618_p11  ;;  %p4029_p8 = scmp.lt.s32.totalorder %s4027_s2, %s4020_s25 }
  0x9f   : > { %p4024_p5 = pneg %p4023_p12  ;;  %p4030_p0 = por %p4029_p8, %p4028_p6 }
  0xa1   : > { %p4031_p2 = pnand %p4030_p0, %p4024_p5 }
  0xa3   : > { %4034 = shalt.err (!%p4031_p2)
}
  0xa4   : > { %s4322_s21 = smov 256   ;;  %s4323_s13 = smov 16  }
  0xa5   : > { %3783 = dma.hbm_to_vmem [thread:$0]  (!%p4599_p3), %s4608_s14, 2048, %s4610_s7, %s4612_s10, %s4322_s21, %s4322_s21, %s4323_s13  }
  0xa6   : > { %s4324_s0 = smov [#allocation11]   ;;  %s4325_s11 = smov [#allocation14]  }
  0xa7   : > { %s546_s12 = sshll.u32 %s4324_s0, 4  ;;  %s575_s20 = sshll.u32 %s4325_s11, 4  ;;  %s547_s12 = int_to_ptr.vmem [resolvable:$true] %s546_s12  ;;  %s576_s20 = int_to_ptr.vmem [resolvable:$true] %s575_s20 }
  0xa8   : > { %s4035_s25 = scalar_lea.hbm %s5466_s5, 2048  ;;  %p5551_p8 = scmp.ne.s32.totalorder %s5537_s16, 0 }
  0xa9   : > { %p4036_p6 = scmp.ne.s32.totalorder %s5466_s5, %s4035_s25  ;;  %p4042_p10 = scmp.lt.u32.totalorder %s4035_s25, %s5466_s5 }
  0xab   : > { %p4038_p5 = pnand %p4036_p6, %p5551_p8 }
  0xad   : > { %p4039_p7 = pneg %p4038_p5 }
  0xaf   : > { %p4044_p13 = pnand %p4042_p10, %p4039_p7 }
  0xb1   : > { %4047 = shalt.err (!%p4044_p13)
}
  0xb2   : > { %s4048_s7 = scalar_lea.vmem %s547_s12, 2048  ;;  %p4056_p12 = scmp.lt.s32.totalorder %s547_s12, %s547_s12 }
  0xb3   : > { %p4049_p9 = scmp.ne.s32.totalorder %s547_s12, %s4048_s7  ;;  %p4057_p0 = scmp.lt.s32.totalorder %s4048_s7, %s4048_s7 }
  0xb5   : > { %p4051_p4 = pnand %p4049_p9, %p5551_p8  ;;  %p4058_p2 = por %p4057_p0, %p4056_p12 }
  0xb7   : > { %p4052_p1 = pneg %p4051_p4 }
  0xb9   : > { %p4059_p3 = pnand %p4058_p2, %p4052_p1 }
  0xbb   : > { %4062 = shalt.err (!%p4059_p3)
}
  0xbc   : > { %p5552_p6 = scmp.ne.s32.totalorder %s5535_s27, 0  ;;  %s5553_s1 = smov 8  }
  0xbd   : > { %s5554_s17 = smov 128   ;;  %s4063_s13 = scalar_lea.hbm %s5469_s8, 2048 }
  0xbe   : > { %3761 = dma.hbm_to_vmem [thread:$0]  (!%p5552_p6), %s5466_s5, 2048, %s547_s12, [#allocation10], %s5554_s17, %s5554_s17, %s5553_s1  }
  0xbf   : > { %p4064_p5 = scmp.ne.s32.totalorder %s5469_s8, %s4063_s13  ;;  %p4070_p10 = scmp.lt.u32.totalorder %s4063_s13, %s5469_s8 }
  0xc1   : > { %p4066_p3 = pnand %p4064_p5, %p5551_p8 }
  0xc3   : > { %p4067_p7 = pneg %p4066_p3 }
  0xc5   : > { %p4072_p13 = pnand %p4070_p10, %p4067_p7 }
  0xc7   : > { %4075 = shalt.err (!%p4072_p13)
}
  0xc8   : > { %s4076_s2 = scalar_lea.vmem %s576_s20, 2048  ;;  %p4084_p12 = scmp.lt.s32.totalorder %s576_s20, %s576_s20 }
  0xc9   : > { %p4077_p9 = scmp.ne.s32.totalorder %s576_s20, %s4076_s2  ;;  %p4085_p0 = scmp.lt.s32.totalorder %s4076_s2, %s4076_s2 }
  0xcb   : > { %p4079_p4 = pnand %p4077_p9, %p5551_p8  ;;  %p4086_p2 = por %p4085_p0, %p4084_p12 }
  0xcd   : > { %p4080_p1 = pneg %p4079_p4 }
  0xcf   : > { %p4087_p11 = pnand %p4086_p2, %p4080_p1 }
  0xd1   : > { %4090 = shalt.err (!%p4087_p11)
}
  0xd2   : > { %3767 = dma.hbm_to_vmem [thread:$0]  (!%p5552_p6), %s5469_s8, 2048, %s576_s20, [#allocation13], %s5554_s17, %s5554_s17, %s5553_s1  }
  0xd3   : > { %s4326_s9 = smov [#allocation17]   ;;  %s636_s13 = sshll.u32 %s5479_s18, 4  ;;  %s637_s13 = int_to_ptr.vmem [resolvable:$true] %s636_s13 }
  0xd4   : > { %s616_s28 = sshll.u32 %s4326_s9, 4  ;;  %s4091_s19 = scalar_lea.hbm %s5476_s15, 4096  ;;  %s617_s28 = int_to_ptr.vmem [resolvable:$true] %s616_s28 }
  0xd5   : > { %p4092_p11 = scmp.ne.s32.totalorder %s5476_s15, %s4091_s19  ;;  %p4098_p7 = scmp.lt.u32.totalorder %s4091_s19, %s5476_s15 }
  0xd7   : > { %p4094_p5 = pnand %p4092_p11, %p5551_p8 }
  0xd9   : > { %p4095_p3 = pneg %p4094_p5 }
  0xdb   : > { %p4100_p10 = pnand %p4098_p7, %p4095_p3 }
  0xdd   : > { %4103 = shalt.err (!%p4100_p10)
}
  0xde   : > { %s4104_s7 = scalar_lea.vmem %s617_s28, 4096  ;;  %p4112_p1 = scmp.lt.s32.totalorder %s617_s28, %s617_s28 }
  0xdf   : > { %p4105_p13 = scmp.ne.s32.totalorder %s617_s28, %s4104_s7  ;;  %p4113_p12 = scmp.lt.s32.totalorder %s4104_s7, %s4104_s7 }
  0xe1   : > { %p4107_p9 = pnand %p4105_p13, %p5551_p8  ;;  %p4114_p0 = por %p4113_p12, %p4112_p1 }
  0xe3   : > { %p4108_p4 = pneg %p4107_p9 }
  0xe5   : > { %p4115_p2 = pnand %p4114_p0, %p4108_p4 }
  0xe7   : > { %4118 = shalt.err (!%p4115_p2)
}
  0xe8   : > { %3773 = dma.hbm_to_vmem [thread:$0]  (!%p5552_p6), %s5476_s15, 4096, %s617_s28, [#allocation16], %s5554_s17, %s5554_s17, %s5553_s1  }
  0xe9   : > { %s4119_s21 = scalar_lea.vmem %s637_s13, 16  ;;  %p4127_p7 = scmp.lt.s32.totalorder %s637_s13, %s637_s13 }
  0xea   : > { %p4120_p11 = scmp.ne.s32.totalorder %s637_s13, %s4119_s21  ;;  %p4128_p10 = scmp.lt.s32.totalorder %s4119_s21, %s4119_s21 }
  0xec   : > { %p4122_p5 = pnand %p4120_p11, %p5551_p8  ;;  %p4129_p13 = por %p4128_p10, %p4127_p7 }
  0xee   : > { %p4123_p3 = pneg %p4122_p5 }
  0xf0   : > { %p4130_p9 = pnand %p4129_p13, %p4123_p3 }
  0xf2   : > { %4133 = shalt.err (!%p4130_p9)
}
  0xf3   : > { %s4327_s0 = smov [#allocation18]   ;;  %s3033_s28 = sshll.u32 %s4592_s29, 4 }
  0xf4   : > { %3776 = dma.vmem_to_smem (!%p5552_p6), %s637_s13, 16, %s4327_s0, [#allocation5]  }
  0xf5   : > { %s3079_s11 = sshll.u32 %s4312_s24, 8  ;;  %s5555_s25 = sld [smem:[#allocation37_spill]] }
  0xf6   : > { %s651_s20 = scalar_lea.vmem [#allocation2], %s3033_s28  ;;  %s3040_s27 = sshll.u32 %s4592_s29, 6 }
  0xf7   : > { %s659_s12 = sshll.u32 %s651_s20, 4  ;;  %s648_s7 = scalar_lea.sflag [#allocation3], %s4592_s29  ;;  %s660_s12 = int_to_ptr.vmem [resolvable:$true] %s659_s12 }
  0xf8   : > { %p5556_p4 = scmp.ne.s32.totalorder %s5550_s23, 0 }
  0xfb   : > { %s4717_s2 = scalar_lea.hbm %s5555_s25, %s3079_s11  ;;  %s4139_s21 = scalar_lea.hbm %s5555_s25, 512 }
  0xfc   : > { %s4134_s9 = scalar_lea.hbm %s4717_s2, 256  ;;  %p4140_p12 = scmp.lt.u32.totalorder %s4717_s2, %s5555_s25 }
  0xfd   : > { %p4135_p8 = scmp.ne.s32.totalorder %s4717_s2, %s4134_s9  ;;  %p4141_p0 = scmp.lt.u32.totalorder %s4139_s21, %s4134_s9 }
  0xfe   : > { %p4143_p11 = scmp.lt.u32.totalorder %s4134_s9, %s4717_s2 }
  0xff   : > { %p4137_p6 = pnand %p4135_p8, %p5556_p4  ;;  %p4142_p2 = por %p4141_p0, %p4140_p12 }
 0x101   : > { %p4138_p1 = pneg %p4137_p6  ;;  %p4144_p5 = por %p4143_p11, %p4142_p2 }
 0x103   : > { %p4145_p3 = pnand %p4144_p5, %p4138_p1 }
 0x105   : > { %4148 = shalt.err (!%p4145_p3)
}
 0x106   : > { %s4149_s28 = scalar_lea.vmem %s660_s12, 256  ;;  %s4328_s19 = smov [#allocation2]  }
 0x107   : > { %p4150_p7 = scmp.ne.s32.totalorder %s660_s12, %s4149_s28  ;;  %s4154_s16 = sshll.u32 %s4328_s19, 4  ;;  %s4155_s16 = int_to_ptr.vmem [resolvable:$false] %s4154_s16 }
 0x108   : > { %s4156_s20 = scalar_lea.vmem %s4155_s16, 512  ;;  %p4157_p9 = scmp.lt.s32.totalorder %s660_s12, %s4155_s16 }
 0x109   : > { %p4152_p10 = pnand %p4150_p7, %p5556_p4  ;;  %p4158_p8 = scmp.lt.s32.totalorder %s4156_s20, %s4149_s28 }
 0x10b   : > { %p4153_p13 = pneg %p4152_p10  ;;  %p4159_p6 = por %p4158_p8, %p4157_p9 }
 0x10d   : > { %p4160_p0 = pnand %p4159_p6, %p4153_p13 }
 0x10f   : > { %4163 = shalt.err (!%p4160_p0)
}
 0x110   : > { %p5557_p12 = scmp.ne.s32.totalorder %s5548_s4, 0  ;;  %s3083_s9 = sshll.u32 %s4312_s24, 10 }
 0x111   : > { %s692_s13 = scalar_lea.vmem [#allocation8], %s3040_s27  ;;  %s5558_s11 = sld [smem:[#allocation39_spill]] }
 0x112   : > { %3780 = dma.hbm_to_vmem [thread:$0]  (!%p5557_p12), %s4717_s2, 256, %s660_s12, %s648_s7  }
 0x113   : > { %s700_s14 = sshll.u32 %s692_s13, 4  ;;  %s4746_s14 = int_to_ptr.vmem [resolvable:$true] %s700_s14 }
 0x117   : > { %s4744_s19 = scalar_lea.hbm %s5558_s11, %s3083_s9  ;;  %s4169_s12 = scalar_lea.hbm %s5558_s11, 2048 }
 0x118   : > { %s4164_s28 = scalar_lea.hbm %s4744_s19, 1024  ;;  %p4170_p5 = scmp.lt.u32.totalorder %s4744_s19, %s5558_s11 }
 0x119   : > { %p4165_p1 = scmp.ne.s32.totalorder %s4744_s19, %s4164_s28  ;;  %p4171_p3 = scmp.lt.u32.totalorder %s4169_s12, %s4164_s28 }
 0x11a   : > { %p4173_p10 = scmp.lt.u32.totalorder %s4164_s28, %s4744_s19 }
 0x11b   : > { %p4167_p2 = pnand %p4165_p1, %p5556_p4  ;;  %p4172_p7 = por %p4171_p3, %p4170_p5 }
 0x11d   : > { %p4168_p11 = pneg %p4167_p2  ;;  %p4174_p13 = por %p4173_p10, %p4172_p7 }
 0x11f   : > { %p4175_p9 = pnand %p4174_p13, %p4168_p11 }
 0x121   : > { %4178 = shalt.err (!%p4175_p9)
}
 0x122   : > { %s4179_s16 = scalar_lea.vmem %s4746_s14, 1024  ;;  %s4329_s20 = smov [#allocation8]  }
 0x123   : > { %p4180_p8 = scmp.ne.s32.totalorder %s4746_s14, %s4179_s16  ;;  %s4184_s9 = sshll.u32 %s4329_s20, 4  ;;  %s4185_s9 = int_to_ptr.vmem [resolvable:$false] %s4184_s9 }
 0x124   : > { %s4186_s13 = scalar_lea.vmem %s4185_s9, 2048  ;;  %p4187_p1 = scmp.lt.s32.totalorder %s4746_s14, %s4185_s9 }
 0x125   : > { %p4182_p6 = pnand %p4180_p8, %p5556_p4  ;;  %p4188_p2 = scmp.lt.s32.totalorder %s4186_s13, %s4179_s16 }
 0x127   : > { %p4183_p0 = pneg %p4182_p6  ;;  %p4189_p5 = por %p4188_p2, %p4187_p1 }
 0x129   : > { %p4190_p3 = pnand %p4189_p5, %p4183_p0 }
 0x12b   : > { %4193 = shalt.err (!%p4190_p3)
}
 0x12c   : > { %3786 = dma.hbm_to_vmem [thread:$0]  (!%p5557_p12), %s4744_s19, 1024, %s4746_s14, %s4612_s10, %s5554_s17, %s5554_s17, %s5553_s1  }
 0x12d   : > { %p5559_p4 = scmp.ne.s32.totalorder %s5534_s26, 0 }
 0x12f   : > { %712 = sbr.rel (%p5559_p4) target bundleno = 1927 (0x787), region = 96 }
 0x136   : > { %s4776_s23 = sand.u32 1, %s4304_s22   ;;  %p5560_p11 = scmp.ne.s32.totalorder %s5543_s30, 0 }
 0x137   : > { %s3045_s21 = sshll.u32 %s4776_s23, 4  ;;  %s715_s0 = scalar_lea.sflag [#allocation3], %s4776_s23 }
 0x138   : > { %s4780_s28 = scalar_lea.vmem [#allocation2], %s3045_s21 }
 0x139   : > { %4267 = dma.done.wait (%p5560_p11), %s715_s0, 256  }
 0x13a   : > { %4269 = vsyncadd (%p5560_p11), %s715_s0, 4294967040  ;;  %s723_s10 = sand.u32 1, %s4463_s3   ;;  %s3046_s26 = sshll.u32 %s4776_s23, 7 }
 0x13b   : > { %s724_s4 = scalar_lea.sflag [#allocation7], %s723_s10  ;;  %s4788_s1 = scalar_lea.vmem [#allocation6], %s3046_s26 }
 0x13c   : > { %4271 = dma.done.wait (%p5560_p11), %s724_s4, 3072  }
 0x13d   : > { %4273 = vsyncadd (%p5560_p11), %s724_s4, 4294964224  ;;  %s3047_s17 = sshll.u32 %s4776_s23, 6  ;;  %p5561_p12 = scmp.eq.s32.totalorder %s4463_s3, 0 }
 0x13e   : > { %s4795_s14 = scalar_lea.vmem [#allocation8], %s3047_s17 }
 0x13f   : > { %4275 = dma.done.wait (%p5561_p12), [#allocation10], 22528   ;;  %p5562_p7 = pmov %p5561_p12 }
 0x141   : > { %4277 = vsyncadd (%p5562_p7), [#allocation10], 4294944768  ;;  %p5563_p10 = pmov %p5562_p7 }
 0x142   : > { %p5564_p13 = pmov %p5562_p7 }
 0x143   : > { %4279 = dma.done.wait (%p5563_p10), [#allocation13], 4096  }
 0x144   : > { %4281 = vsyncadd (%p5564_p13), [#allocation13], 4294963200  ;;  %p5565_p9 = pmov %p5562_p7 }
 0x145   : > { %p5566_p8 = pmov %p5562_p7 }
 0x146   : > { %4283 = dma.done.wait (%p5565_p9), [#allocation16], 8192  }
 0x147   : > { %4285 = vsyncadd (%p5566_p8), [#allocation16], 4294959104  ;;  %p5567_p6 = pmov %p5562_p7 }
 0x149   : > { %4287 = dma.done.wait (%p5567_p6), [#allocation5], 16   ;;  %p5568_p0 = pmov %p5567_p6 }
 0x14b   : > { %4289 = vsyncadd (%p5568_p0), [#allocation5], 4294967280 }
 0x14c   : > { %769 = sfence }
 0x14d   : > { %v842_v0 = vld [vmem:[#allocation9 + $0x8] sm:$0xff]  ;;  %v847_v1 = vld [vmem:[#allocation9 + $0x30] sm:$0xff]  ;;  %v844_v2 = vld [vmem:[#allocation9 + $0x18] sm:$0xff]  ;;  %vm4331_vm0 = vmmov 0   ;;  %vm1855_vm1 = vcmask 1041409   ;;  %vm1857_vm2 = vcmask 1042434  }
 0x14e   : > { %v3397_v3 = vpack.c.bf16 %v847_v1, %v842_v0  ;;  %v849_v4 = vld [vmem:[#allocation9 + $0x40] sm:$0xff]  ;;  %v846_v6 = vld [vmem:[#allocation9 + $0x28] sm:$0xff]  ;;  %v843_v9 = vld [vmem:[#allocation9 + $0x10] sm:$0xff]  ;;  %vm1859_vm3 = vcmask 1043459   ;;  %vm1861_vm4 = vcmask 1044484   ;;  %vm1863_vm5 = vcmask 1045509  }
 0x14f   : > { %v841_v5 = vld [vmem:[#allocation9] sm:$0xff]  ;;  %v3461_v7 = vpack.c.bf16 %v849_v4, %v844_v2  ;;  %v848_v10 = vld [vmem:[#allocation9 + $0x38] sm:$0xff]  ;;  %v854_v14 = vld [vmem:[#allocation9 + $0x68] sm:$0xff]  ;;  %vm1865_vm6 = vcmask 1046534   ;;  %vm1867_vm7 = vcmask 1047559   ;;  %vm1870_vm8 = vcmask 64512  }
 0x150   : > { %v3399_v8 = vpack.c.bf16 %v846_v6, %v841_v5  ;;  %v852_v11 = vld [vmem:[#allocation9 + $0x58] sm:$0xff]  ;;  %3398 = vmatprep.subr.bf16.mxu0 %v3397_v3  ;;  %v3463_v12 = vpack.c.bf16 %v848_v10, %v843_v9  ;;  %v857_v13 = vld [vmem:[#allocation9 + $0x80] sm:$0xff]  ;;  %v859_v15 = vld [vmem:[#allocation9 + $0x90] sm:$0xff]  ;;  %s5570_s12 = sld [smem:[#allocation43_spill]]  ;;  %s5571_s16 = sld [smem:[#allocation48_spill]]  ;;  %vm2389_vm10 = vcmask 1043456  }
 0x151   : > { %3462 = vmatprep.subr.bf16.mxu1 %v3461_v7  ;;  %v3401_v16 = vpack.c.bf16 %v857_v13, %v852_v11  ;;  %v3465_v17 = vpack.c.bf16 %v859_v15, %v854_v14  ;;  %v851_v18 = vld [vmem:[#allocation9 + $0x50] sm:$0xff]  ;;  %v856_v19 = vld [vmem:[#allocation9 + $0x78] sm:$0xff]  ;;  %v853_v20 = vld [vmem:[#allocation9 + $0x60] sm:$0xff]  ;;  %s5576_s13 = sld [smem:[#allocation45_spill]]  ;;  %s5577_s26 = sld [smem:[#allocation41_spill]] }
 0x152   : > { %3400 = vmatpush1.bf16.msra.mxu0 %v3399_v8  ;;  %3464 = vmatpush1.bf16.msra.mxu1 %v3463_v12  ;;  %v3403_v21 = vpack.c.bf16 %v856_v19, %v851_v18  ;;  %v858_v22 = vld [vmem:[#allocation9 + $0x88] sm:$0xff]  ;;  %v867_v24 = vld [vmem:[#allocation9 + $0xd0] sm:$0xff]  ;;  %v864_v27 = vld [vmem:[#allocation9 + $0xb8] sm:$0xff]  ;;  %s5578_s17 = sld [smem:[#allocation46_spill]]  ;;  %s5579_s19 = sld [smem:[#allocation47_spill]] }
 0x153   : > { %v862_v23 = vld [vmem:[#allocation9 + $0xa8] sm:$0xff]  ;;  %3402 = vmatprep.subr.bf16.mxu0 %v3401_v16  ;;  %3466 = vmatprep.subr.bf16.mxu1 %v3465_v17  ;;  %v3467_v25 = vpack.c.bf16 %v858_v22, %v853_v20  ;;  %v869_v28 = vld [vmem:[#allocation9 + $0xe0] sm:$0xff]  ;;  %v863_v32 = vld [vmem:[#allocation9 + $0xb0] sm:$0xff]  ;;  %s5580_s27 = sld [smem:[#allocation49_spill]]  ;;  %s5581_s20 = sld [smem:[#allocation50_spill]] }
 0x154   : > { %v3405_v26 = vpack.c.bf16 %v867_v24, %v862_v23  ;;  %v861_v29 = vld [vmem:[#allocation9 + $0xa0] sm:$0xff]  ;;  %v3469_v30 = vpack.c.bf16 %v869_v28, %v864_v27  ;;  %v866_v31 = vld [vmem:[#allocation9 + $0xc8] sm:$0xff]  ;;  %v868_v33 = vld [vmem:[#allocation9 + $0xd8] sm:$0xff]  ;;  %s2705_s9 = sld [smem:[#allocation18]]  ;;  %s3069_s21 = sld [smem:[#allocation18 + $0x2]] }
 0x155   : > { %v3407_v34 = vpack.c.bf16 %v866_v31, %v861_v29  ;;  %v872_v35 = vld [vmem:[#allocation9 + $0xf8] sm:$0xff]  ;;  %v877_v36 = vld [vmem:[#allocation9 + $0x120] sm:$0xff]  ;;  %v874_v37 = vld [vmem:[#allocation9 + $0x108] sm:$0xff]  ;;  %v3471_v38 = vpack.c.bf16 %v868_v33, %v863_v32  ;;  %s3055_s0 = sshll.u32 %s4776_s23, 3  ;;  %s5584_s30 = sld [smem:[#allocation52_spill]] }
 0x156   : > { %3404 = vmatpush1.bf16.msra.mxu0 %v3403_v21  ;;  %3468 = vmatpush1.bf16.msra.mxu1 %v3467_v25  ;;  %v3409_v39 = vpack.c.bf16 %v877_v36, %v872_v35  ;;  %v879_v40 = vld [vmem:[#allocation9 + $0x130] sm:$0xff]  ;;  %v876_v42 = vld [vmem:[#allocation9 + $0x118] sm:$0xff]  ;;  %v873_v44 = vld [vmem:[#allocation9 + $0x100] sm:$0xff]  ;;  %s836_s10 = scalar_lea.vmem [#allocation20], %s3055_s0  ;;  %s5380_s4 = scalar_lea.vmem [#allocation19], %s3055_s0 }
 0x157   : > { %3406 = vmatprep.subr.bf16.mxu0 %v3405_v26  ;;  %v871_v41 = vld [vmem:[#allocation9 + $0xf0] sm:$0xff]  ;;  %3470 = vmatprep.subr.bf16.mxu1 %v3469_v30  ;;  %v3473_v43 = vpack.c.bf16 %v879_v40, %v874_v37  ;;  %v878_v45 = vld [vmem:[#allocation9 + $0x128] sm:$0xff]  ;;  %v884_v48 = vld [vmem:[#allocation9 + $0x158] sm:$0xff] }
 0x158   : > { %v882_v46 = vld [vmem:[#allocation9 + $0x148] sm:$0xff]  ;;  %v887_v47 = vld [vmem:[#allocation9 + $0x170] sm:$0xff]  ;;  %v889_v49 = vld [vmem:[#allocation9 + $0x180] sm:$0xff]  ;;  %v3411_v50 = vpack.c.bf16 %v876_v42, %v871_v41  ;;  %v3475_v51 = vpack.c.bf16 %v878_v45, %v873_v44 }
 0x159   : > { %v3413_v52 = vpack.c.bf16 %v887_v47, %v882_v46  ;;  %v881_v53 = vld [vmem:[#allocation9 + $0x140] sm:$0xff]  ;;  %v886_v54 = vld [vmem:[#allocation9 + $0x168] sm:$0xff]  ;;  %v883_v55 = vld [vmem:[#allocation9 + $0x150] sm:$0xff]  ;;  %v3477_v56 = vpack.c.bf16 %v889_v49, %v884_v48 }
 0x15a   : > { %3408 = vmatpush1.bf16.msra.mxu0 %v3407_v34  ;;  %3472 = vmatpush1.bf16.msra.mxu1 %v3471_v38  ;;  %v888_v57 = vld [vmem:[#allocation9 + $0x178] sm:$0xff]  ;;  %v897_v59 = vld [vmem:[#allocation9 + $0x1c0] sm:$0xff]  ;;  %v894_v60 = vld [vmem:[#allocation9 + $0x1a8] sm:$0xff]  ;;  %v3415_v62 = vpack.c.bf16 %v886_v54, %v881_v53 }
 0x15b   : > { %3410 = vmatprep.subr.bf16.mxu0 %v3409_v39  ;;  %3474 = vmatprep.subr.bf16.mxu1 %v3473_v43  ;;  %v892_v58 = vld [vmem:[#allocation9 + $0x198] sm:$0xff]  ;;  %v899_v61 = vld [vmem:[#allocation9 + $0x1d0] sm:$0xff]  ;;  %v3479_v63 = vpack.c.bf16 %v888_v57, %v883_v55  ;;  %v893_v3 = vld [vmem:[#allocation9 + $0x1a0] sm:$0xff] }
 0x15c   : > { %v3417_v0 = vpack.c.bf16 %v897_v59, %v892_v58  ;;  %v891_v1 = vld [vmem:[#allocation9 + $0x190] sm:$0xff]  ;;  %v896_v2 = vld [vmem:[#allocation9 + $0x1b8] sm:$0xff]  ;;  %v3481_v4 = vpack.c.bf16 %v899_v61, %v894_v60  ;;  %v898_v5 = vld [vmem:[#allocation9 + $0x1c8] sm:$0xff] }
 0x15d   : > { %v902_v6 = vld [vmem:[#allocation9 + $0x1e8] sm:$0xff]  ;;  %v907_v7 = vld [vmem:[#allocation9 + $0x210] sm:$0xff]  ;;  %v904_v8 = vld [vmem:[#allocation9 + $0x1f8] sm:$0xff]  ;;  %v3419_v10 = vpack.c.bf16 %v896_v2, %v891_v1  ;;  %v3483_v11 = vpack.c.bf16 %v898_v5, %v893_v3 }
 0x15e   : > { %3412 = vmatpush1.bf16.msra.mxu0 %v3411_v50  ;;  %3476 = vmatpush1.bf16.msra.mxu1 %v3475_v51  ;;  %v909_v9 = vld [vmem:[#allocation9 + $0x220] sm:$0xff]  ;;  %v3421_v12 = vpack.c.bf16 %v907_v7, %v902_v6  ;;  %v906_v14 = vld [vmem:[#allocation9 + $0x208] sm:$0xff]  ;;  %v903_v15 = vld [vmem:[#allocation9 + $0x1f0] sm:$0xff] }
 0x15f   : > { %3414 = vmatprep.subr.bf16.mxu0 %v3413_v52  ;;  %3478 = vmatprep.subr.bf16.mxu1 %v3477_v56  ;;  %v901_v13 = vld [vmem:[#allocation9 + $0x1e0] sm:$0xff]  ;;  %v3485_v16 = vpack.c.bf16 %v909_v9, %v904_v8  ;;  %v908_v17 = vld [vmem:[#allocation9 + $0x218] sm:$0xff]  ;;  %v914_v20 = vld [vmem:[#allocation9 + $0x248] sm:$0xff] }
 0x160   : > { %v912_v18 = vld [vmem:[#allocation9 + $0x238] sm:$0xff]  ;;  %v917_v19 = vld [vmem:[#allocation9 + $0x260] sm:$0xff]  ;;  %v919_v21 = vld [vmem:[#allocation9 + $0x270] sm:$0xff]  ;;  %v3423_v22 = vpack.c.bf16 %v906_v14, %v901_v13  ;;  %v3487_v23 = vpack.c.bf16 %v908_v17, %v903_v15 }
 0x161   : > { %v3425_v24 = vpack.c.bf16 %v917_v19, %v912_v18  ;;  %v911_v25 = vld [vmem:[#allocation9 + $0x230] sm:$0xff]  ;;  %v916_v26 = vld [vmem:[#allocation9 + $0x258] sm:$0xff]  ;;  %v913_v27 = vld [vmem:[#allocation9 + $0x240] sm:$0xff]  ;;  %v3489_v28 = vpack.c.bf16 %v919_v21, %v914_v20 }
 0x162   : > { %3416 = vmatpush1.bf16.msra.mxu0 %v3415_v62  ;;  %3480 = vmatpush1.bf16.msra.mxu1 %v3479_v63  ;;  %v918_v29 = vld [vmem:[#allocation9 + $0x268] sm:$0xff]  ;;  %v927_v31 = vld [vmem:[#allocation9 + $0x2b0] sm:$0xff]  ;;  %v924_v32 = vld [vmem:[#allocation9 + $0x298] sm:$0xff]  ;;  %v3427_v34 = vpack.c.bf16 %v916_v26, %v911_v25 }
 0x163   : > { %3418 = vmatprep.subr.bf16.mxu0 %v3417_v0  ;;  %3482 = vmatprep.subr.bf16.mxu1 %v3481_v4  ;;  %v922_v30 = vld [vmem:[#allocation9 + $0x288] sm:$0xff]  ;;  %v929_v33 = vld [vmem:[#allocation9 + $0x2c0] sm:$0xff]  ;;  %v3491_v35 = vpack.c.bf16 %v918_v29, %v913_v27  ;;  %v923_v39 = vld [vmem:[#allocation9 + $0x290] sm:$0xff] }
 0x164   : > { %v3429_v36 = vpack.c.bf16 %v927_v31, %v922_v30  ;;  %v921_v37 = vld [vmem:[#allocation9 + $0x280] sm:$0xff]  ;;  %v926_v38 = vld [vmem:[#allocation9 + $0x2a8] sm:$0xff]  ;;  %v3493_v40 = vpack.c.bf16 %v929_v33, %v924_v32  ;;  %v928_v41 = vld [vmem:[#allocation9 + $0x2b8] sm:$0xff] }
 0x165   : > { %v932_v42 = vld [vmem:[#allocation9 + $0x2d8] sm:$0xff]  ;;  %v937_v43 = vld [vmem:[#allocation9 + $0x300] sm:$0xff]  ;;  %v934_v44 = vld [vmem:[#allocation9 + $0x2e8] sm:$0xff]  ;;  %v3431_v46 = vpack.c.bf16 %v926_v38, %v921_v37  ;;  %v3495_v47 = vpack.c.bf16 %v928_v41, %v923_v39 }
 0x166   : > { %3420 = vmatpush1.bf16.msra.mxu0 %v3419_v10  ;;  %3484 = vmatpush1.bf16.msra.mxu1 %v3483_v11  ;;  %v939_v45 = vld [vmem:[#allocation9 + $0x310] sm:$0xff]  ;;  %v3433_v48 = vpack.c.bf16 %v937_v43, %v932_v42  ;;  %v936_v50 = vld [vmem:[#allocation9 + $0x2f8] sm:$0xff]  ;;  %v933_v51 = vld [vmem:[#allocation9 + $0x2e0] sm:$0xff] }
 0x167   : > { %3422 = vmatprep.subr.bf16.mxu0 %v3421_v12  ;;  %3486 = vmatprep.subr.bf16.mxu1 %v3485_v16  ;;  %v931_v49 = vld [vmem:[#allocation9 + $0x2d0] sm:$0xff]  ;;  %v3497_v52 = vpack.c.bf16 %v939_v45, %v934_v44  ;;  %v938_v53 = vld [vmem:[#allocation9 + $0x308] sm:$0xff]  ;;  %v944_v56 = vld [vmem:[#allocation9 + $0x338] sm:$0xff] }
 0x168   : > { %v942_v54 = vld [vmem:[#allocation9 + $0x328] sm:$0xff]  ;;  %v947_v55 = vld [vmem:[#allocation9 + $0x350] sm:$0xff]  ;;  %v949_v57 = vld [vmem:[#allocation9 + $0x360] sm:$0xff]  ;;  %v3435_v58 = vpack.c.bf16 %v936_v50, %v931_v49  ;;  %v3499_v59 = vpack.c.bf16 %v938_v53, %v933_v51 }
 0x169   : > { %v3437_v60 = vpack.c.bf16 %v947_v55, %v942_v54  ;;  %v941_v61 = vld [vmem:[#allocation9 + $0x320] sm:$0xff]  ;;  %v946_v62 = vld [vmem:[#allocation9 + $0x348] sm:$0xff]  ;;  %v943_v63 = vld [vmem:[#allocation9 + $0x330] sm:$0xff]  ;;  %v3501_v0 = vpack.c.bf16 %v949_v57, %v944_v56 }
 0x16a   : > { %3424 = vmatpush1.bf16.msra.mxu0 %v3423_v22  ;;  %3488 = vmatpush1.bf16.msra.mxu1 %v3487_v23  ;;  %v948_v1 = vld [vmem:[#allocation9 + $0x358] sm:$0xff]  ;;  %v957_v3 = vld [vmem:[#allocation9 + $0x3a0] sm:$0xff]  ;;  %v954_v4 = vld [vmem:[#allocation9 + $0x388] sm:$0xff]  ;;  %v3439_v6 = vpack.c.bf16 %v946_v62, %v941_v61 }
 0x16b   : > { %3426 = vmatprep.subr.bf16.mxu0 %v3425_v24  ;;  %3490 = vmatprep.subr.bf16.mxu1 %v3489_v28  ;;  %v952_v2 = vld [vmem:[#allocation9 + $0x378] sm:$0xff]  ;;  %v959_v5 = vld [vmem:[#allocation9 + $0x3b0] sm:$0xff]  ;;  %v3503_v8 = vpack.c.bf16 %v948_v1, %v943_v63  ;;  %v953_v11 = vld [vmem:[#allocation9 + $0x380] sm:$0xff] }
 0x16c   : > { %v951_v7 = vld [vmem:[#allocation9 + $0x370] sm:$0xff]  ;;  %v3441_v9 = vpack.c.bf16 %v957_v3, %v952_v2  ;;  %v956_v10 = vld [vmem:[#allocation9 + $0x398] sm:$0xff]  ;;  %v958_v12 = vld [vmem:[#allocation9 + $0x3a8] sm:$0xff]  ;;  %v3505_v13 = vpack.c.bf16 %v959_v5, %v954_v4  ;;  %v4330_v5 = vmov 0.0|0.0  }
 0x16d   : > { %v962_v14 = vld [vmem:[#allocation9 + $0x3c8] sm:$0xff]  ;;  %v967_v15 = vld [vmem:[#allocation9 + $0x3f0] sm:$0xff]  ;;  %v964_v17 = vld [vmem:[#allocation9 + $0x3d8] sm:$0xff]  ;;  %v3443_v19 = vpack.c.bf16 %v956_v10, %v951_v7  ;;  %v3507_v20 = vpack.c.bf16 %v958_v12, %v953_v11 }
 0x16e   : > { %3428 = vmatpush1.bf16.msra.mxu0 %v3427_v34  ;;  %3492 = vmatpush1.bf16.msra.mxu1 %v3491_v35  ;;  %v4814_v16 = vld [vmem:[%s4780_s28 + $0x8] sm:$0xff]  ;;  %v969_v18 = vld [vmem:[#allocation9 + $0x400] sm:$0xff]  ;;  %v3445_v21 = vpack.c.bf16 %v967_v15, %v962_v14  ;;  %v963_v24 = vld [vmem:[#allocation9 + $0x3d0] sm:$0xff] }
 0x16f   : > { %3430 = vmatprep.subr.bf16.mxu0 %v3429_v36  ;;  %3494 = vmatprep.subr.bf16.mxu1 %v3493_v40  ;;  %v961_v22 = vld [vmem:[#allocation9 + $0x3c0] sm:$0xff]  ;;  %v966_v23 = vld [vmem:[#allocation9 + $0x3e8] sm:$0xff]  ;;  %v3509_v25 = vpack.c.bf16 %v969_v18, %v964_v17  ;;  %v968_v26 = vld [vmem:[#allocation9 + $0x3f8] sm:$0xff] }
 0x170   : > { %1065 = vmatprep.mubr.f32.mxu0 %v4814_v16  ;;  %1136 = vmatprep.mubr.f32.mxu1 %v4814_v16  ;;  %v972_v27 = vld [vmem:[#allocation9 + $0x418] sm:$0xff]  ;;  %v977_v28 = vld [vmem:[#allocation9 + $0x440] sm:$0xff]  ;;  %v974_v29 = vld [vmem:[#allocation9 + $0x428] sm:$0xff]  ;;  %v3447_v31 = vpack.c.bf16 %v966_v23, %v961_v22  ;;  %v3511_v32 = vpack.c.bf16 %v968_v26, %v963_v24 }
 0x171   : > { %v979_v30 = vld [vmem:[#allocation9 + $0x450] sm:$0xff]  ;;  %v3449_v33 = vpack.c.bf16 %v977_v28, %v972_v27  ;;  %v976_v35 = vld [vmem:[#allocation9 + $0x438] sm:$0xff]  ;;  %v973_v36 = vld [vmem:[#allocation9 + $0x420] sm:$0xff]  ;;  %v4332_v27 = vmov 0.0  }
 0x172   : > { %3432 = vmatpush1.bf16.msra.mxu0 %v3431_v46  ;;  %3496 = vmatpush1.bf16.msra.mxu1 %v3495_v47  ;;  %v971_v34 = vld [vmem:[#allocation9 + $0x410] sm:$0xff]  ;;  %v3513_v37 = vpack.c.bf16 %v979_v30, %v974_v29  ;;  %v978_v38 = vld [vmem:[#allocation9 + $0x448] sm:$0xff]  ;;  %v984_v41 = vld [vmem:[#allocation9 + $0x478] sm:$0xff] }
 0x173   : > { %3434 = vmatprep.subr.bf16.mxu0 %v3433_v48  ;;  %3498 = vmatprep.subr.bf16.mxu1 %v3497_v52  ;;  %v982_v39 = vld [vmem:[#allocation9 + $0x468] sm:$0xff]  ;;  %v987_v40 = vld [vmem:[#allocation9 + $0x490] sm:$0xff]  ;;  %v989_v42 = vld [vmem:[#allocation9 + $0x4a0] sm:$0xff]  ;;  %v3451_v43 = vpack.c.bf16 %v976_v35, %v971_v34  ;;  %v3515_v44 = vpack.c.bf16 %v978_v38, %v973_v36  ;;  %v4333_v34 = vmov 1966171168   ;;  %v1648_v36 = vlaneseq }
 0x174   : > { %v3453_v45 = vpack.c.bf16 %v987_v40, %v982_v39  ;;  %v981_v46 = vld [vmem:[#allocation9 + $0x460] sm:$0xff]  ;;  %v986_v47 = vld [vmem:[#allocation9 + $0x488] sm:$0xff]  ;;  %v983_v48 = vld [vmem:[#allocation9 + $0x470] sm:$0xff]  ;;  %v3517_v49 = vpack.c.bf16 %v989_v42, %v984_v41  ;;  %v1646_v35 = vunpack.c.l.s4 %v4333_v34 }
 0x175   : > { %v988_v50 = vld [vmem:[#allocation9 + $0x498] sm:$0xff]  ;;  %v997_v52 = vld [vmem:[#allocation9 + $0x4e0] sm:$0xff]  ;;  %v994_v53 = vld [vmem:[#allocation9 + $0x4c8] sm:$0xff]  ;;  %v3455_v55 = vpack.c.bf16 %v986_v47, %v981_v46  ;;  %v4836_v38 = vshrl.u32 %v1648_v36, 7 }
 0x176   : > { %3436 = vmatpush1.bf16.msra.mxu0 %v3435_v58  ;;  %3500 = vmatpush1.bf16.msra.mxu1 %v3499_v59  ;;  %v992_v51 = vld [vmem:[#allocation9 + $0x4b8] sm:$0xff]  ;;  %v999_v54 = vld [vmem:[#allocation9 + $0x4f0] sm:$0xff]  ;;  %v3519_v56 = vpack.c.bf16 %v988_v50, %v983_v48  ;;  %v993_v61 = vld [vmem:[#allocation9 + $0x4c0] sm:$0xff] }
 0x177   : > { %3438 = vmatprep.subr.bf16.mxu0 %v3437_v60  ;;  %3502 = vmatprep.subr.bf16.mxu1 %v3501_v0  ;;  %v3457_v57 = vpack.c.bf16 %v997_v52, %v992_v51  ;;  %v991_v58 = vld [vmem:[#allocation9 + $0x4b0] sm:$0xff]  ;;  %v996_v59 = vld [vmem:[#allocation9 + $0x4d8] sm:$0xff]  ;;  %v3521_v60 = vpack.c.bf16 %v999_v54, %v994_v53  ;;  %v998_v62 = vld [vmem:[#allocation9 + $0x4e8] sm:$0xff]  ;;  %v4847_v48 = vsub.s32 0, %v4836_v38 }
 0x178   : > { %v3459_v63 = vpack.c.bf16 %v996_v59, %v991_v58  ;;  %v3523_v0 = vpack.c.bf16 %v998_v62, %v993_v61  ;;  %v1221_v1 = vld [vmem:[#allocation11] sm:$0xff]  ;;  %v1222_v2 = vld [vmem:[#allocation11 + $0x8] sm:$0xff]  ;;  %v1224_v7 = vld [vmem:[#allocation11 + $0x18] sm:$0xff] }
 0x179   : > { %v4819_v3 = vld [vmem:[%s4780_s28] sm:$0xff]  ;;  %v3558_v4 = vpack.c.bf16 %v1222_v2, %v1221_v1  ;;  %v1226_v10 = vld [vmem:[#allocation11 + $0x28] sm:$0xff]  ;;  %s3075_s28 = sshll.u32 %s4463_s3, 7 }
 0x17a   : > { %3440 = vmatpush1.bf16.msra.mxu0 %v3439_v6  ;;  %3504 = vmatpush1.bf16.msra.mxu1 %v3503_v8  ;;  %v1223_v6 = vld [vmem:[#allocation11 + $0x10] sm:$0xff]  ;;  %v1229_v15 = vld [vmem:[#allocation11 + $0x40] sm:$0xff]  ;;  %v1230_v17 = vld [vmem:[#allocation11 + $0x48] sm:$0xff] }
 0x17b   : > { %3442 = vmatprep.subr.bf16.mxu0 %v3441_v9  ;;  %3506 = vmatprep.subr.bf16.mxu1 %v3505_v13  ;;  %v3561_v8 = vpack.c.bf16 %v1224_v7, %v1223_v6  ;;  %v1225_v9 = vld [vmem:[#allocation11 + $0x20] sm:$0xff]  ;;  %v1227_v12 = vld [vmem:[#allocation11 + $0x30] sm:$0xff]  ;;  %v1228_v13 = vld [vmem:[#allocation11 + $0x38] sm:$0xff] }
 0x17c   : > { %v3564_v11 = vpack.c.bf16 %v1226_v10, %v1225_v9  ;;  %v3567_v14 = vpack.c.bf16 %v1228_v13, %v1227_v12  ;;  %v1231_v18 = vld [vmem:[#allocation11 + $0x50] sm:$0xff]  ;;  %v1234_v22 = vld [vmem:[#allocation11 + $0x68] sm:$0xff]  ;;  %v925_v28 = vld [vmem:[#allocation9 + $0x2a0] sm:$0xff] }
 0x17d   : > { %v1235_v24 = vld [vmem:[#allocation11 + $0x70] sm:$0xff]  ;;  %v930_v29 = vld [vmem:[#allocation9 + $0x2c8] sm:$0xff]  ;;  %v845_v30 = vld [vmem:[#allocation9 + $0x20] sm:$0xff] }
 0x17e   : > { %3444 = vmatpush1.bf16.msra.mxu0 %v3443_v19  ;;  %3508 = vmatpush1.bf16.msra.mxu1 %v3507_v20  ;;  %v1232_v19 = vld [vmem:[#allocation11 + $0x58] sm:$0xff]  ;;  %v4853_v54 = vld [vmem:[%s4788_s1] sm:$0xff]  ;;  %v1627_v62 = vld [vmem:[%s4788_s1 + $0x10] sm:$0xff] }
 0x17f   : > { %3446 = vmatprep.subr.bf16.mxu0 %v3445_v21  ;;  %3510 = vmatprep.subr.bf16.mxu1 %v3509_v25  ;;  %v3573_v20 = vpack.c.bf16 %v1232_v19, %v1231_v18  ;;  %v1233_v21 = vld [vmem:[#allocation11 + $0x60] sm:$0xff]  ;;  %v1236_v25 = vld [vmem:[#allocation11 + $0x78] sm:$0xff] }
 0x180   : > { %v3576_v23 = vpack.c.bf16 %v1234_v22, %v1233_v21  ;;  %v3579_v26 = vpack.c.bf16 %v1236_v25, %v1235_v24  ;;  %v4875_v12 = vld [vmem:[%s4788_s1 + $0x58] sm:$0xff]  ;;  %v1637_v34 = vld [vmem:[%s4788_s1 + $0x60] sm:$0xff] }
 0x182   : > { %3448 = vmatpush1.bf16.msra.mxu0 %v3447_v31  ;;  %3512 = vmatpush1.bf16.msra.mxu1 %v3511_v32  ;;  %v3525_v31 = vpack.c.bf16 %v930_v29, %v925_v28  ;;  %v850_v32 = vld [vmem:[#allocation9 + $0x48] sm:$0xff]  ;;  %v4885_v29 = vld [vmem:[%s4788_s1 + $0x30] sm:$0xff] }
 0x183   : > { %3450 = vmatprep.subr.bf16.mxu0 %v3449_v33  ;;  %3514 = vmatprep.subr.bf16.mxu1 %v3513_v37  ;;  %v3527_v33 = vpack.c.bf16 %v850_v32, %v845_v30  ;;  %v1647_v37 = vunpack.c.0.s8 %v1646_v35  ;;  %v1638_v35 = vld [vmem:[%s4788_s1 + $0x68] sm:$0xff] }
 0x185   : > { %v1650_v42 = vsub.s32 %v1647_v37, %v4836_v38 }
 0x186   : > { %3452 = vmatpush1.bf16.msra.mxu0 %v3451_v43  ;;  %3516 = vmatpush1.bf16.msra.mxu1 %v3515_v44 }
 0x187   : > { %3454 = vmatprep.subr.bf16.mxu0 %v3453_v45  ;;  %3518 = vmatprep.subr.bf16.mxu1 %v3517_v49  ;;  %v4850_v49 = vsub.s32 1, %v4836_v38 }
 0x18a   : > { %3456 = vmatpush1.bf16.msra.mxu0 %v3455_v55  ;;  %3520 = vmatpush1.bf16.msra.mxu1 %v3519_v56  ;;  %v4856_v55 = vld [vmem:[%s4788_s1 + $0x8] sm:$0xff] }
 0x18b   : > { %3458 = vmatprep.subr.bf16.mxu0 %v3457_v57  ;;  %3522 = vmatprep.subr.bf16.mxu1 %v3521_v60  ;;  %v1629_v60 = vld [vmem:[%s4788_s1 + $0x20] sm:$0xff] }
 0x18e   : > { %3460 = vmatpush1.bf16.msra.mxu0 %v3459_v63  ;;  %3524 = vmatpush1.bf16.msra.mxu1 %v3523_v0  ;;  %v1628_v63 = vld [vmem:[%s4788_s1 + $0x18] sm:$0xff]  ;;  %v1633_v0 = vld [vmem:[%s4788_s1 + $0x40] sm:$0xff] }
 0x18f   : > { %3557 = vmatprep.subr.bf16.mxu1 %v4330_v5  ;;  %3526 = vmatprep.subr.bf16.mxu0 %v3525_v31 }
 0x191   : > { %1066 = vmatmul.mubr.f32.vlgmr.msra.gmra.mrb[0].mxu0 %v4819_v3  ;;  %1137 = vmatmul.mubr.f32.vlgmr.msra.gmra.mrb[0].mxu1 %v4819_v3 }
 0x192   : > { %1207 = vmatprep.mubr.f32.mxu0 %v4814_v16  ;;  %3559 = vmatpush3.bf16.msra.mxu1 %v3558_v4  ;;  %v3570_v16 = vpack.c.bf16 %v1230_v17, %v1229_v15 }
 0x193   : > { %3560 = vmatprep.subr.bf16.mxu1 %v4330_v5  ;;  %3289 = vmatprep.mubr.msk.f32.mxu1 %vm4331_vm0, %v4332_v27 }
 0x194   : > { %3528 = vmatpush3.bf16.msra.mxu0 %v3527_v33  ;;  %v4889_v33 = vld [vmem:[%s4788_s1 + $0x38] sm:$0xff] }
 0x196   : > { %3562 = vmatpush3.bf16.msra.mxu1 %v3561_v8  ;;  %v1630_v8 = vld [vmem:[%s4788_s1 + $0x28] sm:$0xff] }
 0x197   : > { %3563 = vmatprep.subr.bf16.mxu1 %v4330_v5 }
 0x19a   : > { %3565 = vmatpush3.bf16.msra.mxu1 %v3564_v11  ;;  %v4872_v11 = vld [vmem:[%s4788_s1 + $0x50] sm:$0xff] }
 0x19b   : > { %3566 = vmatprep.subr.bf16.mxu1 %v4330_v5 }
 0x19e   : > { %3568 = vmatpush3.bf16.msra.mxu1 %v3567_v14 }
 0x19f   : > { %3569 = vmatprep.subr.bf16.mxu1 %v4330_v5 }
 0x1a2   : > { %3571 = vmatpush3.bf16.msra.mxu1 %v3570_v16  ;;  %v1634_v16 = vld [vmem:[%s4788_s1 + $0x48] sm:$0xff] }
 0x1a3   : > { %3572 = vmatprep.subr.bf16.mxu1 %v4330_v5 }
 0x1a6   : > { %3574 = vmatpush3.bf16.msra.mxu1 %v3573_v20 }
 0x1a7   : > { %3575 = vmatprep.subr.bf16.mxu1 %v4330_v5 }
 0x1aa   : > { %3577 = vmatpush3.bf16.msra.mxu1 %v3576_v23 }
 0x1ab   : > { %3578 = vmatprep.subr.bf16.mxu1 %v4330_v5 }
 0x1ae   : > { %3580 = vmatpush3.bf16.msra.mxu1 %v3579_v26 }
 0x1af   : > { %3605 = vmatprep.subr.bf16.mxu1 %v4330_v5 }
 0x264   : > { %v4838_v39 = vpop.f32.mrb[0].mxu0  ;;  %v1138_v40 = vpop.f32.mrb[0].mxu1 }
 0x265   : > { %v4840_v41 = vpop.f32.mrb[1].mxu0  ;;  %3290 = vmatmul.mubr.f32.vlgmr.msra.gmra.mrb[2].mxu1 %v4838_v39  ;;  %v1140_v43 = vpop.f32.mrb[1].mxu1 }
 0x266   : > { %3359 = vmatprep.mubr.msk.f32.mxu1 %vm4331_vm0, %v4332_v27  ;;  %v1643_v44 = vcombine.low %v1138_v40, %v1140_v43  ;;  %v1644_v45 = vcombine.high %v1138_v40, %v1140_v43 }
 0x268   : > { %v1651_v46 = vrot.slane %v1643_v44, %v1650_v42  ;;  %v1658_v47 = vrot.slane %v1644_v45, %v1650_v42 }
 0x26a   : > { %v1659_v50 = vcombine.high %v1651_v46, %v1651_v46  ;;  %v1660_v51 = vcombine.high %v1658_v47, %v1658_v47  ;;  %v1667_v52 = vrot.slane %v1651_v46, %v1650_v42  ;;  %v1674_v53 = vrot.slane %v1658_v47, %v1650_v42 }
 0x26c   : > { %v1681_v56 = vrot.slane %v1659_v50, %v1650_v42  ;;  %v1688_v57 = vrot.slane %v1660_v51, %v1650_v42  ;;  %v1696_v58 = vrot.slane %v1667_v52, %v4847_v48  ;;  %v1700_v59 = vrot.slane %v1667_v52, %v4850_v49 }
 0x26d   : > { %v1689_v61 = vcombine.high %v1667_v52, %v1667_v52  ;;  %v1728_v1 = vrot.slane %v1674_v53, %v4847_v48  ;;  %v1732_v2 = vrot.slane %v1674_v53, %v4850_v49  ;;  %v1690_v4 = vcombine.high %v1674_v53, %v1674_v53 }
 0x26e   : > { %v1773_v6 = vmul.f32 %v1696_v58, %v4853_v54  ;;  %v1774_v7 = vmul.f32 %v1700_v59, %v4856_v55  ;;  %v1704_v9 = vrot.slane %v1681_v56, %v4847_v48  ;;  %v1708_v10 = vrot.slane %v1681_v56, %v4850_v49 }
 0x26f   : > { %v1712_v13 = vrot.slane %v1689_v61, %v4847_v48  ;;  %v1716_v14 = vrot.slane %v1689_v61, %v4850_v49  ;;  %v1736_v15 = vrot.slane %v1688_v57, %v4847_v48  ;;  %v1740_v17 = vrot.slane %v1688_v57, %v4850_v49 }
 0x270   : > { %v1789_v18 = vadd.f32 %v1774_v7, %v1773_v6  ;;  %v1775_v19 = vmul.f32 %v1704_v9, %v1627_v62  ;;  %v1776_v20 = vmul.f32 %v1708_v10, %v1628_v63  ;;  %v1781_v21 = vmul.f32 %v1728_v1, %v1633_v0  ;;  %v935_v63 = vld [vmem:[#allocation9 + $0x2f0] sm:$0xff]  ;;  %v940_v0 = vld [vmem:[#allocation9 + $0x318] sm:$0xff]  ;;  %v945_v7 = vld [vmem:[#allocation9 + $0x340] sm:$0xff] }
 0x271   : > { %v1777_v22 = vmul.f32 %v1712_v13, %v1629_v60  ;;  %v1778_v23 = vmul.f32 %v1716_v14, %v1630_v8  ;;  %v1783_v24 = vmul.f32 %v1736_v15, %v4872_v11  ;;  %v1784_v25 = vmul.f32 %v1740_v17, %v4875_v12  ;;  %v950_v8 = vld [vmem:[#allocation9 + $0x368] sm:$0xff]  ;;  %v865_v10 = vld [vmem:[#allocation9 + $0xc0] sm:$0xff]  ;;  %v955_v15 = vld [vmem:[#allocation9 + $0x390] sm:$0xff] }
 0x272   : > { %1790 = vadd.xlane.f32.xlu0 %v1789_v18  ;;  %v1792_v26 = vadd.f32 %v1776_v20, %v1775_v19  ;;  %v1782_v28 = vmul.f32 %v1732_v2, %v1634_v16  ;;  %v1691_v30 = vcombine.high %v1681_v56, %v1681_v56  ;;  %v1744_v31 = vrot.slane %v1690_v4, %v4847_v48  ;;  %v4901_v56 = vld [vmem:[%s4788_s1 + $0x70] sm:$0xff]  ;;  %v870_v13 = vld [vmem:[#allocation9 + $0xe8] sm:$0xff]  ;;  %v960_v17 = vld [vmem:[#allocation9 + $0x3b8] sm:$0xff] }
 0x273   : > { %v1795_v32 = vadd.f32 %v1778_v23, %v1777_v22  ;;  %v1748_v37 = vrot.slane %v1690_v4, %v4850_v49  ;;  %v1692_v40 = vcombine.high %v1688_v57, %v1688_v57  ;;  %v1804_v44 = vadd.f32 %v1784_v25, %v1783_v24  ;;  %v4904_v57 = vld [vmem:[%s4788_s1 + $0x78] sm:$0xff]  ;;  %v855_v2 = vld [vmem:[#allocation9 + $0x70] sm:$0xff]  ;;  %v970_v22 = vld [vmem:[#allocation9 + $0x408] sm:$0xff] }
 0x274   : > { %v1720_v42 = vrot.slane %v1691_v30, %v4847_v48  ;;  %v1724_v43 = vrot.slane %v1691_v30, %v4850_v49  ;;  %v1801_v45 = vadd.f32 %v1782_v28, %v1781_v21  ;;  %v1785_v52 = vmul.f32 %v1744_v31, %v1637_v34  ;;  %v860_v4 = vld [vmem:[#allocation9 + $0x98] sm:$0xff]  ;;  %v875_v18 = vld [vmem:[#allocation9 + $0x110] sm:$0xff]  ;;  %v965_v21 = vld [vmem:[#allocation9 + $0x3e0] sm:$0xff] }
 0x275   : > { %1796 = vadd.xlane.f32.xlu1 %v1795_v32  ;;  %v1752_v46 = vrot.slane %v1692_v40, %v4847_v48  ;;  %v1756_v47 = vrot.slane %v1692_v40, %v4850_v49  ;;  %v1786_v53 = vmul.f32 %v1748_v37, %v1638_v35  ;;  %v3529_v1 = vpack.c.bf16 %v940_v0, %v935_v63  ;;  %v880_v19 = vld [vmem:[#allocation9 + $0x138] sm:$0xff]  ;;  %v885_v24 = vld [vmem:[#allocation9 + $0x160] sm:$0xff]  ;;  %v890_v25 = vld [vmem:[#allocation9 + $0x188] sm:$0xff] }
 0x276   : > { %1793 = vadd.xlane.f32.xlu0 %v1792_v26  ;;  %v1779_v50 = vmul.f32 %v1720_v42, %v4885_v29  ;;  %v1780_v51 = vmul.f32 %v1724_v43, %v4889_v33  ;;  %v3531_v6 = vpack.c.bf16 %v860_v4, %v855_v2  ;;  %v3533_v9 = vpack.c.bf16 %v950_v8, %v945_v7  ;;  %v975_v28 = vld [vmem:[#allocation9 + $0x430] sm:$0xff]  ;;  %v980_v30 = vld [vmem:[#allocation9 + $0x458] sm:$0xff]  ;;  %v985_v37 = vld [vmem:[#allocation9 + $0x480] sm:$0xff] }
 0x277   : > { %v1787_v59 = vmul.f32 %v1752_v46, %v4901_v56  ;;  %v1788_v60 = vmul.f32 %v1756_v47, %v4904_v57  ;;  %v1807_v61 = vadd.f32 %v1786_v53, %v1785_v52  ;;  %3530 = vmatprep.subr.bf16.mxu0 %v3529_v1  ;;  %v3535_v14 = vpack.c.bf16 %v870_v13, %v865_v10  ;;  %v895_v32 = vld [vmem:[#allocation9 + $0x1b0] sm:$0xff]  ;;  %v900_v34 = vld [vmem:[#allocation9 + $0x1d8] sm:$0xff]  ;;  %v990_v40 = vld [vmem:[#allocation9 + $0x4a8] sm:$0xff] }
 0x278   : > { %v1798_v58 = vadd.f32 %v1780_v51, %v1779_v50  ;;  %3532 = vmatpush3.bf16.msra.mxu0 %v3531_v6  ;;  %v3537_v16 = vpack.c.bf16 %v960_v17, %v955_v15  ;;  %v3539_v20 = vpack.c.bf16 %v880_v19, %v875_v18  ;;  %v3541_v23 = vpack.c.bf16 %v970_v22, %v965_v21  ;;  %v905_v42 = vld [vmem:[#allocation9 + $0x200] sm:$0xff]  ;;  %v1000_v46 = vld [vmem:[#allocation9 + $0x4f8] sm:$0xff]  ;;  %v915_v51 = vld [vmem:[#allocation9 + $0x250] sm:$0xff] }
 0x279   : > { %1805 = vadd.xlane.f32.xlu1 %v1804_v44  ;;  %v1810_v62 = vadd.f32 %v1788_v60, %v1787_v59  ;;  %3534 = vmatprep.subr.bf16.mxu0 %v3533_v9  ;;  %v3543_v26 = vpack.c.bf16 %v890_v25, %v885_v24  ;;  %v3545_v31 = vpack.c.bf16 %v980_v30, %v975_v28  ;;  %v910_v44 = vld [vmem:[#allocation9 + $0x228] sm:$0xff]  ;;  %v920_v52 = vld [vmem:[#allocation9 + $0x278] sm:$0xff]  ;;  %v1242_v0 = vld [vmem:[#allocation12 + $0x20] sm:$0xff]  ;;  %v4945_v21 = vand.u32 127, %v1648_v36 }
 0x27a   : > { %1802 = vadd.xlane.f32.xlu0 %v1801_v45  ;;  %v3547_v35 = vpack.c.bf16 %v900_v34, %v895_v32  ;;  %v3549_v43 = vpack.c.bf16 %v990_v40, %v985_v37  ;;  %v995_v45 = vld [vmem:[#allocation9 + $0x4d0] sm:$0xff]  ;;  %v3551_v47 = vpack.c.bf16 %v910_v44, %v905_v42  ;;  %v3555_v53 = vpack.c.bf16 %v920_v52, %v915_v51  ;;  %v1239_v59 = vld [vmem:[#allocation12 + $0x8] sm:$0xff]  ;;  %v1245_v6 = vld [vmem:[#allocation12 + $0x38] sm:$0xff] }
 0x27b   : > { %v3553_v50 = vpack.c.bf16 %v1000_v46, %v995_v45  ;;  %v1243_v1 = vld [vmem:[#allocation12 + $0x28] sm:$0xff]  ;;  %v1244_v4 = vld [vmem:[#allocation12 + $0x30] sm:$0xff]  ;;  %v1246_v7 = vld [vmem:[#allocation12 + $0x40] sm:$0xff]  ;;  %5569 = vst [vmem:[#allocation36_spill] sm:$0xff] %v4945_v21  ;;  %v4949_v22 = vsub.s32 %v4945_v21, %v4836_v38 }
 0x27c   : > { %3536 = vmatpush3.bf16.msra.mxu0 %v3535_v14  ;;  %v4919_v2 = vpack.c.bf16 %v1243_v1, %v1242_v0  ;;  %v1247_v8 = vld [vmem:[#allocation12 + $0x48] sm:$0xff]  ;;  %v1248_v10 = vld [vmem:[#allocation12 + $0x50] sm:$0xff]  ;;  %v1249_v13 = vld [vmem:[#allocation12 + $0x58] sm:$0xff] }
 0x27d   : > { %1799 = vadd.xlane.f32.xlu1 %v1798_v58  ;;  %3538 = vmatprep.subr.bf16.mxu0 %v3537_v16  ;;  %v1238_v58 = vld [vmem:[#allocation12] sm:$0xff]  ;;  %v4927_v9 = vpack.c.bf16 %v1247_v8, %v1246_v7  ;;  %v4931_v14 = vpack.c.bf16 %v1249_v13, %v1248_v10  ;;  %v1251_v17 = vld [vmem:[#allocation12 + $0x68] sm:$0xff]  ;;  %v1252_v18 = vld [vmem:[#allocation12 + $0x70] sm:$0xff] }
 0x27e   : > { %1808 = vadd.xlane.f32.xlu0 %v1807_v61  ;;  %v4908_v60 = vpack.c.bf16 %v1239_v59, %v1238_v58  ;;  %v1240_v61 = vld [vmem:[#allocation12 + $0x10] sm:$0xff]  ;;  %v1250_v15 = vld [vmem:[#allocation12 + $0x60] sm:$0xff]  ;;  %v1253_v19 = vld [vmem:[#allocation12 + $0x78] sm:$0xff]  ;;  %v4334_v59 = vmov 0  }
 0x27f   : > { %v4935_v16 = vpack.c.bf16 %v1251_v17, %v1250_v15  ;;  %3861 = vset.pattern.permute.xlu0 %v4334_v59  ;;  %3860 = vset.pattern.permute.xlu1 %v4334_v59  ;;  %v1412_v7 = vld [vmem:[#allocation14 + $0x10] sm:$0xff]  ;;  %v1413_v8 = vld [vmem:[#allocation14 + $0x18] sm:$0xff]  ;;  %v1415_v10 = vld [vmem:[#allocation14 + $0x28] sm:$0xff]  ;;  %v1893_v59 = vsub.s32 4, %v4836_v38 }
 0x280   : > { %3540 = vmatpush3.bf16.msra.mxu0 %v3539_v20  ;;  %v4940_v20 = vpack.c.bf16 %v1253_v19, %v1252_v18  ;;  %v1416_v13 = vld [vmem:[#allocation14 + $0x30] sm:$0xff]  ;;  %v1418_v17 = vld [vmem:[#allocation14 + $0x40] sm:$0xff] }
 0x281   : > { %1811 = vadd.xlane.f32.xlu1 %v1810_v62  ;;  %3542 = vmatprep.subr.bf16.mxu0 %v3541_v23  ;;  %v1241_v62 = vld [vmem:[#allocation12 + $0x18] sm:$0xff]  ;;  %v1420_v19 = vld [vmem:[#allocation14 + $0x50] sm:$0xff] }
 0x282   : > { %v4913_v63 = vpack.c.bf16 %v1241_v62, %v1240_v61  ;;  %v3058_v61 = vld [vmem:[%s5467_s6] ss:$0 sm:$0xff] }
 0x284   : > { %3544 = vmatpush3.bf16.msra.mxu0 %v3543_v26 }
 0x285   : > { %3546 = vmatprep.subr.bf16.mxu0 %v3545_v31 }
 0x288   : > { %3548 = vmatpush3.bf16.msra.mxu0 %v3547_v35 }
 0x289   : > { %3550 = vmatprep.subr.bf16.mxu0 %v3549_v43 }
 0x28c   : > { %3552 = vmatpush3.bf16.msra.mxu0 %v3551_v47 }
 0x28d   : > { %3554 = vmatprep.subr.bf16.mxu0 %v3553_v50 }
 0x290   : > { %3556 = vmatpush3.bf16.msra.mxu0 %v3555_v53 }
 0x291   : > { %3581 = vmatprep.subr.bf16.mxu0 %v4330_v5 }
 0x293   : > { %1208 = vmatmul.mubr.f32.vlgmr.msra.gmra.mrb[2].mxu0 %v4819_v3  ;;  %v4923_v3 = vpack.c.bf16 %v1245_v6, %v1244_v4  ;;  %v1411_v6 = vld [vmem:[#allocation14 + $0x8] sm:$0xff] }
 0x294   : > { %3583 = vmatpush3.bf16.msra.mxu0 %v4908_v60  ;;  %3324 = vmatprep.mubr.msk.f32.mxu0 %vm4331_vm0, %v4332_v27 }
 0x295   : > { %3584 = vmatprep.subr.bf16.mxu0 %v4330_v5 }
 0x298   : > { %3586 = vmatpush3.bf16.msra.mxu0 %v4913_v63 }
 0x299   : > { %3587 = vmatprep.subr.bf16.mxu0 %v4330_v5 }
 0x29c   : > { %3589 = vmatpush3.bf16.msra.mxu0 %v4919_v2 }
 0x29d   : > { %3590 = vmatprep.subr.bf16.mxu0 %v4330_v5 }
 0x2a0   : > { %3592 = vmatpush3.bf16.msra.mxu0 %v4923_v3 }
 0x2a1   : > { %3593 = vmatprep.subr.bf16.mxu0 %v4330_v5 }
 0x2a4   : > { %3595 = vmatpush3.bf16.msra.mxu0 %v4927_v9 }
 0x2a5   : > { %3596 = vmatprep.subr.bf16.mxu0 %v4330_v5 }
 0x2a8   : > { %3598 = vmatpush3.bf16.msra.mxu0 %v4931_v14 }
 0x2a9   : > { %3599 = vmatprep.subr.bf16.mxu0 %v4330_v5 }
 0x2ac   : > { %3601 = vmatpush3.bf16.msra.mxu0 %v4935_v16 }
 0x2ad   : > { %3602 = vmatprep.subr.bf16.mxu0 %v4330_v5 }
 0x2b0   : > { %3604 = vmatpush3.bf16.msra.mxu0 %v4940_v20 }
 0x2b1   : > { %3629 = vmatprep.subr.bf16.mxu0 %v4330_v5 }
 0x2ff   : > { %v4951_v23 = vpop.xlane.xlu0 %1790 }
 0x300   : > { %v1826_v25 = vrot.slane %v4951_v23, %v4949_v22 }
 0x302   : > { %v4953_v24 = vpop.xlane.xlu1 %1796 }
 0x303   : > { %v4957_v26 = vpop.xlane.xlu0 %1793  ;;  %v1834_v36 = vrot.slane %v4953_v24, %v4949_v22 }
 0x304   : > { %v1830_v28 = vrot.slane %v4957_v26, %v4949_v22 }
 0x306   : > { %v4963_v30 = vpop.xlane.xlu1 %1805  ;;  %v1856_v31 = vsel %vm1855_vm1, %v1830_v28, %v1826_v25  ;;  %v1421_v25 = vld [vmem:[#allocation14 + $0x58] sm:$0xff] }
 0x307   : > { %v4966_v32 = vpop.xlane.xlu0 %1802  ;;  %v1858_v35 = vsel %vm1857_vm2, %v1834_v36, %v1856_v31  ;;  %v1846_v40 = vrot.slane %v4963_v30, %v4949_v22  ;;  %v3621_v28 = vpack.c.bf16 %v1421_v25, %v1420_v19 }
 0x308   : > { %v1842_v34 = vrot.slane %v4966_v32, %v4949_v22 }
 0x30a   : > { %v4971_v37 = vpop.xlane.xlu1 %1799 }
 0x30b   : > { %v1838_v42 = vrot.slane %v4971_v37, %v4949_v22  ;;  %v4977_v43 = vpop.xlane.xlu0 %1808 }
 0x30c   : > { %v1850_v44 = vrot.slane %v4977_v43, %v4949_v22 }
 0x30d   : > { %v1860_v45 = vsel %vm1859_vm3, %v1838_v42, %v1858_v35  ;;  %v1423_v35 = vld [vmem:[#allocation14 + $0x68] sm:$0xff] }
 0x30e   : > { %v4982_v46 = vpop.xlane.xlu1 %1811  ;;  %v1862_v47 = vsel %vm1861_vm4, %v1842_v34, %v1860_v45  ;;  %v1422_v34 = vld [vmem:[#allocation14 + $0x60] sm:$0xff] }
 0x30f   : > { %v1854_v50 = vrot.slane %v4982_v46, %v4949_v22  ;;  %v1864_v51 = vsel %vm1863_vm5, %v1846_v40, %v1862_v47  ;;  %v1424_v40 = vld [vmem:[#allocation14 + $0x70] sm:$0xff]  ;;  %v3624_v42 = vpack.c.bf16 %v1423_v35, %v1422_v34  ;;  %v1885_v47 = vsub.s32 2, %v4836_v38  ;;  %v3059_v35 = vld [vmem:[%s5570_s12] ss:$0 sm:$0xff] }
 0x310   : > { %v1866_v52 = vsel %vm1865_vm6, %v1850_v44, %v1864_v51  ;;  %v1425_v44 = vld [vmem:[#allocation14 + $0x78] sm:$0xff]  ;;  %v1500_v34 = vmul.f32 %v4838_v39, %v4838_v39 }
 0x311   : > { %v1868_v53 = vsel %vm1867_vm7, %v1854_v50, %v1866_v52  ;;  %v3627_v45 = vpack.c.bf16 %v1425_v44, %v1424_v40  ;;  %v1889_v50 = vsub.s32 3, %v4836_v38 }
 0x312   : > { %v1871_v58 = vsel %vm1870_vm8, %v1868_v53, -inf }
 0x313   : > { %1872 = vmax.xlane.f32.xlu0 %v1871_v58 }
 0x338   : > { %v1327_v62 = vpop.f32.mrb[2].mxu1 }
 0x339   : > { %v4994_v0 = vadd.f32 %v3058_v61, %v1327_v62  ;;  %v3291_v1 = vpop.f32.mrb[3].mxu1 }
 0x33b   : > { %v4997_v4 = vmax.f32 %v4994_v0, 0.0  ;;  %vm1496_vm9 = vcmp.gt.f32.partialorder %v4994_v0, 0.0 }
 0x33d   : > { %3325 = vmatmul.mubr.f32.vlgmr.msra.gmra.mrb[4].mxu0 %v4997_v4 }
 0x33e   : > { %3631 = vmatpush3.bf16.msra.mxu0 %v4908_v60  ;;  %3394 = vmatprep.mubr.msk.f32.mxu0 %vm4331_vm0, %v4332_v27  ;;  %v1410_v60 = vld [vmem:[#allocation14] sm:$0xff] }
 0x33f   : > { %3632 = vmatprep.subr.bf16.mxu0 %v4330_v5 }
 0x342   : > { %3634 = vmatpush3.bf16.msra.mxu0 %v4913_v63  ;;  %v3606_v63 = vpack.c.bf16 %v1411_v6, %v1410_v60 }
 0x343   : > { %3635 = vmatprep.subr.bf16.mxu0 %v4330_v5 }
 0x344   : > { %3607 = vmatpush3.bf16.msra.mxu1 %v3606_v63  ;;  %v1897_v63 = vsub.s32 5, %v4836_v38 }
 0x345   : > { %3608 = vmatprep.subr.bf16.mxu1 %v4330_v5 }
 0x346   : > { %3637 = vmatpush3.bf16.msra.mxu0 %v4919_v2  ;;  %v3609_v2 = vpack.c.bf16 %v1413_v8, %v1412_v7 }
 0x347   : > { %3638 = vmatprep.subr.bf16.mxu0 %v4330_v5 }
 0x348   : > { %3610 = vmatpush3.bf16.msra.mxu1 %v3609_v2 }
 0x349   : > { %3611 = vmatprep.subr.bf16.mxu1 %v4330_v5 }
 0x34a   : > { %3640 = vmatpush3.bf16.msra.mxu0 %v4923_v3  ;;  %v1414_v3 = vld [vmem:[#allocation14 + $0x20] sm:$0xff] }
 0x34b   : > { %3641 = vmatprep.subr.bf16.mxu0 %v4330_v5 }
 0x34e   : > { %3643 = vmatpush3.bf16.msra.mxu0 %v4927_v9  ;;  %v3612_v9 = vpack.c.bf16 %v1415_v10, %v1414_v3  ;;  %v1901_v3 = vsub.s32 6, %v4836_v38  ;;  %v1905_v10 = vsub.s32 7, %v4836_v38  ;;  %v2220_v38 = vld [vmem:[#allocation15 + $0x20] sm:$0xff] }
 0x34f   : > { %3644 = vmatprep.subr.bf16.mxu0 %v4330_v5 }
 0x350   : > { %3613 = vmatpush3.bf16.msra.mxu1 %v3612_v9 }
 0x351   : > { %3614 = vmatprep.subr.bf16.mxu1 %v4330_v5 }
 0x352   : > { %3646 = vmatpush3.bf16.msra.mxu0 %v4931_v14  ;;  %v1417_v14 = vld [vmem:[#allocation14 + $0x38] sm:$0xff] }
 0x353   : > { %3647 = vmatprep.subr.bf16.mxu0 %v4330_v5  ;;  %v3615_v15 = vpack.c.bf16 %v1417_v14, %v1416_v13 }
 0x355   : > { %3616 = vmatpush3.bf16.msra.mxu1 %v3615_v15 }
 0x356   : > { %3649 = vmatpush3.bf16.msra.mxu0 %v4935_v16  ;;  %v1419_v16 = vld [vmem:[#allocation14 + $0x48] sm:$0xff]  ;;  %3617 = vmatprep.subr.bf16.mxu1 %v4330_v5 }
 0x357   : > { %3650 = vmatprep.subr.bf16.mxu0 %v4330_v5  ;;  %v3618_v18 = vpack.c.bf16 %v1419_v16, %v1418_v17 }
 0x359   : > { %3619 = vmatpush3.bf16.msra.mxu1 %v3618_v18 }
 0x35a   : > { %3652 = vmatpush3.bf16.msra.mxu0 %v4940_v20  ;;  %3620 = vmatprep.subr.bf16.mxu1 %v4330_v5 }
 0x35d   : > { %3622 = vmatpush3.bf16.msra.mxu1 %v3621_v28 }
 0x35e   : > { %3623 = vmatprep.subr.bf16.mxu1 %v4330_v5 }
 0x361   : > { %3625 = vmatpush3.bf16.msra.mxu1 %v3624_v42 }
 0x362   : > { %3626 = vmatprep.subr.bf16.mxu1 %v4330_v5 }
 0x365   : > { %3628 = vmatpush3.bf16.msra.mxu1 %v3627_v45 }
 0x366   : > { %v3116_v20 = vpop.f32.mrb[2].mxu0 }
 0x367   : > { %v3117_v36 = vpop.f32.mrb[3].mxu0 }
 0x368   : > { %v5023_v31 = vadd.f32 %v3117_v36, %v3116_v20 }
 0x3a0   : > { %v1873_v51 = vpop.xlane.xlu0 %1872 }
 0x3a1   : > { %v1878_v52 = vrot.slane %v1873_v51, %v4847_v48  ;;  %v1882_v53 = vrot.slane %v1873_v51, %v4850_v49  ;;  %v1886_v58 = vrot.slane %v1873_v51, %v1885_v47  ;;  %v1890_v61 = vrot.slane %v1873_v51, %v1889_v50 }
 0x3a2   : > { %v1894_v7 = vrot.slane %v1873_v51, %v1893_v59  ;;  %v1902_v9 = vrot.slane %v1873_v51, %v1901_v3 }
 0x3a3   : > { %v1915_v5 = vsub.f32 %v4951_v23, %v1878_v52  ;;  %v1916_v62 = vsub.f32 %v4957_v26, %v1882_v53  ;;  %v1917_v1 = vsub.f32 %v4953_v24, %v1886_v58  ;;  %v1918_v8 = vsub.f32 %v4971_v37, %v1890_v61 }
 0x3a4   : > { %v1898_v23 = vrot.slane %v1873_v51, %v1897_v63  ;;  %v1919_v26 = vsub.f32 %v4966_v32, %v1894_v7  ;;  %v1906_v32 = vrot.slane %v1873_v51, %v1905_v10  ;;  %v1921_v17 = vsub.f32 %v4977_v43, %v1902_v9 }
 0x3a5   : > { %v1923_v60 = vmul.f32 1.442695, %v1915_v5  ;;  %v1925_v6 = vmul.f32 1.442695, %v1916_v62  ;;  %v1927_v2 = vmul.f32 1.442695, %v1917_v1 }
 0x3a6   : > { %v1929_v24 = vmul.f32 1.442695, %v1918_v8  ;;  %v1920_v13 = vsub.f32 %v4963_v30, %v1898_v23  ;;  %v1931_v37 = vmul.f32 1.442695, %v1919_v26  ;;  %v1922_v30 = vsub.f32 %v4982_v46, %v1906_v32 }
 0x3a7   : > { %3870 = vpow2.f32 %v1923_v60  ;;  %v1935_v19 = vmul.f32 1.442695, %v1921_v17 }
 0x3a8   : > { %3872 = vpow2.f32 %v1925_v6  ;;  %v1933_v16 = vmul.f32 1.442695, %v1920_v13  ;;  %v1937_v28 = vmul.f32 1.442695, %v1922_v30 }
 0x3a9   : > { %3874 = vpow2.f32 %v1927_v2 }
 0x3aa   : > { %3876 = vpow2.f32 %v1929_v24 }
 0x3ab   : > { %3878 = vpow2.f32 %v1931_v37 }
 0x3ac   : > { %3880 = vpow2.f32 %v1933_v16 }
 0x3ad   : > { %3882 = vpow2.f32 %v1935_v19 }
 0x3ae   : > { %3884 = vpow2.f32 %v1937_v28  ;;  %v1501_v28 = vmul.f32 %v4997_v4, %v4997_v4 }
 0x3b1   : > { %v5050_v14 = vpop.eup %3870 }
 0x3b2   : > { %v5052_v15 = vpop.eup %3872  ;;  %1948 = vperm.xlu1 %3860, %v5050_v14  }
 0x3b3   : > { %1951 = vperm.xlu0 %3861, %v5052_v15   ;;  %v5059_v18 = vpop.eup %3874 }
 0x3b4   : > { %v5063_v25 = vpop.eup %3876 }
 0x3b5   : > { %v5066_v20 = vpop.eup %3878 }
 0x3b6   : > { %1954 = vperm.xlu1 %3860, %v5059_v18   ;;  %v3881_v43 = vpop.eup %3880 }
 0x3b7   : > { %v5069_v36 = vpop.eup %3882 }
 0x3b8   : > { %v3885_v46 = vpop.eup %3884 }
 0x3ba   : > { %1957 = vperm.xlu1 %3860, %v5063_v25  }
 0x3be   : > { %1960 = vperm.xlu1 %3860, %v5066_v20  }
 0x3c2   : > { %1963 = vperm.xlu1 %3860, %v3881_v43  }
 0x3c6   : > { %1966 = vperm.xlu1 %3860, %v5069_v36  }
 0x3ca   : > { %1969 = vperm.xlu1 %3860, %v3885_v46  }
 0x3d2   : > { %1504 = vadd.xlane.f32.xlu0 %v1500_v34 }
 0x410   : > { %v1404_v40 = vpop.f32.mrb[4].mxu0 }
 0x411   : > { %v1405_v42 = vadd.f32 %v3059_v35, %v1404_v40  ;;  %v3326_v44 = vpop.f32.mrb[5].mxu0 }
 0x412   : > { %v3060_v44 = vsel %vm1496_vm9, 1.0, %v4332_v27 }
 0x413   : > { %v1408_v45 = vsub.f32 %v1405_v42, %v4840_v41 }
 0x415   : > { %v5078_v51 = vmul.f32 0.015625, %v1408_v45  ;;  %v1503_v52 = vmul.f32 %v1408_v45, %v1408_v45 }
 0x417   : > { %1510 = vadd.xlane.f32.xlu0 %v1503_v52  ;;  %3360 = vmatmul.mubr.f32.vlgmr.msra.gmra.mrb[4].mxu1 %v5078_v51 }
 0x431   : > { %v1949_v53 = vpop.permute.xlu1 %1948 }
 0x432   : > { %v1952_v5 = vpop.permute.xlu0 %1951  ;;  %v1974_v60 = vrot.slane %v1949_v53, %v4949_v22 }
 0x433   : > { %v1978_v1 = vrot.slane %v1952_v5, %v4949_v22 }
 0x435   : > { %v1955_v58 = vpop.permute.xlu1 %1954  ;;  %v2003_v2 = vsel %vm1855_vm1, %v1978_v1, %v1974_v60  ;;  %v2233_v1 = vld [vmem:[#allocation15 + $0x88] sm:$0xff]  ;;  %v2216_v60 = vld [vmem:[#allocation15] sm:$0xff] }
 0x436   : > { %v1982_v6 = vrot.slane %v1955_v58, %v4949_v22 }
 0x438   : > { %v2004_v26 = vsel %vm1857_vm2, %v1982_v6, %v2003_v2 }
 0x439   : > { %v1958_v61 = vpop.permute.xlu1 %1957 }
 0x43a   : > { %v1986_v41 = vrot.slane %v1958_v61, %v4949_v22 }
 0x43c   : > { %v2005_v9 = vsel %vm1859_vm3, %v1986_v41, %v2004_v26 }
 0x43d   : > { %v1961_v39 = vpop.permute.xlu1 %1960 }
 0x43e   : > { %v1990_v7 = vrot.slane %v1961_v39, %v4949_v22 }
 0x440   : > { %v2006_v13 = vsel %vm1861_vm4, %v1990_v7, %v2005_v9  ;;  %v2218_v7 = vld [vmem:[#allocation15 + $0x10] sm:$0xff] }
 0x441   : > { %v1964_v62 = vpop.permute.xlu1 %1963 }
 0x442   : > { %v1994_v23 = vrot.slane %v1964_v62, %v4949_v22 }
 0x444   : > { %v2007_v32 = vsel %vm1863_vm5, %v1994_v23, %v2006_v13  ;;  %v2236_v23 = vld [vmem:[#allocation15 + $0xa0] sm:$0xff]  ;;  %v2238_v13 = vld [vmem:[#allocation15 + $0xb0] sm:$0xff] }
 0x445   : > { %v1967_v8 = vpop.permute.xlu1 %1966 }
 0x446   : > { %v1998_v24 = vrot.slane %v1967_v8, %v4949_v22 }
 0x448   : > { %v2008_v16 = vsel %vm1865_vm6, %v1998_v24, %v2007_v32  ;;  %v3057_v24 = vld [vmem:[%s5571_s16] ss:$0 sm:$0xff]  ;;  %s2783_s16 = scalar_lea.sflag [#allocation21], %s4776_s23 }
 0x449   : > { %v1970_v37 = vpop.permute.xlu1 %1969 }
 0x44a   : > { %v2002_v17 = vrot.slane %v1970_v37, %v4949_v22  ;;  %v2239_v37 = vld [vmem:[#allocation15 + $0xb8] sm:$0xff] }
 0x44b   : > { %v3665_v32 = vpack.c.bf16 %v2239_v37, %v2238_v13 }
 0x44c   : > { %v2009_v30 = vsel %vm1867_vm7, %v2002_v17, %v2008_v16  ;;  %v2222_v17 = vld [vmem:[#allocation15 + $0x30] sm:$0xff]  ;;  %v2223_v16 = vld [vmem:[#allocation15 + $0x38] sm:$0xff] }
 0x44d   : > { %v2011_v19 = vsel %vm1870_vm8, %v2009_v30, 0.0  ;;  %v3667_v30 = vpack.c.bf16 %v2223_v16, %v2222_v17 }
 0x44e   : > { %2012 = vadd.xlane.f32.xlu1 %v2011_v19  ;;  %v2240_v19 = vld [vmem:[#allocation15 + $0xc0] sm:$0xff] }
 0x452   : > { %1506 = vadd.xlane.f32.xlu1 %v1501_v28  ;;  %v2241_v28 = vld [vmem:[#allocation15 + $0xc8] sm:$0xff] }
 0x4db   : > { %v2013_v34 = vpop.xlane.xlu1 %2012 }
 0x4dc   : > { %3886 = vrcp.f32 %v2013_v34 }
 0x4e6   : > { %v3887_v35 = vpop.eup %3886 }
 0x4e7   : > { %v2019_v40 = vrot.slane %v3887_v35, %v4847_v48  ;;  %v2031_v45 = vrot.slane %v3887_v35, %v1889_v50  ;;  %v2039_v48 = vrot.slane %v3887_v35, %v1897_v63  ;;  %v2047_v27 = vrot.slane %v3887_v35, %v1905_v10 }
 0x4e8   : > { %v2023_v39 = vrot.slane %v3887_v35, %v4850_v49  ;;  %v2027_v62 = vrot.slane %v3887_v35, %v1885_v47  ;;  %v2035_v63 = vrot.slane %v3887_v35, %v1893_v59  ;;  %v2043_v49 = vrot.slane %v3887_v35, %v1901_v3  ;;  %v2234_v47 = vld [vmem:[#allocation15 + $0x90] sm:$0xff]  ;;  %v2219_v59 = vld [vmem:[#allocation15 + $0x18] sm:$0xff]  ;;  %v2221_v3 = vld [vmem:[#allocation15 + $0x28] sm:$0xff] }
 0x4e9   : > { %v2056_v22 = vmul.f32 %v5050_v14, %v2019_v40  ;;  %v2059_v61 = vmul.f32 %v5063_v25, %v2031_v45  ;;  %v2061_v14 = vmul.f32 %v3881_v43, %v2039_v48  ;;  %v2063_v50 = vmul.f32 %v3885_v46, %v2047_v27  ;;  %v2232_v43 = vld [vmem:[#allocation15 + $0x80] sm:$0xff]  ;;  %v2217_v46 = vld [vmem:[#allocation15 + $0x8] sm:$0xff] }
 0x4ea   : > { %v1492_v42 = vpop.f32.mrb[4].mxu1  ;;  %v2057_v5 = vmul.f32 %v5052_v15, %v2023_v39  ;;  %v2058_v25 = vmul.f32 %v5059_v18, %v2027_v62  ;;  %v3653_v10 = vpack.c.bf16 %v2233_v1, %v2232_v43  ;;  %v2060_v6 = vmul.f32 %v5066_v20, %v2035_v63  ;;  %v2235_v18 = vld [vmem:[#allocation15 + $0x98] sm:$0xff]  ;;  %v2237_v20 = vld [vmem:[#allocation15 + $0xa8] sm:$0xff]  ;;  %v2224_v40 = vld [vmem:[#allocation15 + $0x40] sm:$0xff] }
 0x4eb   : > { %v5105_v52 = vmul.f32 %v3060_v44, %v1492_v42  ;;  %v3361_v53 = vpop.f32.mrb[5].mxu1  ;;  %2066 = vperm.xlu0 %3861, %v2056_v22   ;;  %v3655_v15 = vpack.c.bf16 %v2217_v46, %v2216_v60  ;;  %v3657_v41 = vpack.c.bf16 %v2235_v18, %v2234_v47  ;;  %v2062_v8 = vmul.f32 %v5069_v36, %v2043_v49  ;;  %v2225_v22 = vld [vmem:[#allocation15 + $0x48] sm:$0xff]  ;;  %v2243_v44 = vld [vmem:[#allocation15 + $0xd8] sm:$0xff]  ;;  %v2244_v48 = vld [vmem:[#allocation15 + $0xe0] sm:$0xff]  ;;  %v1505_v49 = vpop.xlane.xlu0 %1504 }
 0x4ec   : > { %3654 = vmatprep.subr.bf16.mxu1 %v3653_v10  ;;  %v3659_v2 = vpack.c.bf16 %v2219_v59, %v2218_v7  ;;  %v3661_v26 = vpack.c.bf16 %v2237_v20, %v2236_v23  ;;  %v3663_v9 = vpack.c.bf16 %v2221_v3, %v2220_v38  ;;  %v5129_v36 = vadd.f32 %v5023_v31, %v3057_v24  ;;  %v2242_v31 = vld [vmem:[#allocation15 + $0xd0] sm:$0xff]  ;;  %v2229_v39 = vld [vmem:[#allocation15 + $0x68] sm:$0xff]  ;;  %v2231_v43 = vld [vmem:[#allocation15 + $0x78] sm:$0xff] }
 0x4ed   : > { %v1502_v58 = vmul.f32 %v5105_v52, %v5105_v52  ;;  %3656 = vmatpush3.bf16.msra.mxu1 %v3655_v15  ;;  %v3669_v35 = vpack.c.bf16 %v2241_v28, %v2240_v19  ;;  %v3671_v42 = vpack.c.bf16 %v2225_v22, %v2224_v40  ;;  %v3673_v45 = vpack.c.bf16 %v2243_v44, %v2242_v31  ;;  %v2226_v53 = vld [vmem:[#allocation15 + $0x50] sm:$0xff]  ;;  %v2535_v60 = vld [vmem:[#allocation17 + $0x80] sm:$0xff]  ;;  %v2536_v46 = vld [vmem:[#allocation17 + $0x88] sm:$0xff] }
 0x4ee   : > { %3658 = vmatprep.subr.bf16.mxu1 %v3657_v41  ;;  %v2685_v34 = vmul.f32 %v5129_v36, %v5129_v36  ;;  %v2230_v63 = vld [vmem:[#allocation15 + $0x70] sm:$0xff]  ;;  %v5134_v15 = vld [vmem:[%s4795_s14] sm:$0xff]  ;;  %v5137_v47 = vld [vmem:[%s4795_s14 + $0x8] sm:$0xff] }
 0x4ef   : > { %1508 = vadd.xlane.f32.xlu1 %v1502_v58  ;;  %2081 = vperm.xlu0 %3861, %v2059_v61   ;;  %v2227_v58 = vld [vmem:[#allocation15 + $0x58] sm:$0xff]  ;;  %v3683_v10 = vpack.c.bf16 %v2231_v43, %v2230_v63  ;;  %v5139_v18 = vpop.xlane.xlu0 %1510  ;;  %v2373_v41 = vcombine.high %v5134_v15, %v5134_v15  ;;  %v2374_v7 = vcombine.high %v5137_v47, %v5137_v47  ;;  %v5146_v59 = vld [vmem:[%s4795_s14 + $0x10] sm:$0xff] }
 0x4f0   : > { %v3675_v61 = vpack.c.bf16 %v2227_v58, %v2226_v53  ;;  %v2375_v20 = vcombine.high %v5146_v59, %v5146_v59  ;;  %v5172_v22 = vld [vmem:[%s4795_s14 + $0x30] sm:$0xff] }
 0x4f1   : > { %3660 = vmatpush3.bf16.msra.mxu1 %v3659_v2  ;;  %v2397_v23 = vsel %vm2389_vm10, %v2373_v41, 0.0  ;;  %v2411_v38 = vsel %vm2389_vm10, %v2374_v7, 0.0  ;;  %v5186_v7 = vadd.f32 1.0, %v1505_v49 }
 0x4f2   : > { %3662 = vmatprep.subr.bf16.mxu1 %v3661_v26  ;;  %v2398_v13 = vrot.slane %v2397_v23, 4  ;;  %v2425_v16 = vsel %vm2389_vm10, %v2375_v20, 0.0 }
 0x4f3   : > { %2091 = vperm.xlu0 %3861, %v2061_v14   ;;  %v2245_v14 = vld [vmem:[#allocation15 + $0xe8] sm:$0xff]  ;;  %v2426_v31 = vrot.slane %v2425_v16, 4 }
 0x4f4   : > { %v3677_v27 = vpack.c.bf16 %v2245_v14, %v2244_v48 }
 0x4f5   : > { %3664 = vmatpush3.bf16.msra.mxu1 %v3663_v9  ;;  %v5160_v9 = vld [vmem:[%s4795_s14 + $0x20] sm:$0xff] }
 0x4f6   : > { %3666 = vmatprep.subr.bf16.mxu1 %v3665_v32  ;;  %v2412_v32 = vrot.slane %v2411_v38, 4 }
 0x4f7   : > { %2101 = vperm.xlu0 %3861, %v2063_v50   ;;  %v2228_v50 = vld [vmem:[#allocation15 + $0x60] sm:$0xff] }
 0x4f8   : > { %v3679_v62 = vpack.c.bf16 %v2229_v39, %v2228_v50 }
 0x4f9   : > { %3668 = vmatpush3.bf16.msra.mxu1 %v3667_v30 }
 0x4fa   : > { %3670 = vmatprep.subr.bf16.mxu1 %v3669_v35  ;;  %v2399_v35 = vadd.f32 %v2398_v13, %v2397_v23 }
 0x4fd   : > { %3672 = vmatpush3.bf16.msra.mxu1 %v3671_v42  ;;  %v2413_v42 = vadd.f32 %v2412_v32, %v2411_v38 }
 0x4fe   : > { %3674 = vmatprep.subr.bf16.mxu1 %v3673_v45 }
 0x4ff   : > { %v2414_v39 = vrot.slane %v2413_v42, 2 }
 0x500   : > { %2071 = vperm.xlu1 %3860, %v2057_v5   ;;  %v2246_v5 = vld [vmem:[#allocation15 + $0xf0] sm:$0xff] }
 0x501   : > { %3676 = vmatpush3.bf16.msra.mxu1 %v3675_v61 }
 0x502   : > { %3678 = vmatprep.subr.bf16.mxu1 %v3677_v27  ;;  %v2379_v27 = vcombine.high %v5172_v22, %v5172_v22 }
 0x504   : > { %2076 = vperm.xlu1 %3860, %v2058_v25   ;;  %v2247_v25 = vld [vmem:[#allocation15 + $0xf8] sm:$0xff]  ;;  %v2481_v20 = vsel %vm2389_vm10, %v2379_v27, 0.0 }
 0x505   : > { %v3681_v1 = vpack.c.bf16 %v2247_v25, %v2246_v5  ;;  %3680 = vmatpush3.bf16.msra.mxu1 %v3679_v62  ;;  %v2427_v5 = vadd.f32 %v2426_v31, %v2425_v16  ;;  %v1513_v25 = vmul.f32 0.00024414063, %v5139_v18 }
 0x507   : > { %3682 = vmatprep.subr.bf16.mxu1 %v3681_v1 }
 0x508   : > { %2086 = vperm.xlu1 %3860, %v2060_v6   ;;  %v3685_v6 = vpack.c.bf16 %v2536_v46, %v2535_v60 }
 0x509   : > { %3684 = vmatpush3.bf16.msra.mxu1 %v3683_v10 }
 0x50a   : > { %3686 = vmatprep.subr.bf16.mxu0 %v3685_v6  ;;  %v5183_v6 = vld [vmem:[%s4795_s14 + $0x38] sm:$0xff] }
 0x50b   : > { %v2380_v32 = vcombine.high %v5183_v6, %v5183_v6 }
 0x50c   : > { %2096 = vperm.xlu1 %3860, %v2062_v8   ;;  %v5149_v8 = vld [vmem:[%s4795_s14 + $0x18] sm:$0xff] }
 0x50d   : > { %v2376_v26 = vcombine.high %v5149_v8, %v5149_v8 }
 0x50f   : > { %v2439_v30 = vsel %vm2389_vm10, %v2376_v26, 0.0 }
 0x516   : > { %2697 = vadd.xlane.f32.xlu0 %v2685_v34  ;;  %v2377_v34 = vcombine.high %v5160_v9, %v5160_v9 }
 0x518   : > { %v2453_v48 = vsel %vm2389_vm10, %v2377_v34, 0.0 }
 0x519   : > { %v2454_v1 = vrot.slane %v2453_v48, 4 }
 0x56a   : > { %v2067_v2 = vpop.permute.xlu0 %2066 }
 0x56b   : > { %v2104_v3 = vmul.f32 %v2067_v2, %v4853_v54  ;;  %v2105_v24 = vmul.f32 %v2067_v2, %v4856_v55  ;;  %v5168_v54 = vld [vmem:[%s4795_s14 + $0x28] sm:$0xff]  ;;  %v1507_v55 = vpop.xlane.xlu1 %1506 }
 0x56c   : > { %v2378_v61 = vcombine.high %v5168_v54, %v5168_v54  ;;  %v1516_v14 = vadd.f32 1.0, %v1507_v55  ;;  %v2482_v55 = vrot.slane %v2481_v20, 4 }
 0x56d   : > { %v2120_v19 = vrot.slane %v2104_v3, 4  ;;  %v2126_v28 = vrot.slane %v2105_v24, 4 }
 0x56e   : > { %v2082_v37 = vpop.permute.xlu0 %2081  ;;  %v2467_v41 = vsel %vm2389_vm10, %v2378_v61, 0.0  ;;  %v1517_v2 = vmul.f32 %v1516_v14, %v1513_v25  ;;  %v3913_v25 = vld [vmem:[%s4788_s1 + $0x18] sm:$0xff] }
 0x56f   : > { %v2110_v17 = vmul.f32 %v2082_v37, %v4885_v29  ;;  %v2111_v40 = vmul.f32 %v2082_v37, %v4889_v33  ;;  %v2440_v29 = vrot.slane %v2439_v30, 4  ;;  %v2121_v45 = vadd.f32 %v2120_v19, %v2104_v3 }
 0x570   : > { %v2127_v53 = vadd.f32 %v2126_v28, %v2105_v24  ;;  %v2400_v33 = vrot.slane %v2399_v35, 2  ;;  %v5191_v3 = vadd.f32 %v2414_v39, %v2413_v42  ;;  %v5195_v19 = vadd.f32 %v2454_v1, %v2453_v48  ;;  %v3912_v39 = vld [vmem:[%s4788_s1 + $0x10] sm:$0xff] }
 0x571   : > { %v2156_v44 = vrot.slane %v2110_v17, 4  ;;  %v2162_v50 = vrot.slane %v2111_v40, 4  ;;  %v2441_v62 = vadd.f32 %v2440_v29, %v2439_v30  ;;  %v2122_v10 = vrot.slane %v2121_v45, 2 }
 0x572   : > { %v2092_v58 = vpop.permute.xlu0 %2091  ;;  %v2128_v60 = vrot.slane %v2127_v53, 2  ;;  %v5188_v23 = vadd.f32 %v2400_v33, %v2399_v35 }
 0x573   : > { %v2157_v63 = vadd.f32 %v2156_v44, %v2110_v17  ;;  %v2114_v43 = vmul.f32 %v2092_v58, %v4872_v11  ;;  %v2115_v46 = vmul.f32 %v2092_v58, %v4875_v12  ;;  %v2163_v26 = vadd.f32 %v2162_v50, %v2111_v40 }
 0x574   : > { %v2428_v11 = vrot.slane %v2427_v5, 2  ;;  %v2442_v24 = vrot.slane %v2441_v62, 2  ;;  %v2468_v17 = vrot.slane %v2467_v41, 4  ;;  %v2123_v49 = vadd.f32 %v2122_v10, %v2121_v45 }
 0x575   : > { %v2158_v13 = vrot.slane %v2157_v63, 2  ;;  %v2180_v37 = vrot.slane %v2114_v43, 4  ;;  %v2129_v16 = vadd.f32 %v2128_v60, %v2127_v53  ;;  %v2186_v30 = vrot.slane %v2115_v46, 4 }
 0x576   : > { %v2102_v38 = vpop.permute.xlu0 %2101  ;;  %v2164_v40 = vrot.slane %v2163_v26, 2  ;;  %v5201_v31 = vadd.f32 %v2428_v11, %v2427_v5  ;;  %v5203_v29 = vadd.f32 %v2442_v24, %v2441_v62  ;;  %v2124_v61 = vrot.slane %v2123_v49, 1 }
 0x577   : > { %v2118_v28 = vmul.f32 %v2102_v38, %v4901_v56  ;;  %v2159_v44 = vadd.f32 %v2158_v13, %v2157_v63  ;;  %v2181_v45 = vadd.f32 %v2180_v37, %v2114_v43  ;;  %v2119_v53 = vmul.f32 %v2102_v38, %v4904_v57 }
 0x578   : > { %v2130_v48 = vrot.slane %v2129_v16, 1  ;;  %v2187_v14 = vadd.f32 %v2186_v30, %v2115_v46  ;;  %v5211_v1 = vadd.f32 %v2164_v40, %v2163_v26  ;;  %v5213_v63 = vadd.f32 %v2468_v17, %v2467_v41  ;;  %v3914_v26 = vld [vmem:[%s4788_s1 + $0x20] sm:$0xff] }
 0x579   : > { %v2204_v33 = vrot.slane %v2118_v28, 4  ;;  %v5215_v57 = vadd.f32 %v2482_v55, %v2481_v20  ;;  %v5218_v43 = vsel %vm2389_vm10, %v2380_v32, 0.0  ;;  %v2160_v10 = vrot.slane %v2159_v44, 1 }
 0x57a   : > { %v2182_v60 = vrot.slane %v2181_v45, 2  ;;  %v2210_v46 = vrot.slane %v2119_v53, 4  ;;  %v5221_v38 = vadd.f32 %v2124_v61, %v2123_v49  ;;  %v5224_v41 = vadd.f32 %v2130_v48, %v2129_v16 }
 0x57b   : > { %v2188_v37 = vrot.slane %v2187_v14, 2  ;;  %v5226_v20 = vadd.f32 %v2204_v33, %v2118_v28  ;;  %v5230_v49 = vadd.f32 %v2160_v10, %v2159_v44  ;;  %v3916_v28 = vld [vmem:[%s4788_s1 + $0x40] sm:$0xff] }
 0x57c   : > { %v1509_v12 = vpop.xlane.xlu1 %1508  ;;  %v5232_v40 = vadd.f32 %v2182_v60, %v2181_v45 }
 0x57d   : > { %v1515_v34 = vmul.f32 %v5186_v7, %v1509_v12  ;;  %v3915_v12 = vld [vmem:[%s4788_s1 + $0x28] sm:$0xff] }
 0x57f   : > { %v1518_v58 = vadd.f32 %v1517_v2, %v1515_v34 }
 0x580   : > { %v2072_v56 = vpop.permute.xlu1 %2071 }
 0x581   : > { %v5207_v50 = vmul.f32 0.25, %v1518_v58  ;;  %v2106_v5 = vmul.f32 %v3912_v39, %v2072_v56  ;;  %v2107_v62 = vmul.f32 %v3913_v25, %v2072_v56  ;;  %v2211_v58 = vadd.f32 %v2210_v46, %v2119_v53 }
 0x582   : > { %v5235_v25 = vadd.f32 %v2188_v37, %v2187_v14 }
 0x583   : > { %3888 = vrsqrt.f32 %v5207_v50  ;;  %v2132_v11 = vrot.slane %v2106_v5, 4  ;;  %v2138_v24 = vrot.slane %v2107_v62, 4  ;;  %v2212_v53 = vrot.slane %v2211_v58, 2 }
 0x584   : > { %v2077_v2 = vpop.permute.xlu1 %2076  ;;  %vm1522_vm11 = vcmp.eq.f32.partialorder %v5207_v50, inf  ;;  %vm1524_vm12 = vcmp.eq.f32.partialorder %v5207_v50, 0.0 }
 0x585   : > { %v2108_v13 = vmul.f32 %v3914_v26, %v2077_v2  ;;  %v2109_v32 = vmul.f32 %v3915_v12, %v2077_v2  ;;  %v2133_v30 = vadd.f32 %v2132_v11, %v2106_v5  ;;  %v2139_v34 = vadd.f32 %v2138_v24, %v2107_v62  ;;  %v3917_v11 = vld [vmem:[%s4788_s1 + $0x48] sm:$0xff] }
 0x586   : > { %v2206_v2 = vrot.slane %v5226_v20, 2 }
 0x587   : > { %v2144_v55 = vrot.slane %v2108_v13, 4  ;;  %v2150_v56 = vrot.slane %v2109_v32, 4  ;;  %v2134_v61 = vrot.slane %v2133_v30, 2  ;;  %v2140_v48 = vrot.slane %v2139_v34, 2 }
 0x588   : > { %v2087_v16 = vpop.permute.xlu1 %2086 }
 0x589   : > { %v2145_v39 = vadd.f32 %v2144_v55, %v2108_v13  ;;  %v2112_v33 = vmul.f32 %v3916_v28, %v2087_v16  ;;  %v2151_v5 = vadd.f32 %v2150_v56, %v2109_v32  ;;  %v2113_v62 = vmul.f32 %v3917_v11, %v2087_v16  ;;  %v3919_v28 = vld [vmem:[%s4788_s1 + $0x68] sm:$0xff] }
 0x58a   : > { %v2135_v24 = vadd.f32 %v2134_v61, %v2133_v30  ;;  %v2141_v44 = vadd.f32 %v2140_v48, %v2139_v34  ;;  %v3918_v34 = vld [vmem:[%s4788_s1 + $0x60] sm:$0xff]  ;;  %s5583_s1 = sld [smem:[#allocation34_spill]] }
 0x58b   : > { %v2146_v45 = vrot.slane %v2145_v39, 2  ;;  %v2168_v10 = vrot.slane %v2112_v33, 4  ;;  %v2152_v60 = vrot.slane %v2151_v5, 2  ;;  %v2174_v46 = vrot.slane %v2113_v62, 4 }
 0x58c   : > { %v2097_v26 = vpop.permute.xlu1 %2096  ;;  %v2136_v13 = vrot.slane %v2135_v24, 1  ;;  %v2142_v14 = vrot.slane %v2141_v44, 1 }
 0x58d   : > { %v2147_v37 = vadd.f32 %v2146_v45, %v2145_v39  ;;  %v2169_v12 = vadd.f32 %v2168_v10, %v2112_v33  ;;  %v3889_v55 = vpop.eup %3888  ;;  %v2153_v32 = vadd.f32 %v2152_v60, %v2151_v5  ;;  %v2175_v30 = vadd.f32 %v2174_v46, %v2113_v62 }
 0x58e   : > { %v2116_v56 = vmul.f32 %v3918_v34, %v2097_v26  ;;  %v1521_v16 = vmul.f32 %v3889_v55, %v5207_v50  ;;  %v2137_v61 = vadd.f32 %v2136_v13, %v2135_v24  ;;  %v2117_v11 = vmul.f32 %v3919_v28, %v2097_v26 }
 0x58f   : > { %v2148_v48 = vrot.slane %v2147_v37, 1  ;;  %v2154_v27 = vrot.slane %v2153_v32, 1  ;;  %v2170_v42 = vrot.slane %v2169_v12, 2  ;;  %v2176_v35 = vrot.slane %v2175_v30, 2 }
 0x590   : > { %v2192_v17 = vrot.slane %v2116_v56, 4  ;;  %v1523_v39 = vsel %vm1522_vm11, %v5207_v50, %v1521_v16  ;;  %v1525_v33 = vand.u32 2147483648, %v5207_v50  ;;  %v2143_v5 = vadd.f32 %v2142_v14, %v2141_v44  ;;  %p5586_p2 = scmp.ne.s32.totalorder %s5583_s1, 0 }
 0x591   : > { %v2149_v62 = vadd.f32 %v2148_v48, %v2147_v37  ;;  %v2155_v45 = vadd.f32 %v2154_v27, %v2153_v32  ;;  %v2171_v10 = vadd.f32 %v2170_v42, %v2169_v12  ;;  %v2177_v60 = vadd.f32 %v2176_v35, %v2175_v30 }
 0x592   : > { %v2193_v46 = vadd.f32 %v2192_v17, %v2116_v56  ;;  %v2184_v24 = vrot.slane %v5232_v40, 1  ;;  %v2271_v26 = vsel %vm1855_vm1, %v2137_v61, %v5221_v38  ;;  %v2198_v13 = vrot.slane %v2117_v11, 4 }
 0x593   : > { %v1526_v55 = vsel %vm1524_vm12, %v1525_v33, %v1523_v39  ;;  %v2272_v34 = vsel %vm1857_vm2, %v2149_v62, %v2271_v26  ;;  %v2172_v16 = vrot.slane %v2171_v10, 1  ;;  %v2178_v28 = vrot.slane %v2177_v60, 1 }
 0x594   : > { %v2194_v21 = vrot.slane %v2193_v46, 2  ;;  %v2207_v44 = vadd.f32 %v2206_v2, %v5226_v20  ;;  %v2278_v35 = vsel %vm1855_vm1, %v2143_v5, %v5224_v41  ;;  %v2199_v42 = vadd.f32 %v2198_v13, %v2117_v11 }
 0x595   : > { %v3061_v27 = vmul.f32 -1.442695, %v1526_v55  ;;  %v2213_v17 = vadd.f32 %v2212_v53, %v2211_v58  ;;  %v2279_v14 = vsel %vm1857_vm2, %v2155_v45, %v2278_v35  ;;  %v2173_v38 = vadd.f32 %v2172_v16, %v2171_v10 }
 0x596   : > { %v2195_v37 = vadd.f32 %v2194_v21, %v2193_v46  ;;  %v2179_v12 = vadd.f32 %v2178_v28, %v2177_v60  ;;  %v2200_v50 = vrot.slane %v2199_v42, 2  ;;  %v2273_v32 = vsel %vm1859_vm3, %v5230_v49, %v2272_v34 }
 0x597   : > { %3890 = vpow2.f32 %v3061_v27  ;;  %v5572_v30 = vrot.slane %v5211_v1, 1  ;;  %v2190_v2 = vrot.slane %v5235_v25, 1  ;;  %v2274_v56 = vsel %vm1861_vm4, %v2173_v38, %v2273_v32 }
 0x598   : > { %v2196_v41 = vrot.slane %v2195_v37, 1  ;;  %v2185_v58 = vadd.f32 %v2184_v24, %v5232_v40  ;;  %v2208_v53 = vrot.slane %v2207_v44, 1  ;;  %v2201_v61 = vadd.f32 %v2200_v50, %v2199_v42 }
 0x599   : > { %v2167_v20 = vadd.f32 %v5572_v30, %v5211_v1  ;;  %v5573_v21 = vrot.slane %v5188_v23, 1  ;;  %v2214_v11 = vrot.slane %v2213_v17, 1  ;;  %v2496_v33 = vrot.slane %v5218_v43, 4 }
 0x59a   : > { %v2197_v49 = vadd.f32 %v2196_v41, %v2195_v37  ;;  %v2202_v1 = vrot.slane %v2201_v61, 1  ;;  %v2275_v62 = vsel %vm1863_vm5, %v2185_v58, %v2274_v56  ;;  %v2430_v45 = vrot.slane %v5201_v31, 1 }
 0x59b   : > { %v2403_v48 = vadd.f32 %v5573_v21, %v5188_v23  ;;  %v2280_v39 = vsel %vm1859_vm3, %v2167_v20, %v2279_v14  ;;  %v2191_v40 = vadd.f32 %v2190_v2, %v5235_v25  ;;  %v5574_v23 = vrot.slane %v5191_v3, 1 }
 0x59c   : > { %v2281_v5 = vsel %vm1861_vm4, %v2179_v12, %v2280_v39  ;;  %v2276_v10 = vsel %vm1865_vm6, %v2197_v49, %v2275_v62  ;;  %v2470_v46 = vrot.slane %v5213_v63, 2  ;;  %v2209_v24 = vadd.f32 %v2208_v53, %v2207_v44 }
 0x59d   : > { %v2417_v60 = vadd.f32 %v5574_v23, %v5191_v3  ;;  %v2203_v26 = vadd.f32 %v2202_v1, %v2201_v61  ;;  %v5575_v13 = vrot.slane %v5195_v19, 2  ;;  %v2215_v34 = vadd.f32 %v2214_v11, %v2213_v17 }
 0x59e   : > { %v2282_v16 = vsel %vm1863_vm5, %v2191_v40, %v2281_v5  ;;  %v2444_v28 = vrot.slane %v5203_v29, 1  ;;  %v2497_v25 = vadd.f32 %v2496_v33, %v5218_v43  ;;  %v2277_v42 = vsel %vm1867_vm7, %v2209_v24, %v2276_v10 }
 0x59f   : > { %v2457_v55 = vadd.f32 %v5575_v13, %v5195_v19  ;;  %v2283_v35 = vsel %vm1865_vm6, %v2203_v26, %v2282_v16  ;;  %v2431_v3 = vadd.f32 %v2430_v45, %v5201_v31  ;;  %v2484_v44 = vrot.slane %v5215_v57, 2 }
 0x5a0   : > { %v2284_v27 = vsel %vm1867_vm7, %v2215_v34, %v2283_v35  ;;  %v2471_v14 = vadd.f32 %v2470_v46, %v5213_v63  ;;  %v2504_v19 = vmul.f32 0.25, %v2403_v48  ;;  %v2506_v17 = vmul.f32 0.25, %v2417_v60 }
 0x5a1   : > { %v3891_v38 = vpop.eup %3890  ;;  %2351 = vmatprep.mubr.f32.mxu1 %v2284_v27  ;;  %v2458_v37 = vrot.slane %v2457_v55, 1  ;;  %v2445_v43 = vadd.f32 %v2444_v28, %v5203_v29  ;;  %v2498_v50 = vrot.slane %v2497_v25, 2  ;;  %v2485_v32 = vadd.f32 %v2484_v44, %v5215_v57  ;;  %v2519_v28 = vld [vmem:[#allocation17] sm:$0xff]  ;;  %v2537_v44 = vld [vmem:[#allocation17 + $0x90] sm:$0xff]  ;;  %v2538_v27 = vld [vmem:[#allocation17 + $0x98] sm:$0xff] }
 0x5a2   : > { %2352 = vmatmul.mubr.f32.vlgmr.msra.gmra.mrb[6].mxu1 %v2277_v42  ;;  %v1530_v12 = vadd.f32 1.0, %v3891_v38  ;;  %v2508_v30 = vmul.f32 0.25, %v2431_v3  ;;  %v2472_v31 = vrot.slane %v2471_v14, 1  ;;  %v2581_v20 = vsel %vm1855_vm1, %v2506_v17, %v2504_v19  ;;  %v2520_v3 = vld [vmem:[#allocation17 + $0x8] sm:$0xff] }
 0x5a3   : > { %v2459_v2 = vadd.f32 %v2458_v37, %v2457_v55  ;;  %v2390_v63 = vsel %vm2389_vm10, %v5134_v15, 0.0  ;;  %v2404_v41 = vsel %vm2389_vm10, %v5137_v47, 0.0  ;;  %v2499_v56 = vadd.f32 %v2498_v50, %v2497_v25 }
 0x5a4   : > { %3892 = vrcp.f32 %v1530_v12  ;;  %v2510_v58 = vmul.f32 0.25, %v2445_v43  ;;  %v2486_v53 = vrot.slane %v2485_v32, 1  ;;  %v2582_v29 = vsel %vm1857_vm2, %v2508_v30, %v2581_v20  ;;  %v2521_v30 = vld [vmem:[#allocation17 + $0x10] sm:$0xff] }
 0x5a5   : > { %v2473_v61 = vadd.f32 %v2472_v31, %v2471_v14  ;;  %v2391_v21 = vrot.slane %v2390_v63, 4  ;;  %v2405_v57 = vrot.slane %v2404_v41, 4  ;;  %v2418_v48 = vsel %vm2389_vm10, %v5146_v59, 0.0  ;;  %v2522_v31 = vld [vmem:[#allocation17 + $0x18] sm:$0xff] }
 0x5a6   : > { %v2512_v11 = vmul.f32 0.25, %v2459_v2  ;;  %v2500_v49 = vrot.slane %v2499_v56, 1  ;;  %v2583_v39 = vsel %vm1859_vm3, %v2510_v58, %v2582_v29  ;;  %v2487_v33 = vadd.f32 %v2486_v53, %v2485_v32 }
 0x5a7   : > { %v2419_v15 = vrot.slane %v2418_v48, 4  ;;  %v2432_v47 = vsel %vm2389_vm10, %v5149_v8, 0.0  ;;  %v2514_v1 = vmul.f32 0.25, %v2473_v61  ;;  %v2392_v5 = vadd.f32 %v2391_v21, %v2390_v63 }
 0x5a8   : > { %v2406_v62 = vadd.f32 %v2405_v57, %v2404_v41  ;;  %v2584_v45 = vsel %vm1861_vm4, %v2512_v11, %v2583_v39  ;;  %v2501_v10 = vadd.f32 %v2500_v49, %v2499_v56  ;;  %v2433_v23 = vrot.slane %v2432_v47, 4  ;;  %v2539_v41 = vld [vmem:[#allocation17 + $0xa0] sm:$0xff]  ;;  %v2540_v56 = vld [vmem:[#allocation17 + $0xa8] sm:$0xff] }
 0x5a9   : > { %v2446_v59 = vsel %vm2389_vm10, %v5160_v9, 0.0  ;;  %v2516_v46 = vmul.f32 0.25, %v2487_v33  ;;  %v2420_v24 = vadd.f32 %v2419_v15, %v2418_v48  ;;  %v2585_v26 = vsel %vm1863_vm5, %v2514_v1, %v2584_v45  ;;  %v2523_v49 = vld [vmem:[#allocation17 + $0x20] sm:$0xff]  ;;  %v2524_v39 = vld [vmem:[#allocation17 + $0x28] sm:$0xff]  ;;  %v2541_v15 = vld [vmem:[#allocation17 + $0xb0] sm:$0xff] }
 0x5aa   : > { %v2393_v13 = vrot.slane %v2392_v5, 2  ;;  %v2407_v55 = vrot.slane %v2406_v62, 2  ;;  %v2447_v34 = vrot.slane %v2446_v59, 4  ;;  %v2460_v16 = vsel %vm2389_vm10, %v5168_v54, 0.0 }
 0x5ab   : > { %v2518_v25 = vmul.f32 0.25, %v2501_v10  ;;  %v2434_v35 = vadd.f32 %v2433_v23, %v2432_v47  ;;  %v1534_v9 = vmul.f32 0.9, %v4994_v0  ;;  %v2586_v14 = vsel %vm1865_vm6, %v2516_v46, %v2585_v26  ;;  %v2542_v47 = vld [vmem:[#allocation17 + $0xb8] sm:$0xff] }
 0x5ac   : > { %v2421_v19 = vrot.slane %v2420_v24, 2  ;;  %v2394_v17 = vadd.f32 %v2393_v13, %v2392_v5  ;;  %v2408_v38 = vadd.f32 %v2407_v55, %v2406_v62  ;;  %v2474_v37 = vsel %vm2389_vm10, %v5172_v22, 0.0  ;;  %v2526_v46 = vld [vmem:[#allocation17 + $0x38] sm:$0xff]  ;;  %v2543_v13 = vld [vmem:[#allocation17 + $0xc0] sm:$0xff]  ;;  %v2544_v55 = vld [vmem:[#allocation17 + $0xc8] sm:$0xff] }
 0x5ad   : > { %v2448_v12 = vadd.f32 %v2447_v34, %v2446_v59  ;;  %v3687_v43 = vpack.c.bf16 %v2520_v3, %v2519_v28  ;;  %v3689_v50 = vpack.c.bf16 %v2538_v27, %v2537_v44  ;;  %v2587_v0 = vsel %vm1867_vm7, %v2518_v25, %v2586_v14  ;;  %v2525_v59 = vld [vmem:[#allocation17 + $0x30] sm:$0xff]  ;;  %v2527_v3 = vld [vmem:[#allocation17 + $0x40] sm:$0xff]  ;;  %v2528_v44 = vld [vmem:[#allocation17 + $0x48] sm:$0xff] }
 0x5ae   : > { %v3893_v40 = vpop.eup %3892  ;;  %v2435_v32 = vrot.slane %v2434_v35, 2  ;;  %v2422_v20 = vadd.f32 %v2421_v19, %v2420_v24  ;;  %v2475_v2 = vrot.slane %v2474_v37, 4  ;;  %v2488_v63 = vsel %vm2389_vm10, %v5183_v6, 0.0  ;;  %v2545_v19 = vld [vmem:[#allocation17 + $0xd0] sm:$0xff] }
 0x5af   : > { %v5308_v60 = vmul.f32 0.1, %v3893_v40  ;;  %v2395_v58 = vrot.slane %v2394_v17, 1  ;;  %v2409_v53 = vrot.slane %v2408_v38, 1  ;;  %v2449_v61 = vrot.slane %v2448_v12, 2 }
 0x5b0   : > { %v3691_v21 = vpack.c.bf16 %v2522_v31, %v2521_v30  ;;  %v2436_v57 = vadd.f32 %v2435_v32, %v2434_v35  ;;  %v2489_v48 = vrot.slane %v2488_v63, 4  ;;  %v3693_v11 = vpack.c.bf16 %v2540_v56, %v2539_v41  ;;  %v2530_v32 = vld [vmem:[#allocation17 + $0x58] sm:$0xff]  ;;  %v2547_v31 = vld [vmem:[#allocation17 + $0xe0] sm:$0xff] }
 0x5b1   : > { %v1535_v8 = vmul.f32 %v5308_v60, %v5186_v7  ;;  %v2461_v7 = vrot.slane %v2460_v16, 4  ;;  %v2423_v6 = vrot.slane %v2422_v20, 1  ;;  %v2476_v33 = vadd.f32 %v2475_v2, %v2474_v37 }
 0x5b2   : > { %v2396_v1 = vadd.f32 %v2395_v58, %v2394_v17  ;;  %v2410_v5 = vadd.f32 %v2409_v53, %v2408_v38  ;;  %v2450_v45 = vadd.f32 %v2449_v61, %v2448_v12  ;;  %v2437_v40 = vrot.slane %v2436_v57, 1  ;;  %v2546_v17 = vld [vmem:[#allocation17 + $0xd8] sm:$0xff] }
 0x5b3   : > { %v1536_v42 = vmul.f32 %v1535_v8, %v5105_v52  ;;  %v2462_v22 = vadd.f32 %v2461_v7, %v2460_v16  ;;  %v2490_v10 = vadd.f32 %v2489_v48, %v2488_v63  ;;  %v3697_v23 = vpack.c.bf16 %v2542_v47, %v2541_v15  ;;  %v2534_v15 = vld [vmem:[#allocation17 + $0x78] sm:$0xff] }
 0x5b4   : > { %v2424_v24 = vadd.f32 %v2423_v6, %v2422_v20  ;;  %v2477_v26 = vrot.slane %v2476_v33, 2  ;;  %v2503_v34 = vmul.f32 0.25, %v2396_v1  ;;  %v2505_v16 = vmul.f32 0.25, %v2410_v5  ;;  %v2548_v20 = vld [vmem:[#allocation17 + $0xe8] sm:$0xff] }
 0x5b5   : > { %v1537_v54 = vsub.f32 %v1534_v9, %v1536_v42  ;;  %v2463_v62 = vrot.slane %v2462_v22, 2  ;;  %v2451_v28 = vrot.slane %v2450_v45, 1  ;;  %v3699_v25 = vpack.c.bf16 %v2526_v46, %v2525_v59 }
 0x5b6   : > { %v2438_v35 = vadd.f32 %v2437_v40, %v2436_v57  ;;  %v2491_v9 = vrot.slane %v2490_v10, 2  ;;  %v3701_v42 = vpack.c.bf16 %v2544_v55, %v2543_v13  ;;  %v2478_v27 = vadd.f32 %v2477_v26, %v2476_v33  ;;  %v2550_v57 = vld [vmem:[#allocation17 + $0xf8] sm:$0xff]  ;;  %v2533_v33 = vld [vmem:[#allocation17 + $0x70] sm:$0xff] }
 0x5b7   : > { %v1538_v52 = vmax.f32 %v1537_v54, 0.0  ;;  %v2464_v8 = vadd.f32 %v2463_v62, %v2462_v22  ;;  %v2507_v14 = vmul.f32 0.25, %v2424_v24  ;;  %v2574_v7 = vsel %vm1855_vm1, %v2505_v16, %v2503_v34  ;;  %v2531_v22 = vld [vmem:[#allocation17 + $0x60] sm:$0xff] }
 0x5b8   : > { %v2452_v37 = vadd.f32 %v2451_v28, %v2450_v45  ;;  %v3703_v54 = vpack.c.bf16 %v2528_v44, %v2527_v3  ;;  %v2492_v12 = vadd.f32 %v2491_v9, %v2490_v10  ;;  %v3709_v53 = vpack.c.bf16 %v2548_v20, %v2547_v31  ;;  %v3063_v10 = vld [vmem:[%s5576_s13] ss:$0 sm:$0xff]  ;;  %s3068_s13 = sld [smem:[#allocation18 + $0x1]] }
 0x5b9   : > { %3395 = vmatmul.mubr.f32.vlgmr.msra.gmra.mrb[6].mxu0 %v1538_v52  ;;  %v1539_v29 = vmul.f32 %v1538_v52, %v4997_v4  ;;  %v3695_v4 = vpack.c.bf16 %v2524_v39, %v2523_v49  ;;  %v2465_v38 = vrot.slane %v2464_v8, 1  ;;  %v2479_v52 = vrot.slane %v2478_v27, 1  ;;  %v3920_v34 = vld [vmem:[%s5570_s12] ss:$0 sm:$0xff] }
 0x5ba   : > { %3688 = vmatpush3.bf16.msra.mxu0 %v3687_v43  ;;  %2654 = vmatprep.mubr.f32.mxu0 %v2587_v0  ;;  %v2509_v43 = vmul.f32 0.25, %v2438_v35  ;;  %v2529_v0 = vld [vmem:[#allocation17 + $0x50] sm:$0xff]  ;;  %v2575_v30 = vsel %vm1857_vm2, %v2507_v14, %v2574_v7  ;;  %v2511_v63 = vmul.f32 0.25, %v2452_v37  ;;  %v2493_v56 = vrot.slane %v2492_v12, 1  ;;  %v3062_v9 = vld [vmem:[%s5577_s26] ss:$0 sm:$0xff] }
 0x5bb   : > { %1540 = vadd.xlane.f32.xlu1 %v1539_v29  ;;  %3690 = vmatprep.subr.bf16.mxu0 %v3689_v50  ;;  %v3705_v50 = vpack.c.bf16 %v2546_v17, %v2545_v19  ;;  %v2466_v2 = vadd.f32 %v2465_v38, %v2464_v8  ;;  %v3707_v41 = vpack.c.bf16 %v2530_v32, %v2529_v0  ;;  %v2532_v29 = vld [vmem:[#allocation17 + $0x68] sm:$0xff]  ;;  %v3065_v44 = vld [vmem:[%s5578_s17] ss:$0 sm:$0xff]  ;;  %v2698_v0 = vpop.xlane.xlu0 %2697  ;;  %s2809_s26 = sshll.u32 %s836_s10, 4  ;;  %s2796_s17 = sshll.u32 %s5380_s4, 4  ;;  %s5389_s26 = int_to_ptr.vmem [resolvable:$true] %s2809_s26  ;;  %s5396_s17 = int_to_ptr.vmem [resolvable:$true] %s2796_s17 }
 0x5bc   : > { %v2576_v58 = vsel %vm1859_vm3, %v2509_v43, %v2575_v30  ;;  %v2480_v61 = vadd.f32 %v2479_v52, %v2478_v27  ;;  %v3711_v49 = vpack.c.bf16 %v2532_v29, %v2531_v22  ;;  %v2494_v39 = vadd.f32 %v2493_v56, %v2492_v12  ;;  %v3064_v38 = vld [vmem:[%s5580_s27] ss:$0 sm:$0xff]  ;;  %s5585_s27 = sld [smem:[#allocation51_spill]] }
 0x5bd   : > { %v2513_v48 = vmul.f32 0.25, %v2466_v2  ;;  %v3715_v5 = vpack.c.bf16 %v2534_v15, %v2533_v33  ;;  %v2708_v30 = vstv %s2705_s9  ;;  %s4335_s9 = smov [#allocation20]  }
 0x5be   : > { %3692 = vmatpush3.bf16.msra.mxu0 %v3691_v21  ;;  %v2549_v21 = vld [vmem:[#allocation17 + $0xf0] sm:$0xff]  ;;  %v2515_v47 = vmul.f32 0.25, %v2480_v61  ;;  %v2517_v62 = vmul.f32 0.25, %v2494_v39 }
 0x5bf   : > { %3694 = vmatprep.subr.bf16.mxu0 %v3693_v11  ;;  %v2577_v11 = vsel %vm1861_vm4, %v2511_v63, %v2576_v58  ;;  %v3713_v6 = vpack.c.bf16 %v2550_v57, %v2549_v21  ;;  %v2732_v63 = vmax.f32 %v2698_v0, 1e-16  ;;  %v2724_v57 = vstv %s3069_s21 }
 0x5c0   : > { %v2578_v1 = vsel %vm1863_vm5, %v2513_v48, %v2577_v11 }
 0x5c1   : > { %v2579_v45 = vsel %vm1865_vm6, %v2515_v47, %v2578_v1 }
 0x5c2   : > { %3696 = vmatpush3.bf16.msra.mxu0 %v3695_v4  ;;  %v2580_v4 = vsel %vm1867_vm7, %v2517_v62, %v2579_v45  ;;  %s5394_s7 = scalar_lea.hbm %s5585_s27, %s3075_s28 }
 0x5c3   : > { %3698 = vmatprep.subr.bf16.mxu0 %v3697_v23 }
 0x5c6   : > { %3700 = vmatpush3.bf16.msra.mxu0 %v3699_v25 }
 0x5c7   : > { %3702 = vmatprep.subr.bf16.mxu0 %v3701_v42 }
 0x5ca   : > { %3704 = vmatpush3.bf16.msra.mxu0 %v3703_v54  ;;  %v3067_v54 = vld [vmem:[%s5581_s20] ss:$0 sm:$0xff]  ;;  %s4194_s20 = scalar_lea.vmem %s5389_s26, 128 }
 0x5cb   : > { %3706 = vmatprep.subr.bf16.mxu0 %v3705_v50  ;;  %p4195_p1 = scmp.ne.s32.totalorder %s5389_s26, %s4194_s20 }
 0x5cd   : > { %p4196_p5 = pnand %p4195_p1, %p5586_p2 }
 0x5ce   : > { %3708 = vmatpush3.bf16.msra.mxu0 %v3707_v41 }
 0x5cf   : > { %3710 = vmatprep.subr.bf16.mxu0 %v3709_v53  ;;  %v2716_v53 = vstv %s3068_s13  ;;  %p4197_p3 = pneg %p4196_p5  ;;  %s4198_s13 = sshll.u32 %s4335_s9, 4  ;;  %s4199_s13 = int_to_ptr.vmem [resolvable:$false] %s4198_s13 }
 0x5d0   : > { %s4200_s21 = scalar_lea.vmem %s4199_s13, 256  ;;  %p4201_p4 = scmp.lt.s32.totalorder %s5389_s26, %s4199_s13 }
 0x5d1   : > { %p4202_p11 = scmp.lt.s32.totalorder %s4200_s21, %s4194_s20 }
 0x5d2   : > { %3712 = vmatpush3.bf16.msra.mxu0 %v3711_v49 }
 0x5d3   : > { %3714 = vmatprep.subr.bf16.mxu0 %v3713_v6  ;;  %p4203_p12 = por %p4202_p11, %p4201_p4 }
 0x5d5   : > { %p4204_p7 = pnand %p4203_p12, %p4197_p3 }
 0x5d6   : > { %3716 = vmatpush3.bf16.msra.mxu0 %v3715_v5 }
 0x5d9   : > { %2655 = vmatmul.mubr.f32.vlgmr.msra.gmra.mrb[8].mxu0 %v2580_v4 }
 0x648   : > { %v1541_v26 = vpop.xlane.xlu1 %1540 }
 0x649   : > { %v1613_v13 = vadd.f32 1.0, %v1541_v26 }
 0x64b   : > { %v1614_v55 = vmul.f32 %v1613_v13, %v5308_v60 }
 0x64d   : > { %v1615_v25 = vmul.f32 %v1614_v55, %v5078_v51  ;;  %v3066_v51 = vld [vmem:[%s5579_s19] ss:$0 sm:$0xff]  ;;  %s5387_s19 = scalar_lea.hbm %s5584_s30, %s3075_s28 }
 0x675   : > { %v3219_v40 = vpop.f32.mrb[6].mxu1 }
 0x676   : > { %v3220_v23 = vpop.f32.mrb[7].mxu1 }
 0x677   : > { %v3221_v59 = vadd.f32 %v3220_v23, %v3219_v40 }
 0x679   : > { %v5334_v46 = vadd.f32 %v3221_v59, %v3063_v10 }
 0x67b   : > { %v2688_v24 = vmul.f32 %v5334_v46, %v5334_v46  ;;  %v2687_v19 = vmul.f32 %v5334_v46, %v5129_v36 }
 0x67d   : > { %2703 = vadd.xlane.f32.xlu1 %v2688_v24 }
 0x68c   : > { %v1608_v8 = vpop.f32.mrb[6].mxu0 }
 0x68d   : > { %v1609_v16 = vadd.f32 %v3920_v34, %v1608_v8  ;;  %v3396_v28 = vpop.f32.mrb[7].mxu0 }
 0x68f   : > { %v1612_v35 = vmul.f32 0.9, %v1609_v16  ;;  %v1512_v16 = vmul.f32 0.0078125, %v5139_v18 }
 0x691   : > { %v1616_v42 = vsub.f32 %v1612_v35, %v1615_v25  ;;  %v5582_v25 = vld [vmem:[#allocation36_spill] sm:$0xff] }
 0x692   : > { %vm2760_vm13 = vcmp.eq.s32.totalorder %v5582_v25, 0  ;;  %vm2764_vm14 = vcmp.eq.s32.totalorder %v5582_v25, 1  ;;  %vm2768_vm15 = vcmp.eq.s32.totalorder %v5582_v25, 2  ;;  %vm2772_vm0 = vcmp.eq.s32.totalorder %v5582_v25, 3 }
 0x693   : > { %v5346_v3 = vadd.f32 %v3062_v9, %v1616_v42 }
 0x695   : > { %v2686_v60 = vmul.f32 %v5346_v3, %v5346_v3  ;;  %v2667_v27 = vmul.f32 %v3065_v44, %v5346_v3  ;;  %v2675_v14 = vmul.f32 %v3066_v51, %v5346_v3  ;;  %v2684_v50 = vmul.f32 %v5346_v3, %v5129_v36 }
 0x697   : > { %2699 = vadd.xlane.f32.xlu0 %v2686_v60 }
 0x69b   : > { %2689 = vadd.xlane.f32.xlu0 %v2667_v27  ;;  %v2763_v27 = vsel %vm2760_vm13, %v1512_v16, 0.0 }
 0x69f   : > { %2691 = vadd.xlane.f32.xlu0 %v2675_v14 }
 0x6a3   : > { %2701 = vadd.xlane.f32.xlu0 %v2687_v19 }
 0x6ac   : > { %v3254_v17 = vpop.f32.mrb[8].mxu0 }
 0x6ad   : > { %v3255_v7 = vpop.f32.mrb[9].mxu0 }
 0x6ae   : > { %v3256_v37 = vadd.f32 %v3255_v7, %v3254_v17 }
 0x6b0   : > { %v5366_v12 = vadd.f32 %v3256_v37, %v3064_v38 }
 0x6b2   : > { %v2683_v43 = vmul.f32 %v3067_v54, %v5366_v12 }
 0x6b4   : > { %2693 = vadd.xlane.f32.xlu1 %v2683_v43 }
 0x6b8   : > { %2695 = vadd.xlane.f32.xlu1 %v2684_v50 }
 0x70a   : > { %v2704_v52 = vpop.xlane.xlu1 %2703 }
 0x70b   : > { %v2739_v20 = vmax.f32 %v2704_v52, 1e-16 }
 0x70d   : > { %v2740_v41 = vmul.f32 %v2739_v20, %v2732_v63 }
 0x70f   : > { %3894 = vrsqrt.f32 %v2740_v41 }
 0x719   : > { %v3895_v48 = vpop.eup %3894 }
 0x724   : > { %v2700_v32 = vpop.xlane.xlu0 %2699 }
 0x725   : > { %v2733_v56 = vmax.f32 %v2700_v32, 1e-16 }
 0x727   : > { %v2734_v29 = vmul.f32 %v2733_v56, %v2732_v63 }
 0x728   : > { %v2690_v31 = vpop.xlane.xlu0 %2689 }
 0x729   : > { %v2709_v2 = vadd.f32 %v2708_v30, %v2690_v31 }
 0x72b   : > { %v3070_v58 = vmul.f32 -1.442695, %v2709_v2 }
 0x72c   : > { %v2692_v22 = vpop.xlane.xlu0 %2691 }
 0x72d   : > { %3896 = vpow2.f32 %v3070_v58  ;;  %v2717_v36 = vadd.f32 %v2716_v53, %v2692_v22 }
 0x72e   : > { %3898 = vrsqrt.f32 %v2734_v29 }
 0x72f   : > { %v3071_v61 = vmul.f32 -1.442695, %v2717_v36 }
 0x730   : > { %v2702_v21 = vpop.xlane.xlu0 %2701 }
 0x731   : > { %3900 = vpow2.f32 %v3071_v61  ;;  %v2742_v39 = vmul.f32 %v3895_v48, %v2702_v21 }
 0x733   : > { %v2743_v5 = vadd.f32 1.0, %v2742_v39 }
 0x735   : > { %v2744_v4 = vmul.f32 0.5, %v2743_v5 }
 0x737   : > { %v3897_v49 = vpop.eup %3896 }
 0x738   : > { %v3899_v15 = vpop.eup %3898  ;;  %v2713_v47 = vadd.f32 1.0, %v3897_v49 }
 0x73b   : > { %v3901_v10 = vpop.eup %3900 }
 0x73c   : > { %v2721_v59 = vadd.f32 1.0, %v3901_v10 }
 0x741   : > { %v2694_v11 = vpop.xlane.xlu1 %2693 }
 0x742   : > { %v2725_v6 = vadd.f32 %v2724_v57, %v2694_v11 }
 0x744   : > { %v3072_v33 = vmul.f32 -1.442695, %v2725_v6 }
 0x745   : > { %v2696_v1 = vpop.xlane.xlu1 %2695 }
 0x746   : > { %3902 = vpow2.f32 %v3072_v33  ;;  %v2736_v62 = vmul.f32 %v3899_v15, %v2696_v1 }
 0x747   : > { %3904 = vrcp.f32 %v2713_v47 }
 0x748   : > { %v2737_v45 = vadd.f32 1.0, %v2736_v62 }
 0x74a   : > { %v2738_v40 = vmul.f32 0.5, %v2737_v45 }
 0x74c   : > { %v2745_v23 = vadd.f32 %v2744_v4, %v2738_v40 }
 0x74e   : > { %v2746_v24 = vadd.f32 1e-08, %v2745_v23 }
 0x750   : > { %v3903_v26 = vpop.eup %3902  ;;  %3906 = vrcp.f32 %v2746_v24 }
 0x751   : > { %v2729_v13 = vadd.f32 1.0, %v3903_v26  ;;  %3908 = vrcp.f32 %v2721_v59  ;;  %v3905_v55 = vpop.eup %3904 }
 0x752   : > { %v2752_v8 = vsub.f32 1.0, %v3905_v55  ;;  %v2751_v42 = vmul.f32 %v3905_v55, %v5346_v3  ;;  %v2767_v3 = vsel %vm2764_vm14, %v3905_v55, %v2763_v27 }
 0x753   : > { %3910 = vrcp.f32 %v2729_v13 }
 0x754   : > { %v2753_v28 = vmul.f32 %v2752_v8, %v5334_v46 }
 0x756   : > { %v2754_v51 = vadd.f32 %v2753_v28, %v2751_v42 }
 0x75a   : > { %v3907_v34 = vpop.eup %3906 }
 0x75b   : > { %v2748_v35 = vmul.f32 %v3907_v34, %v2738_v40  ;;  %v3909_v9 = vpop.eup %3908 }
 0x75c   : > { %v2771_v17 = vsel %vm2768_vm15, %v3909_v9, %v2767_v3 }
 0x75d   : > { %v3911_v60 = vpop.eup %3910  ;;  %v2749_v44 = vsub.f32 %v3909_v9, %v2748_v35 }
 0x75e   : > { %v2756_v18 = vsub.f32 1.0, %v3911_v60  ;;  %v2755_v14 = vmul.f32 %v3911_v60, %v5366_v12 }
 0x75f   : > { %v2750_v46 = vmul.f32 %v2749_v44, %v2749_v44 }
 0x760   : > { %v2757_v19 = vmul.f32 %v2756_v18, %v2754_v51 }
 0x761   : > { %v2775_v38 = vsel %vm2772_vm0, %v2750_v46, %v2771_v17 }
 0x762   : > { %v2758_v7 = vadd.f32 %v2757_v19, %v2755_v14  ;;  %2776 = vst [vmem:[%s836_s10] sm:$0xff] %v2775_v38 }
 0x763   : > { %4207 = shalt.err (!%p4204_p7)
}
 0x764   : > { %s4208_s0 = scalar_lea.hbm %s5387_s19, 128  ;;  %s4212_s3 = scalar_lea.hbm %s5584_s30, 256 }
 0x765   : > { %p4209_p10 = scmp.ne.s32.totalorder %s5387_s19, %s4208_s0  ;;  %p4213_p8 = scmp.lt.u32.totalorder %s5387_s19, %s5584_s30 }
 0x766   : > { %p4214_p6 = scmp.lt.u32.totalorder %s4212_s3, %s4208_s0  ;;  %p4216_p1 = scmp.lt.u32.totalorder %s4208_s0, %s5387_s19 }
 0x767   : > { %p4210_p13 = pnand %p4209_p10, %p5586_p2 }
 0x768   : > { %p4215_p0 = por %p4214_p6, %p4213_p8 }
 0x769   : > { %p4211_p9 = pneg %p4210_p13 }
 0x76a   : > { %p4217_p5 = por %p4216_p1, %p4215_p0 }
 0x76c   : > { %p4218_p3 = pnand %p4217_p5, %p4211_p9 }
 0x76e   : > { %4221 = shalt.err (!%p4218_p3)
}
 0x76f   : > { %3752 = dma.vmem_to_hbm [thread:$0]  (%p5586_p2), %s5389_s26, 128, %s5387_s19, %s2783_s16   ;;  %2759 = vst [vmem:[%s5380_s4] sm:$0xff] %v2758_v7 }
 0x770   : > { %s2778_s29 = scalar_lea.sflag [#allocation4], %s4776_s23  ;;  %s4222_s20 = scalar_lea.vmem %s5396_s17, 128 }
 0x771   : > { %p4223_p4 = scmp.ne.s32.totalorder %s5396_s17, %s4222_s20  ;;  %s4336_s9 = smov [#allocation19]  }
 0x772   : > { %s4226_s13 = sshll.u32 %s4336_s9, 4  ;;  %s4227_s13 = int_to_ptr.vmem [resolvable:$false] %s4226_s13 }
 0x773   : > { %p4224_p11 = pnand %p4223_p4, %p5586_p2  ;;  %s4228_s21 = scalar_lea.vmem %s4227_s13, 256 }
 0x774   : > { %p4229_p7 = scmp.lt.s32.totalorder %s5396_s17, %s4227_s13  ;;  %p4230_p10 = scmp.lt.s32.totalorder %s4228_s21, %s4222_s20 }
 0x775   : > { %p4225_p12 = pneg %p4224_p11 }
 0x776   : > { %p4231_p13 = por %p4230_p10, %p4229_p7 }
 0x778   : > { %p4232_p9 = pnand %p4231_p13, %p4225_p12 }
 0x77a   : > { %4235 = shalt.err (!%p4232_p9)
}
 0x77b   : > { %s4236_s23 = scalar_lea.hbm %s5394_s7, 128  ;;  %s4240_s19 = scalar_lea.hbm %s5585_s27, 256 }
 0x77c   : > { %p4237_p8 = scmp.ne.s32.totalorder %s5394_s7, %s4236_s23  ;;  %p4241_p1 = scmp.lt.u32.totalorder %s5394_s7, %s5585_s27 }
 0x77d   : > { %p4242_p5 = scmp.lt.u32.totalorder %s4240_s19, %s4236_s23  ;;  %p4244_p4 = scmp.lt.u32.totalorder %s4236_s23, %s5394_s7 }
 0x77e   : > { %p4238_p6 = pnand %p4237_p8, %p5586_p2 }
 0x77f   : > { %p4243_p3 = por %p4242_p5, %p4241_p1 }
 0x780   : > { %p4239_p0 = pneg %p4238_p6 }
 0x781   : > { %p4245_p11 = por %p4244_p4, %p4243_p3 }
 0x783   : > { %p4246_p12 = pnand %p4245_p11, %p4239_p0 }
 0x785   : > { %4249 = shalt.err (!%p4246_p12)
}
 0x786   : > { %3751 = dma.vmem_to_hbm [thread:$0]  (%p5586_p2), %s5396_s17, 128, %s5394_s7, %s2778_s29  }
 0x787 PF: > { %s5587_s28 = sld [smem:[#allocation30_spill]]  ;;  %s5588_s10 = sld [smem:[#allocation35_spill]] }
 0x788   : > { %p5590_p10 = scmp.ge.s32.totalorder %s4312_s24, 2 }
 0x78d   : > { %s2821_s3 = sand.u32 1, %s5587_s28   ;;  %p5589_p7 = scmp.ne.s32.totalorder %s5588_s10, 0 }
 0x78e   : > { %s2822_s14 = scalar_lea.sflag [#allocation4], %s2821_s3 }
 0x78f   : > { %p3788_p13 = pnand %p5590_p10, %p5589_p7 }
 0x791   : > { %4291 = dma.done.wait (!%p3788_p13), %s2822_s14, 128  }
 0x792   : > { %4293 = vsyncadd (!%p3788_p13), %s2822_s14, 4294967168  ;;  %s2831_s2 = scalar_lea.sflag [#allocation21], %s2821_s3 }
 0x793   : > { %4295 = dma.done.wait (!%p3788_p13), %s2831_s2, 128  }
 0x794   : > { %4297 = vsyncadd (!%p3788_p13), %s2831_s2, 4294967168  ;;  %s5591_s24 = sld [smem:[#allocation32_spill]]  ;;  %s5592_s20 = sld [smem:[#allocation31_spill]] }
 0x795   : > { %s5593_s23 = sld [smem:[#allocation33_spill]]  ;;  %s5594_s1 = smov %s4304_s22 }
 0x79a   : > { %p44_p2 = scmp.ge.s32.totalorder %s5591_s24, 4   ;;  %s5595_s22 = smov %s5592_s20 }
 0x79c   :  { %46 = sbr.rel (!%p44_p2) target bundleno = 30 (0x1e), region = 211 }
 0x7a3   :  { %2836 = vsyncpa [#allocation3], 1 }
 0x7a4   :  { %2838 = vsyncpa [#allocation3 + $0x1], 1 }
 0x7a5   :  { %2839 = vsyncpa [#allocation7], 1 }
 0x7a6   :  { %2841 = vsyncpa [#allocation7 + $0x1], 1 }
 0x7a7   :  { %2842 = vsyncpa [#allocation10], 1 }
 0x7a8   :  { %2843 = vsyncpa [#allocation13], 1 }
 0x7a9   :  { %2844 = vsyncpa [#allocation16], 1 }
 0x7aa   :  { %2845 = vsyncpa [#allocation4], 1 }
 0x7ab   :  { %2847 = vsyncpa [#allocation4 + $0x1], 1 }
 0x7ac   :  { %2848 = vsyncpa [#allocation21], 1 }
 0x7ad   :  { %2850 = vsyncpa [#allocation21 + $0x1], 1 }
 0x7ae   :  { %2851 = vsyncpa [#allocation5], 1 }
 0x7af   :  { %2853 = vsyncpa [#allocation5 + $0x1], 1 }

</bundles_post_ra>
